<compile_context>
chip_gen: v7x
topology: tpu7x:2x2x1
jax: 0.10.0
libtpu: 0.0.40
codegen_flags: <defaults>
</compile_context>

<pallas_src>
import functools

import numpy as np

import jax
import jax.numpy as jnp
from jax.experimental import pallas as pl
from jax.experimental.pallas import tpu as pltpu


def compute_conv2d_output_size(size, kernel_size, stride, padding):
    return tuple((s + 2 * padding - kernel_size) // stride + 1 for s in size)


# ------------------------------ fused kernel -------------------------------- #

def _encoder_kernel(x_ref, w1_ref, b1_ref, w2_ref, b2_ref, w3_ref, b3_ref,
                    wfc_ref, bfc_ref, mean_ref, std_ref,
                    s1, s2, s3, sfc, *, C, H, W, a_dim):
    Ho1, Wo1 = H // 2, W // 2
    Ho2, Wo2 = Ho1 // 2, Wo1 // 2
    Ho3, Wo3 = Ho2 // 2, Wo2 // 2
    Wp1 = W + 2
    n1, n2, n3 = Wo1 * 32, Wo2 * 32, Wo3 * 32

    # Padded activation scratches: zero every grid step (each core has its own
    # scratch under "parallel", so a program_id==0 guard would be wrong).
    s1[...] = jnp.zeros_like(s1)
    s2[...] = jnp.zeros_like(s2)
    s3[...] = jnp.zeros_like(s3)

    # Fill conv1's padded input rows.  Channel-major row layout (ci, px) lets
    # the NCHW input block be copied in with C static slab stores, no transpose.
    for c in range(C):
        s1[:, 1:1 + H, c * Wp1 + 1:c * Wp1 + 1 + W] = x_ref[:, c, :, :]

    def conv_stage(src, w_ref, b_ref, ho, store_row):
        # out_row(oy) = relu(bias + sum_ky  src_row(2*oy+ky) @ W_hat[ky])
        # W_hat[ky] is the stride-2 3x3 conv expanded over (kx, ox) at init, so
        # the only in-kernel work is dense MXU dots on VMEM-resident rows.
        bias = b_ref[...]                                  # (1, Wo*32) f32
        for oy in range(ho):
            acc = bias
            for ky in range(3):
                lhs = src[:, 2 * oy + ky, :].astype(jnp.bfloat16)
                acc = acc + jnp.dot(lhs, w_ref[ky],
                                    preferred_element_type=jnp.float32)
            store_row(oy, jnp.maximum(acc, 0.0))

    def to_s2(oy, row):            # conv1 output row -> conv2 padded input row
        s2[:, oy + 1, 32:32 + n1] = row

    def to_s3(oy, row):            # conv2 output row -> conv3 padded input row
        s3[:, oy + 1, 32:32 + n2] = row

    def to_fc(oy, row):            # conv3 output row -> flattened (h,w,c) FC input
        sfc[:, oy * n3:(oy + 1) * n3] = row

    conv_stage(s1, w1_ref, b1_ref, Ho1, to_s2)
    conv_stage(s2, w2_ref, b2_ref, Ho2, to_s3)
    conv_stage(s3, w3_ref, b3_ref, Ho3, to_fc)

    # Both FC heads as one f32 matmul (weights pre-concatenated & row-permuted
    # at init so the VMEM-resident flatten order matches torch's x.view(B,-1)).
    z = jnp.dot(sfc[...], wfc_ref[...],
                preferred_element_type=jnp.float32) + bfc_ref[...]
    mean = z[:, :a_dim]
    zs = z[:, a_dim:]
    # Numerically stable softplus; exp/log hit the EUP.  (log1p(x) == log(1+x)
    # to f32 precision over the range that matters for a VAE std head.)
    std = jnp.maximum(zs, 0.0) + jnp.log(1.0 + jnp.exp(-jnp.abs(zs)))
    mean_ref[...] = mean
    std_ref[...] = std


# ------------------------------ forward wrapper ------------------------------ #

def encoder_forward(prep, x):
    """x: (B, C, H, W) NCHW float32 -> (mean, std), each (B, a_dim) float32."""
    B, C, H, W = x.shape
    assert H % 8 == 0 and W % 8 == 0, "three stride-2 convs need /8-divisible size"
    Ho1, Wo1 = H // 2, W // 2
    Ho2, Wo2 = Ho1 // 2, Wo1 // 2
    Ho3, Wo3 = Ho2 // 2, Wo2 // 2
    fc_in, two_a = prep["wfc"].shape
    a_dim = two_a // 2
    assert fc_in == Ho3 * Wo3 * 32
    assert prep["w1"].shape == (3, C * (W + 2), Wo1 * 32)

    # Batch tiling: >=2 grid steps lets "parallel" shard across v7x's two TCs;
    # at tiny B a single fused step is preferred (forward is launch-bound).
    bt = 8 if (B >= 16 and B % 16 == 0) else B
    nb = B // bt

    kernel = functools.partial(_encoder_kernel, C=C, H=H, W=W, a_dim=a_dim)

    mean, std = pl.pallas_call(
        kernel,
        out_shape=(jax.ShapeDtypeStruct((B, a_dim), jnp.float32),
                   jax.ShapeDtypeStruct((B, a_dim), jnp.float32)),
        grid=(nb,),
        in_specs=[
            pl.BlockSpec((bt, C, H, W), lambda i: (i, 0, 0, 0)),
            # Weights / biases are grid-invariant and only a few hundred KB, so
            # default double-buffering is harmless (pl.Buffered(1) would only
            # shave one redundant VMEM copy of each).
            pl.BlockSpec(prep["w1"].shape, lambda i: (0, 0, 0)),
            pl.BlockSpec(prep["b1"].shape, lambda i: (0, 0)),
            pl.BlockSpec(prep["w2"].shape, lambda i: (0, 0, 0)),
            pl.BlockSpec(prep["b2"].shape, lambda i: (0, 0)),
            pl.BlockSpec(prep["w3"].shape, lambda i: (0, 0, 0)),
            pl.BlockSpec(prep["b3"].shape, lambda i: (0, 0)),
            pl.BlockSpec(prep["wfc"].shape, lambda i: (0, 0)),
            pl.BlockSpec(prep["bfc"].shape, lambda i: (0, 0)),
        ],
        out_specs=(pl.BlockSpec((bt, a_dim), lambda i: (i, 0)),
                   pl.BlockSpec((bt, a_dim), lambda i: (i, 0))),
        scratch_shapes=[
            pltpu.VMEM((bt, H + 2, C * (W + 2)), jnp.float32),       # conv1 padded in
            pltpu.VMEM((bt, Ho1 + 2, 32 * (Wo1 + 2)), jnp.float32),  # conv2 padded in
            pltpu.VMEM((bt, Ho2 + 2, 32 * (Wo2 + 2)), jnp.float32),  # conv3 padded in
            pltpu.VMEM((bt, fc_in), jnp.float32),                    # flattened FC in
        ],
        compiler_params=pltpu.CompilerParams(
            dimension_semantics=("parallel",),
            vmem_limit_bytes=32 * 1024 * 1024,
        ),
    )(x, prep["w1"], prep["b1"], prep["w2"], prep["b2"],
      prep["w3"], prep["b3"], prep["wfc"], prep["bfc"])

    # TODO(synk): torch.distributions.Normal has no Pallas equivalent; return
    # (loc, scale) tensors instead of a distribution object.
    return mean, std


# --------------------- one-time parameter preprocessing ---------------------- #

def prepare_params(params, image_size):
    """Hoists ALL weight prep out of the forward path (done once, host-side)."""
    H, W = image_size
    assert H % 8 == 0 and W % 8 == 0
    W1, W2 = W // 2, W // 4
    H3, W3 = H // 8, W // 8

    def f32(a):
        return np.asarray(jax.device_get(a)).astype(np.float32)

    def expand(w, w_in, channel_major):
        # (Cout, Cin, 3, 3) torch conv weight -> 3 per-ky matmul weights whose
        # rows match the kernel's flattened padded activation rows and whose
        # columns are (ox, cout).
        w = f32(w)
        cout, cin = w.shape[0], w.shape[1]
        wp, wo = w_in + 2, w_in // 2
        if channel_major:                      # rows (ci, px)  -- conv1 (NCHW fill)
            m = np.zeros((3, cin, wp, wo, cout), np.float32)
            for ky in range(3):
                for kx in range(3):
                    for ox in range(wo):
                        m[ky, :, 2 * ox + kx, ox, :] = w[:, :, ky, kx].T
            m = m.reshape(3, cin * wp, wo * cout)
        else:                                  # rows (px, ci)  -- conv2 / conv3
            m = np.zeros((3, wp, cin, wo, cout), np.float32)
            for ky in range(3):
                for kx in range(3):
                    for ox in range(wo):
                        m[ky, 2 * ox + kx, :, ox, :] = w[:, :, ky, kx].T
            m = m.reshape(3, wp * cin, wo * cout)
        return jnp.asarray(m, jnp.bfloat16)    # bf16 MXU weights, cast once here

    def conv_bias(b, wo):
        return jnp.asarray(np.tile(f32(b), wo)[None, :], jnp.float32)

    a_dim = params["fcm_w"].shape[0]

    def perm_fc(wt):
        # torch (a_dim, 32*H3*W3) with columns in (c,h,w) order
        #   -> (H3*W3*32, a_dim) with rows in (h,w,c) order (kernel flatten order)
        wt = f32(wt).reshape(a_dim, 32, H3, W3)
        return wt.transpose(2, 3, 1, 0).reshape(H3 * W3 * 32, a_dim)

    wfc = np.concatenate([perm_fc(params["fcm_w"]), perm_fc(params["fcs_w"])], axis=1)
    bfc = np.concatenate([f32(params["fcm_b"]), f32(params["fcs_b"])])[None, :]

    return {
        "w1": expand(params["c1_w"], W, True),
        "b1": conv_bias(params["c1_b"], W // 2),
        "w2": expand(params["c2_w"], W1, False),
        "b2": conv_bias(params["c2_b"], W1 // 2),
        "w3": expand(params["c3_w"], W2, False),
        "b3": conv_bias(params["c3_b"], W2 // 2),
        "wfc": jnp.asarray(wfc, jnp.float32),   # tiny FC heads kept f32
        "bfc": jnp.asarray(bfc, jnp.float32),
    }


# ------------------------------- init & reference ---------------------------- #

def init_params(key, image_size, image_channels, a_dim):
    conv_output_size = image_size
    for _ in range(3):
        conv_output_size = compute_conv2d_output_size(conv_output_size, 3, 2, 1)
    fc_in = 32 * conv_output_size[0] * conv_output_size[1]

    def uni(k, shape, fan_in):
        bound = 1.0 / jnp.sqrt(jnp.float32(fan_in))
        return jax.random.uniform(k, shape, jnp.float32, -bound, bound)

    ks = jax.random.split(key, 10)
    return {
        "c1_w": uni(ks[0], (32, image_channels, 3, 3), image_channels * 9),
        "c1_b": uni(ks[1], (32,), image_channels * 9),
        "c2_w": uni(ks[2], (32, 32, 3, 3), 32 * 9),
        "c2_b": uni(ks[3], (32,), 32 * 9),
        "c3_w": uni(ks[4], (32, 32, 3, 3), 32 * 9),
        "c3_b": uni(ks[5], (32,), 32 * 9),
        "fcm_w": uni(ks[6], (a_dim, fc_in), fc_in),   # torch Linear layout (out, in)
        "fcm_b": uni(ks[7], (a_dim,), fc_in),
        "fcs_w": uni(ks[8], (a_dim, fc_in), fc_in),
        "fcs_b": uni(ks[9], (a_dim,), fc_in),
    }


def encoder_reference(params, x_nchw):
    """Pure-JAX (XLA) f32 reference of the same forward, for the numeric check."""
    def conv(h, w, b):
        y = jax.lax.conv_general_dilated(
            h, w, window_strides=(2, 2), padding=((1, 1), (1, 1)),
            dimension_numbers=("NCHW", "OIHW", "NCHW"),
            precision=jax.lax.Precision.HIGHEST)
        return jax.nn.relu(y + b[None, :, None, None])

    h = conv(x_nchw, params["c1_w"], params["c1_b"])
    h = conv(h, params["c2_w"], params["c2_b"])
    h = conv(h, params["c3_w"], params["c3_b"])
    hf = h.reshape(h.shape[0], -1)                      # torch x.view(B,-1): (c,h,w)
    mean = jnp.dot(hf, params["fcm_w"].T,
                   precision=jax.lax.Precision.HIGHEST) + params["fcm_b"]
    std = jax.nn.softplus(
        jnp.dot(hf, params["fcs_w"].T,
                precision=jax.lax.Precision.HIGHEST) + params["fcs_b"])
    return mean, std


if __name__ == "__main__":
    image_size = (16, 16)
    image_channels = 4
    a_dim = 8
    batch = 2

    key = jax.random.PRNGKey(0)
    k_params, k_x = jax.random.split(key)
    params = init_params(k_params, image_size, image_channels, a_dim)
    prep = prepare_params(params, image_size)           # one-time weight prep
    x = jax.random.normal(k_x, (batch, image_channels) + image_size, jnp.float32)

    fwd = jax.jit(encoder_forward)
    mean, std = jax.block_until_ready(fwd(prep, x))

    assert mean.shape == (batch, a_dim), mean.shape
    assert std.shape == (batch, a_dim), std.shape
    assert bool(jnp.all(jnp.isfinite(mean))) and bool(jnp.all(jnp.isfinite(std)))
    assert bool(jnp.all(std > 0.0))

    # numeric check vs pure-JAX f32 reference (bf16 conv MXU inputs -> loose tol)
    mean_ref, std_ref = encoder_reference(params, x)
    err_m = float(jnp.max(jnp.abs(mean - mean_ref)))
    err_s = float(jnp.max(jnp.abs(std - std_ref)))
    assert err_m < 1e-1, err_m
    assert err_s < 1e-1, err_s

    print("KERNEL_OK")
</pallas_src>

<mosaic_0001>
module attributes {stable_mosaic.version = 11 : i64} {
  func.func @_encoder_kernel(%arg0: i32, %arg1: memref<2x4x16x16xf32, #tpu.memory_space<vmem>>, %arg2: memref<3x72x256xbf16, #tpu.memory_space<vmem>>, %arg3: memref<1x256xf32, #tpu.memory_space<vmem>>, %arg4: memref<3x320x128xbf16, #tpu.memory_space<vmem>>, %arg5: memref<1x128xf32, #tpu.memory_space<vmem>>, %arg6: memref<3x192x64xbf16, #tpu.memory_space<vmem>>, %arg7: memref<1x64xf32, #tpu.memory_space<vmem>>, %arg8: memref<128x16xf32, #tpu.memory_space<vmem>>, %arg9: memref<1x16xf32, #tpu.memory_space<vmem>>, %arg10: memref<2x8xf32, #tpu.memory_space<vmem>>, %arg11: memref<2x8xf32, #tpu.memory_space<vmem>>, %arg12: memref<2x18x72xf32, #tpu.memory_space<vmem>>, %arg13: memref<2x10x320xf32, #tpu.memory_space<vmem>>, %arg14: memref<2x6x192xf32, #tpu.memory_space<vmem>>, %arg15: memref<2x128xf32, #tpu.memory_space<vmem>>) attributes {dimension_semantics = [#tpu.dimension_semantics<parallel>], iteration_bounds = array<i64: 1>, scalar_prefetch = 0 : i64, scratch_operands = 4 : i64, tpu.core_type = #tpu.core_type<tc>, window_params = [{transform_indices = @transform_0, window_bounds = array<i64: 2, 4, 16, 16>}, {pipeline_mode = #tpu.pipeline_mode<synchronous>, transform_indices = @transform_1, window_bounds = array<i64: 3, 72, 256>}, {pipeline_mode = #tpu.pipeline_mode<synchronous>, transform_indices = @transform_2, window_bounds = array<i64: 1, 256>}, {pipeline_mode = #tpu.pipeline_mode<synchronous>, transform_indices = @transform_3, window_bounds = array<i64: 3, 320, 128>}, {pipeline_mode = #tpu.pipeline_mode<synchronous>, transform_indices = @transform_4, window_bounds = array<i64: 1, 128>}, {pipeline_mode = #tpu.pipeline_mode<synchronous>, transform_indices = @transform_5, window_bounds = array<i64: 3, 192, 64>}, {pipeline_mode = #tpu.pipeline_mode<synchronous>, transform_indices = @transform_6, window_bounds = array<i64: 1, 64>}, {pipeline_mode = #tpu.pipeline_mode<synchronous>, transform_indices = @transform_7, window_bounds = array<i64: 128, 16>}, {pipeline_mode = #tpu.pipeline_mode<synchronous>, transform_indices = @transform_8, window_bounds = array<i64: 1, 16>}, {transform_indices = @transform_9, window_bounds = array<i64: 2, 8>}, {transform_indices = @transform_10, window_bounds = array<i64: 2, 8>}]} {
    %cst = arith.constant 0.000000e+00 : f32
    %0 = vector.broadcast %cst : f32 to vector<2x18x72xf32>
    %c0 = arith.constant 0 : index
    %c0_0 = arith.constant 0 : index
    %c0_1 = arith.constant 0 : index
    %1 = vector.load %arg12[%c0, %c0_0, %c0_1] : memref<2x18x72xf32, #tpu.memory_space<vmem>>, vector<2x18x72xf32>
    tpu.vector_store %arg12[%c0, %c0_0, %c0_1], %0 {strides = array<i32>} : memref<2x18x72xf32, #tpu.memory_space<vmem>>, vector<2x18x72xf32>,
    %cst_2 = arith.constant 0.000000e+00 : f32
    %2 = vector.broadcast %cst_2 : f32 to vector<2x10x320xf32>
    %c0_3 = arith.constant 0 : index
    %c0_4 = arith.constant 0 : index
    %c0_5 = arith.constant 0 : index
    %3 = vector.load %arg13[%c0_3, %c0_4, %c0_5] : memref<2x10x320xf32, #tpu.memory_space<vmem>>, vector<2x10x320xf32>
    tpu.vector_store %arg13[%c0_3, %c0_4, %c0_5], %2 {strides = array<i32>} : memref<2x10x320xf32, #tpu.memory_space<vmem>>, vector<2x10x320xf32>,
    %cst_6 = arith.constant 0.000000e+00 : f32
    %4 = vector.broadcast %cst_6 : f32 to vector<2x6x192xf32>
    %c0_7 = arith.constant 0 : index
    %c0_8 = arith.constant 0 : index
    %c0_9 = arith.constant 0 : index
    %5 = vector.load %arg14[%c0_7, %c0_8, %c0_9] : memref<2x6x192xf32, #tpu.memory_space<vmem>>, vector<2x6x192xf32>
    tpu.vector_store %arg14[%c0_7, %c0_8, %c0_9], %4 {strides = array<i32>} : memref<2x6x192xf32, #tpu.memory_space<vmem>>, vector<2x6x192xf32>,
    %c0_10 = arith.constant 0 : index
    %c0_11 = arith.constant 0 : index
    %c0_12 = arith.constant 0 : index
    %c0_13 = arith.constant 0 : index
    %6 = vector.load %arg1[%c0_10, %c0_11, %c0_12, %c0_13] : memref<2x4x16x16xf32, #tpu.memory_space<vmem>>, vector<2x1x16x16xf32>
    %7 = vector.shape_cast %6 : vector<2x1x16x16xf32> to vector<2x16x16xf32>
    %c0_14 = arith.constant 0 : index
    %c1 = arith.constant 1 : index
    %c1_15 = arith.constant 1 : index
    %8 = vector.load %arg12[%c0_14, %c1, %c1_15] : memref<2x18x72xf32, #tpu.memory_space<vmem>>, vector<2x16x16xf32>
    tpu.vector_store %arg12[%c0_14, %c1, %c1_15], %7 {strides = array<i32>} : memref<2x18x72xf32, #tpu.memory_space<vmem>>, vector<2x16x16xf32>,
    %c0_16 = arith.constant 0 : index
    %c1_17 = arith.constant 1 : index
    %c0_18 = arith.constant 0 : index
    %c0_19 = arith.constant 0 : index
    %9 = vector.load %arg1[%c0_16, %c1_17, %c0_18, %c0_19] : memref<2x4x16x16xf32, #tpu.memory_space<vmem>>, vector<2x1x16x16xf32>
    %10 = vector.shape_cast %9 : vector<2x1x16x16xf32> to vector<2x16x16xf32>
    %c0_20 = arith.constant 0 : index
    %c1_21 = arith.constant 1 : index
    %c19 = arith.constant 19 : index
    %11 = vector.load %arg12[%c0_20, %c1_21, %c19] : memref<2x18x72xf32, #tpu.memory_space<vmem>>, vector<2x16x16xf32>
    tpu.vector_store %arg12[%c0_20, %c1_21, %c19], %10 {strides = array<i32>} : memref<2x18x72xf32, #tpu.memory_space<vmem>>, vector<2x16x16xf32>,
    %c0_22 = arith.constant 0 : index
    %c2 = arith.constant 2 : index
    %c0_23 = arith.constant 0 : index
    %c0_24 = arith.constant 0 : index
    %12 = vector.load %arg1[%c0_22, %c2, %c0_23, %c0_24] : memref<2x4x16x16xf32, #tpu.memory_space<vmem>>, vector<2x1x16x16xf32>
    %13 = vector.shape_cast %12 : vector<2x1x16x16xf32> to vector<2x16x16xf32>
    %c0_25 = arith.constant 0 : index
    %c1_26 = arith.constant 1 : index
    %c37 = arith.constant 37 : index
    %14 = vector.load %arg12[%c0_25, %c1_26, %c37] : memref<2x18x72xf32, #tpu.memory_space<vmem>>, vector<2x16x16xf32>
    tpu.vector_store %arg12[%c0_25, %c1_26, %c37], %13 {strides = array<i32>} : memref<2x18x72xf32, #tpu.memory_space<vmem>>, vector<2x16x16xf32>,
    %c0_27 = arith.constant 0 : index
    %c3 = arith.constant 3 : index
    %c0_28 = arith.constant 0 : index
    %c0_29 = arith.constant 0 : index
    %15 = vector.load %arg1[%c0_27, %c3, %c0_28, %c0_29] : memref<2x4x16x16xf32, #tpu.memory_space<vmem>>, vector<2x1x16x16xf32>
    %16 = vector.shape_cast %15 : vector<2x1x16x16xf32> to vector<2x16x16xf32>
    %c0_30 = arith.constant 0 : index
    %c1_31 = arith.constant 1 : index
    %c55 = arith.constant 55 : index
    %17 = vector.load %arg12[%c0_30, %c1_31, %c55] : memref<2x18x72xf32, #tpu.memory_space<vmem>>, vector<2x16x16xf32>
    tpu.vector_store %arg12[%c0_30, %c1_31, %c55], %16 {strides = array<i32>} : memref<2x18x72xf32, #tpu.memory_space<vmem>>, vector<2x16x16xf32>,
    %c0_32 = arith.constant 0 : index
    %c0_33 = arith.constant 0 : index
    %18 = vector.load %arg3[%c0_32, %c0_33] : memref<1x256xf32, #tpu.memory_space<vmem>>, vector<1x256xf32>
    %c0_34 = arith.constant 0 : index
    %c0_35 = arith.constant 0 : index
    %c0_36 = arith.constant 0 : index
    %19 = vector.load %arg12[%c0_34, %c0_35, %c0_36] : memref<2x18x72xf32, #tpu.memory_space<vmem>>, vector<2x1x72xf32>
    %20 = vector.shape_cast %19 : vector<2x1x72xf32> to vector<2x72xf32>
    %21 = arith.truncf %20 : vector<2x72xf32> to vector<2x72xbf16>
    %c0_37 = arith.constant 0 : index
    %c0_38 = arith.constant 0 : index
    %c0_39 = arith.constant 0 : index
    %22 = vector.load %arg2[%c0_37, %c0_38, %c0_39] : memref<3x72x256xbf16, #tpu.memory_space<vmem>>, vector<1x72x256xbf16>
    %23 = vector.shape_cast %22 : vector<1x72x256xbf16> to vector<72x256xbf16>
    %cst_40 = arith.constant dense<0.000000e+00> : vector<2x256xf32>
    %24 = tpu.matmul %21, %23, %cst_40 {dimension_numbers = #tpu.dot_dimension_numbers<[1], [0], [0], [1], [0, 0, 1, 1], [], []>} : vector<2x72xbf16>, vector<72x256xbf16>, vector<2x256xf32> -> vector<2x256xf32>
    %25 = vector.broadcast %18 : vector<1x256xf32> to vector<2x256xf32>
    %26 = arith.addf %25, %24 : vector<2x256xf32>
    %c0_41 = arith.constant 0 : index
    %c1_42 = arith.constant 1 : index
    %c0_43 = arith.constant 0 : index
    %27 = vector.load %arg12[%c0_41, %c1_42, %c0_43] : memref<2x18x72xf32, #tpu.memory_space<vmem>>, vector<2x1x72xf32>
    %28 = vector.shape_cast %27 : vector<2x1x72xf32> to vector<2x72xf32>
    %29 = arith.truncf %28 : vector<2x72xf32> to vector<2x72xbf16>
    %c1_44 = arith.constant 1 : index
    %c0_45 = arith.constant 0 : index
    %c0_46 = arith.constant 0 : index
    %30 = vector.load %arg2[%c1_44, %c0_45, %c0_46] : memref<3x72x256xbf16, #tpu.memory_space<vmem>>, vector<1x72x256xbf16>
    %31 = vector.shape_cast %30 : vector<1x72x256xbf16> to vector<72x256xbf16>
    %cst_47 = arith.constant dense<0.000000e+00> : vector<2x256xf32>
    %32 = tpu.matmul %29, %31, %cst_47 {dimension_numbers = #tpu.dot_dimension_numbers<[1], [0], [0], [1], [0, 0, 1, 1], [], []>} : vector<2x72xbf16>, vector<72x256xbf16>, vector<2x256xf32> -> vector<2x256xf32>
    %33 = arith.addf %26, %32 : vector<2x256xf32>
    %c0_48 = arith.constant 0 : index
    %c2_49 = arith.constant 2 : index
    %c0_50 = arith.constant 0 : index
    %34 = vector.load %arg12[%c0_48, %c2_49, %c0_50] : memref<2x18x72xf32, #tpu.memory_space<vmem>>, vector<2x1x72xf32>
    %35 = vector.shape_cast %34 : vector<2x1x72xf32> to vector<2x72xf32>
    %36 = arith.truncf %35 : vector<2x72xf32> to vector<2x72xbf16>
    %c2_51 = arith.constant 2 : index
    %c0_52 = arith.constant 0 : index
    %c0_53 = arith.constant 0 : index
    %37 = vector.load %arg2[%c2_51, %c0_52, %c0_53] : memref<3x72x256xbf16, #tpu.memory_space<vmem>>, vector<1x72x256xbf16>
    %38 = vector.shape_cast %37 : vector<1x72x256xbf16> to vector<72x256xbf16>
    %cst_54 = arith.constant dense<0.000000e+00> : vector<2x256xf32>
    %39 = tpu.matmul %36, %38, %cst_54 {dimension_numbers = #tpu.dot_dimension_numbers<[1], [0], [0], [1], [0, 0, 1, 1], [], []>} : vector<2x72xbf16>, vector<72x256xbf16>, vector<2x256xf32> -> vector<2x256xf32>
    %40 = arith.addf %33, %39 : vector<2x256xf32>
    %cst_55 = arith.constant 0.000000e+00 : f32
    %41 = vector.broadcast %cst_55 : f32 to vector<2x256xf32>
    %42 = arith.maximumf %40, %41 : vector<2x256xf32>
    %c0_56 = arith.constant 0 : index
    %c1_57 = arith.constant 1 : index
    %c32 = arith.constant 32 : index
    %43 = vector.load %arg13[%c0_56, %c1_57, %c32] : memref<2x10x320xf32, #tpu.memory_space<vmem>>, vector<2x1x256xf32>
    %44 = vector.shape_cast %43 : vector<2x1x256xf32> to vector<2x256xf32>
    %45 = vector.shape_cast %42 : vector<2x256xf32> to vector<2x1x256xf32>
    tpu.vector_store %arg13[%c0_56, %c1_57, %c32], %45 {strides = array<i32>} : memref<2x10x320xf32, #tpu.memory_space<vmem>>, vector<2x1x256xf32>,
    %c0_58 = arith.constant 0 : index
    %c2_59 = arith.constant 2 : index
    %c0_60 = arith.constant 0 : index
    %46 = vector.load %arg12[%c0_58, %c2_59, %c0_60] : memref<2x18x72xf32, #tpu.memory_space<vmem>>, vector<2x1x72xf32>
    %47 = vector.shape_cast %46 : vector<2x1x72xf32> to vector<2x72xf32>
    %48 = arith.truncf %47 : vector<2x72xf32> to vector<2x72xbf16>
    %c0_61 = arith.constant 0 : index
    %c0_62 = arith.constant 0 : index
    %c0_63 = arith.constant 0 : index
    %49 = vector.load %arg2[%c0_61, %c0_62, %c0_63] : memref<3x72x256xbf16, #tpu.memory_space<vmem>>, vector<1x72x256xbf16>
    %50 = vector.shape_cast %49 : vector<1x72x256xbf16> to vector<72x256xbf16>
    %cst_64 = arith.constant dense<0.000000e+00> : vector<2x256xf32>
    %51 = tpu.matmul %48, %50, %cst_64 {dimension_numbers = #tpu.dot_dimension_numbers<[1], [0], [0], [1], [0, 0, 1, 1], [], []>} : vector<2x72xbf16>, vector<72x256xbf16>, vector<2x256xf32> -> vector<2x256xf32>
    %52 = vector.broadcast %18 : vector<1x256xf32> to vector<2x256xf32>
    %53 = arith.addf %52, %51 : vector<2x256xf32>
    %c0_65 = arith.constant 0 : index
    %c3_66 = arith.constant 3 : index
    %c0_67 = arith.constant 0 : index
    %54 = vector.load %arg12[%c0_65, %c3_66, %c0_67] : memref<2x18x72xf32, #tpu.memory_space<vmem>>, vector<2x1x72xf32>
    %55 = vector.shape_cast %54 : vector<2x1x72xf32> to vector<2x72xf32>
    %56 = arith.truncf %55 : vector<2x72xf32> to vector<2x72xbf16>
    %c1_68 = arith.constant 1 : index
    %c0_69 = arith.constant 0 : index
    %c0_70 = arith.constant 0 : index
    %57 = vector.load %arg2[%c1_68, %c0_69, %c0_70] : memref<3x72x256xbf16, #tpu.memory_space<vmem>>, vector<1x72x256xbf16>
    %58 = vector.shape_cast %57 : vector<1x72x256xbf16> to vector<72x256xbf16>
    %cst_71 = arith.constant dense<0.000000e+00> : vector<2x256xf32>
    %59 = tpu.matmul %56, %58, %cst_71 {dimension_numbers = #tpu.dot_dimension_numbers<[1], [0], [0], [1], [0, 0, 1, 1], [], []>} : vector<2x72xbf16>, vector<72x256xbf16>, vector<2x256xf32> -> vector<2x256xf32>
    %60 = arith.addf %53, %59 : vector<2x256xf32>
    %c0_72 = arith.constant 0 : index
    %c4 = arith.constant 4 : index
    %c0_73 = arith.constant 0 : index
    %61 = vector.load %arg12[%c0_72, %c4, %c0_73] : memref<2x18x72xf32, #tpu.memory_space<vmem>>, vector<2x1x72xf32>
    %62 = vector.shape_cast %61 : vector<2x1x72xf32> to vector<2x72xf32>
    %63 = arith.truncf %62 : vector<2x72xf32> to vector<2x72xbf16>
    %c2_74 = arith.constant 2 : index
    %c0_75 = arith.constant 0 : index
    %c0_76 = arith.constant 0 : index
    %64 = vector.load %arg2[%c2_74, %c0_75, %c0_76] : memref<3x72x256xbf16, #tpu.memory_space<vmem>>, vector<1x72x256xbf16>
    %65 = vector.shape_cast %64 : vector<1x72x256xbf16> to vector<72x256xbf16>
    %cst_77 = arith.constant dense<0.000000e+00> : vector<2x256xf32>
    %66 = tpu.matmul %63, %65, %cst_77 {dimension_numbers = #tpu.dot_dimension_numbers<[1], [0], [0], [1], [0, 0, 1, 1], [], []>} : vector<2x72xbf16>, vector<72x256xbf16>, vector<2x256xf32> -> vector<2x256xf32>
    %67 = arith.addf %60, %66 : vector<2x256xf32>
    %cst_78 = arith.constant 0.000000e+00 : f32
    %68 = vector.broadcast %cst_78 : f32 to vector<2x256xf32>
    %69 = arith.maximumf %67, %68 : vector<2x256xf32>
    %c0_79 = arith.constant 0 : index
    %c2_80 = arith.constant 2 : index
    %c32_81 = arith.constant 32 : index
    %70 = vector.load %arg13[%c0_79, %c2_80, %c32_81] : memref<2x10x320xf32, #tpu.memory_space<vmem>>, vector<2x1x256xf32>
    %71 = vector.shape_cast %70 : vector<2x1x256xf32> to vector<2x256xf32>
    %72 = vector.shape_cast %69 : vector<2x256xf32> to vector<2x1x256xf32>
    tpu.vector_store %arg13[%c0_79, %c2_80, %c32_81], %72 {strides = array<i32>} : memref<2x10x320xf32, #tpu.memory_space<vmem>>, vector<2x1x256xf32>,
    %c0_82 = arith.constant 0 : index
    %c4_83 = arith.constant 4 : index
    %c0_84 = arith.constant 0 : index
    %73 = vector.load %arg12[%c0_82, %c4_83, %c0_84] : memref<2x18x72xf32, #tpu.memory_space<vmem>>, vector<2x1x72xf32>
    %74 = vector.shape_cast %73 : vector<2x1x72xf32> to vector<2x72xf32>
    %75 = arith.truncf %74 : vector<2x72xf32> to vector<2x72xbf16>
    %c0_85 = arith.constant 0 : index
    %c0_86 = arith.constant 0 : index
    %c0_87 = arith.constant 0 : index
    %76 = vector.load %arg2[%c0_85, %c0_86, %c0_87] : memref<3x72x256xbf16, #tpu.memory_space<vmem>>, vector<1x72x256xbf16>
    %77 = vector.shape_cast %76 : vector<1x72x256xbf16> to vector<72x256xbf16>
    %cst_88 = arith.constant dense<0.000000e+00> : vector<2x256xf32>
    %78 = tpu.matmul %75, %77, %cst_88 {dimension_numbers = #tpu.dot_dimension_numbers<[1], [0], [0], [1], [0, 0, 1, 1], [], []>} : vector<2x72xbf16>, vector<72x256xbf16>, vector<2x256xf32> -> vector<2x256xf32>
    %79 = vector.broadcast %18 : vector<1x256xf32> to vector<2x256xf32>
    %80 = arith.addf %79, %78 : vector<2x256xf32>
    %c0_89 = arith.constant 0 : index
    %c5 = arith.constant 5 : index
    %c0_90 = arith.constant 0 : index
    %81 = vector.load %arg12[%c0_89, %c5, %c0_90] : memref<2x18x72xf32, #tpu.memory_space<vmem>>, vector<2x1x72xf32>
    %82 = vector.shape_cast %81 : vector<2x1x72xf32> to vector<2x72xf32>
    %83 = arith.truncf %82 : vector<2x72xf32> to vector<2x72xbf16>
    %c1_91 = arith.constant 1 : index
    %c0_92 = arith.constant 0 : index
    %c0_93 = arith.constant 0 : index
    %84 = vector.load %arg2[%c1_91, %c0_92, %c0_93] : memref<3x72x256xbf16, #tpu.memory_space<vmem>>, vector<1x72x256xbf16>
    %85 = vector.shape_cast %84 : vector<1x72x256xbf16> to vector<72x256xbf16>
    %cst_94 = arith.constant dense<0.000000e+00> : vector<2x256xf32>
    %86 = tpu.matmul %83, %85, %cst_94 {dimension_numbers = #tpu.dot_dimension_numbers<[1], [0], [0], [1], [0, 0, 1, 1], [], []>} : vector<2x72xbf16>, vector<72x256xbf16>, vector<2x256xf32> -> vector<2x256xf32>
    %87 = arith.addf %80, %86 : vector<2x256xf32>
    %c0_95 = arith.constant 0 : index
    %c6 = arith.constant 6 : index
    %c0_96 = arith.constant 0 : index
    %88 = vector.load %arg12[%c0_95, %c6, %c0_96] : memref<2x18x72xf32, #tpu.memory_space<vmem>>, vector<2x1x72xf32>
    %89 = vector.shape_cast %88 : vector<2x1x72xf32> to vector<2x72xf32>
    %90 = arith.truncf %89 : vector<2x72xf32> to vector<2x72xbf16>
    %c2_97 = arith.constant 2 : index
    %c0_98 = arith.constant 0 : index
    %c0_99 = arith.constant 0 : index
    %91 = vector.load %arg2[%c2_97, %c0_98, %c0_99] : memref<3x72x256xbf16, #tpu.memory_space<vmem>>, vector<1x72x256xbf16>
    %92 = vector.shape_cast %91 : vector<1x72x256xbf16> to vector<72x256xbf16>
    %cst_100 = arith.constant dense<0.000000e+00> : vector<2x256xf32>
    %93 = tpu.matmul %90, %92, %cst_100 {dimension_numbers = #tpu.dot_dimension_numbers<[1], [0], [0], [1], [0, 0, 1, 1], [], []>} : vector<2x72xbf16>, vector<72x256xbf16>, vector<2x256xf32> -> vector<2x256xf32>
    %94 = arith.addf %87, %93 : vector<2x256xf32>
    %cst_101 = arith.constant 0.000000e+00 : f32
    %95 = vector.broadcast %cst_101 : f32 to vector<2x256xf32>
    %96 = arith.maximumf %94, %95 : vector<2x256xf32>
    %c0_102 = arith.constant 0 : index
    %c3_103 = arith.constant 3 : index
    %c32_104 = arith.constant 32 : index
    %97 = vector.load %arg13[%c0_102, %c3_103, %c32_104] : memref<2x10x320xf32, #tpu.memory_space<vmem>>, vector<2x1x256xf32>
    %98 = vector.shape_cast %97 : vector<2x1x256xf32> to vector<2x256xf32>
    %99 = vector.shape_cast %96 : vector<2x256xf32> to vector<2x1x256xf32>
    tpu.vector_store %arg13[%c0_102, %c3_103, %c32_104], %99 {strides = array<i32>} : memref<2x10x320xf32, #tpu.memory_space<vmem>>, vector<2x1x256xf32>,
    %c0_105 = arith.constant 0 : index
    %c6_106 = arith.constant 6 : index
    %c0_107 = arith.constant 0 : index
    %100 = vector.load %arg12[%c0_105, %c6_106, %c0_107] : memref<2x18x72xf32, #tpu.memory_space<vmem>>, vector<2x1x72xf32>
    %101 = vector.shape_cast %100 : vector<2x1x72xf32> to vector<2x72xf32>
    %102 = arith.truncf %101 : vector<2x72xf32> to vector<2x72xbf16>
    %c0_108 = arith.constant 0 : index
    %c0_109 = arith.constant 0 : index
    %c0_110 = arith.constant 0 : index
    %103 = vector.load %arg2[%c0_108, %c0_109, %c0_110] : memref<3x72x256xbf16, #tpu.memory_space<vmem>>, vector<1x72x256xbf16>
    %104 = vector.shape_cast %103 : vector<1x72x256xbf16> to vector<72x256xbf16>
    %cst_111 = arith.constant dense<0.000000e+00> : vector<2x256xf32>
    %105 = tpu.matmul %102, %104, %cst_111 {dimension_numbers = #tpu.dot_dimension_numbers<[1], [0], [0], [1], [0, 0, 1, 1], [], []>} : vector<2x72xbf16>, vector<72x256xbf16>, vector<2x256xf32> -> vector<2x256xf32>
    %106 = vector.broadcast %18 : vector<1x256xf32> to vector<2x256xf32>
    %107 = arith.addf %106, %105 : vector<2x256xf32>
    %c0_112 = arith.constant 0 : index
    %c7 = arith.constant 7 : index
    %c0_113 = arith.constant 0 : index
    %108 = vector.load %arg12[%c0_112, %c7, %c0_113] : memref<2x18x72xf32, #tpu.memory_space<vmem>>, vector<2x1x72xf32>
    %109 = vector.shape_cast %108 : vector<2x1x72xf32> to vector<2x72xf32>
    %110 = arith.truncf %109 : vector<2x72xf32> to vector<2x72xbf16>
    %c1_114 = arith.constant 1 : index
    %c0_115 = arith.constant 0 : index
    %c0_116 = arith.constant 0 : index
    %111 = vector.load %arg2[%c1_114, %c0_115, %c0_116] : memref<3x72x256xbf16, #tpu.memory_space<vmem>>, vector<1x72x256xbf16>
    %112 = vector.shape_cast %111 : vector<1x72x256xbf16> to vector<72x256xbf16>
    %cst_117 = arith.constant dense<0.000000e+00> : vector<2x256xf32>
    %113 = tpu.matmul %110, %112, %cst_117 {dimension_numbers = #tpu.dot_dimension_numbers<[1], [0], [0], [1], [0, 0, 1, 1], [], []>} : vector<2x72xbf16>, vector<72x256xbf16>, vector<2x256xf32> -> vector<2x256xf32>
    %114 = arith.addf %107, %113 : vector<2x256xf32>
    %c0_118 = arith.constant 0 : index
    %c8 = arith.constant 8 : index
    %c0_119 = arith.constant 0 : index
    %115 = vector.load %arg12[%c0_118, %c8, %c0_119] : memref<2x18x72xf32, #tpu.memory_space<vmem>>, vector<2x1x72xf32>
    %116 = vector.shape_cast %115 : vector<2x1x72xf32> to vector<2x72xf32>
    %117 = arith.truncf %116 : vector<2x72xf32> to vector<2x72xbf16>
    %c2_120 = arith.constant 2 : index
    %c0_121 = arith.constant 0 : index
    %c0_122 = arith.constant 0 : index
    %118 = vector.load %arg2[%c2_120, %c0_121, %c0_122] : memref<3x72x256xbf16, #tpu.memory_space<vmem>>, vector<1x72x256xbf16>
    %119 = vector.shape_cast %118 : vector<1x72x256xbf16> to vector<72x256xbf16>
    %cst_123 = arith.constant dense<0.000000e+00> : vector<2x256xf32>
    %120 = tpu.matmul %117, %119, %cst_123 {dimension_numbers = #tpu.dot_dimension_numbers<[1], [0], [0], [1], [0, 0, 1, 1], [], []>} : vector<2x72xbf16>, vector<72x256xbf16>, vector<2x256xf32> -> vector<2x256xf32>
    %121 = arith.addf %114, %120 : vector<2x256xf32>
    %cst_124 = arith.constant 0.000000e+00 : f32
    %122 = vector.broadcast %cst_124 : f32 to vector<2x256xf32>
    %123 = arith.maximumf %121, %122 : vector<2x256xf32>
    %c0_125 = arith.constant 0 : index
    %c4_126 = arith.constant 4 : index
    %c32_127 = arith.constant 32 : index
    %124 = vector.load %arg13[%c0_125, %c4_126, %c32_127] : memref<2x10x320xf32, #tpu.memory_space<vmem>>, vector<2x1x256xf32>
    %125 = vector.shape_cast %124 : vector<2x1x256xf32> to vector<2x256xf32>
    %126 = vector.shape_cast %123 : vector<2x256xf32> to vector<2x1x256xf32>
    tpu.vector_store %arg13[%c0_125, %c4_126, %c32_127], %126 {strides = array<i32>} : memref<2x10x320xf32, #tpu.memory_space<vmem>>, vector<2x1x256xf32>,
    %c0_128 = arith.constant 0 : index
    %c8_129 = arith.constant 8 : index
    %c0_130 = arith.constant 0 : index
    %127 = vector.load %arg12[%c0_128, %c8_129, %c0_130] : memref<2x18x72xf32, #tpu.memory_space<vmem>>, vector<2x1x72xf32>
    %128 = vector.shape_cast %127 : vector<2x1x72xf32> to vector<2x72xf32>
    %129 = arith.truncf %128 : vector<2x72xf32> to vector<2x72xbf16>
    %c0_131 = arith.constant 0 : index
    %c0_132 = arith.constant 0 : index
    %c0_133 = arith.constant 0 : index
    %130 = vector.load %arg2[%c0_131, %c0_132, %c0_133] : memref<3x72x256xbf16, #tpu.memory_space<vmem>>, vector<1x72x256xbf16>
    %131 = vector.shape_cast %130 : vector<1x72x256xbf16> to vector<72x256xbf16>
    %cst_134 = arith.constant dense<0.000000e+00> : vector<2x256xf32>
    %132 = tpu.matmul %129, %131, %cst_134 {dimension_numbers = #tpu.dot_dimension_numbers<[1], [0], [0], [1], [0, 0, 1, 1], [], []>} : vector<2x72xbf16>, vector<72x256xbf16>, vector<2x256xf32> -> vector<2x256xf32>
    %133 = vector.broadcast %18 : vector<1x256xf32> to vector<2x256xf32>
    %134 = arith.addf %133, %132 : vector<2x256xf32>
    %c0_135 = arith.constant 0 : index
    %c9 = arith.constant 9 : index
    %c0_136 = arith.constant 0 : index
    %135 = vector.load %arg12[%c0_135, %c9, %c0_136] : memref<2x18x72xf32, #tpu.memory_space<vmem>>, vector<2x1x72xf32>
    %136 = vector.shape_cast %135 : vector<2x1x72xf32> to vector<2x72xf32>
    %137 = arith.truncf %136 : vector<2x72xf32> to vector<2x72xbf16>
    %c1_137 = arith.constant 1 : index
    %c0_138 = arith.constant 0 : index
    %c0_139 = arith.constant 0 : index
    %138 = vector.load %arg2[%c1_137, %c0_138, %c0_139] : memref<3x72x256xbf16, #tpu.memory_space<vmem>>, vector<1x72x256xbf16>
    %139 = vector.shape_cast %138 : vector<1x72x256xbf16> to vector<72x256xbf16>
    %cst_140 = arith.constant dense<0.000000e+00> : vector<2x256xf32>
    %140 = tpu.matmul %137, %139, %cst_140 {dimension_numbers = #tpu.dot_dimension_numbers<[1], [0], [0], [1], [0, 0, 1, 1], [], []>} : vector<2x72xbf16>, vector<72x256xbf16>, vector<2x256xf32> -> vector<2x256xf32>
    %141 = arith.addf %134, %140 : vector<2x256xf32>
    %c0_141 = arith.constant 0 : index
    %c10 = arith.constant 10 : index
    %c0_142 = arith.constant 0 : index
    %142 = vector.load %arg12[%c0_141, %c10, %c0_142] : memref<2x18x72xf32, #tpu.memory_space<vmem>>, vector<2x1x72xf32>
    %143 = vector.shape_cast %142 : vector<2x1x72xf32> to vector<2x72xf32>
    %144 = arith.truncf %143 : vector<2x72xf32> to vector<2x72xbf16>
    %c2_143 = arith.constant 2 : index
    %c0_144 = arith.constant 0 : index
    %c0_145 = arith.constant 0 : index
    %145 = vector.load %arg2[%c2_143, %c0_144, %c0_145] : memref<3x72x256xbf16, #tpu.memory_space<vmem>>, vector<1x72x256xbf16>
    %146 = vector.shape_cast %145 : vector<1x72x256xbf16> to vector<72x256xbf16>
    %cst_146 = arith.constant dense<0.000000e+00> : vector<2x256xf32>
    %147 = tpu.matmul %144, %146, %cst_146 {dimension_numbers = #tpu.dot_dimension_numbers<[1], [0], [0], [1], [0, 0, 1, 1], [], []>} : vector<2x72xbf16>, vector<72x256xbf16>, vector<2x256xf32> -> vector<2x256xf32>
    %148 = arith.addf %141, %147 : vector<2x256xf32>
    %cst_147 = arith.constant 0.000000e+00 : f32
    %149 = vector.broadcast %cst_147 : f32 to vector<2x256xf32>
    %150 = arith.maximumf %148, %149 : vector<2x256xf32>
    %c0_148 = arith.constant 0 : index
    %c5_149 = arith.constant 5 : index
    %c32_150 = arith.constant 32 : index
    %151 = vector.load %arg13[%c0_148, %c5_149, %c32_150] : memref<2x10x320xf32, #tpu.memory_space<vmem>>, vector<2x1x256xf32>
    %152 = vector.shape_cast %151 : vector<2x1x256xf32> to vector<2x256xf32>
    %153 = vector.shape_cast %150 : vector<2x256xf32> to vector<2x1x256xf32>
    tpu.vector_store %arg13[%c0_148, %c5_149, %c32_150], %153 {strides = array<i32>} : memref<2x10x320xf32, #tpu.memory_space<vmem>>, vector<2x1x256xf32>,
    %c0_151 = arith.constant 0 : index
    %c10_152 = arith.constant 10 : index
    %c0_153 = arith.constant 0 : index
    %154 = vector.load %arg12[%c0_151, %c10_152, %c0_153] : memref<2x18x72xf32, #tpu.memory_space<vmem>>, vector<2x1x72xf32>
    %155 = vector.shape_cast %154 : vector<2x1x72xf32> to vector<2x72xf32>
    %156 = arith.truncf %155 : vector<2x72xf32> to vector<2x72xbf16>
    %c0_154 = arith.constant 0 : index
    %c0_155 = arith.constant 0 : index
    %c0_156 = arith.constant 0 : index
    %157 = vector.load %arg2[%c0_154, %c0_155, %c0_156] : memref<3x72x256xbf16, #tpu.memory_space<vmem>>, vector<1x72x256xbf16>
    %158 = vector.shape_cast %157 : vector<1x72x256xbf16> to vector<72x256xbf16>
    %cst_157 = arith.constant dense<0.000000e+00> : vector<2x256xf32>
    %159 = tpu.matmul %156, %158, %cst_157 {dimension_numbers = #tpu.dot_dimension_numbers<[1], [0], [0], [1], [0, 0, 1, 1], [], []>} : vector<2x72xbf16>, vector<72x256xbf16>, vector<2x256xf32> -> vector<2x256xf32>
    %160 = vector.broadcast %18 : vector<1x256xf32> to vector<2x256xf32>
    %161 = arith.addf %160, %159 : vector<2x256xf32>
    %c0_158 = arith.constant 0 : index
    %c11 = arith.constant 11 : index
    %c0_159 = arith.constant 0 : index
    %162 = vector.load %arg12[%c0_158, %c11, %c0_159] : memref<2x18x72xf32, #tpu.memory_space<vmem>>, vector<2x1x72xf32>
    %163 = vector.shape_cast %162 : vector<2x1x72xf32> to vector<2x72xf32>
    %164 = arith.truncf %163 : vector<2x72xf32> to vector<2x72xbf16>
    %c1_160 = arith.constant 1 : index
    %c0_161 = arith.constant 0 : index
    %c0_162 = arith.constant 0 : index
    %165 = vector.load %arg2[%c1_160, %c0_161, %c0_162] : memref<3x72x256xbf16, #tpu.memory_space<vmem>>, vector<1x72x256xbf16>
    %166 = vector.shape_cast %165 : vector<1x72x256xbf16> to vector<72x256xbf16>
    %cst_163 = arith.constant dense<0.000000e+00> : vector<2x256xf32>
    %167 = tpu.matmul %164, %166, %cst_163 {dimension_numbers = #tpu.dot_dimension_numbers<[1], [0], [0], [1], [0, 0, 1, 1], [], []>} : vector<2x72xbf16>, vector<72x256xbf16>, vector<2x256xf32> -> vector<2x256xf32>
    %168 = arith.addf %161, %167 : vector<2x256xf32>
    %c0_164 = arith.constant 0 : index
    %c12 = arith.constant 12 : index
    %c0_165 = arith.constant 0 : index
    %169 = vector.load %arg12[%c0_164, %c12, %c0_165] : memref<2x18x72xf32, #tpu.memory_space<vmem>>, vector<2x1x72xf32>
    %170 = vector.shape_cast %169 : vector<2x1x72xf32> to vector<2x72xf32>
    %171 = arith.truncf %170 : vector<2x72xf32> to vector<2x72xbf16>
    %c2_166 = arith.constant 2 : index
    %c0_167 = arith.constant 0 : index
    %c0_168 = arith.constant 0 : index
    %172 = vector.load %arg2[%c2_166, %c0_167, %c0_168] : memref<3x72x256xbf16, #tpu.memory_space<vmem>>, vector<1x72x256xbf16>
    %173 = vector.shape_cast %172 : vector<1x72x256xbf16> to vector<72x256xbf16>
    %cst_169 = arith.constant dense<0.000000e+00> : vector<2x256xf32>
    %174 = tpu.matmul %171, %173, %cst_169 {dimension_numbers = #tpu.dot_dimension_numbers<[1], [0], [0], [1], [0, 0, 1, 1], [], []>} : vector<2x72xbf16>, vector<72x256xbf16>, vector<2x256xf32> -> vector<2x256xf32>
    %175 = arith.addf %168, %174 : vector<2x256xf32>
    %cst_170 = arith.constant 0.000000e+00 : f32
    %176 = vector.broadcast %cst_170 : f32 to vector<2x256xf32>
    %177 = arith.maximumf %175, %176 : vector<2x256xf32>
    %c0_171 = arith.constant 0 : index
    %c6_172 = arith.constant 6 : index
    %c32_173 = arith.constant 32 : index
    %178 = vector.load %arg13[%c0_171, %c6_172, %c32_173] : memref<2x10x320xf32, #tpu.memory_space<vmem>>, vector<2x1x256xf32>
    %179 = vector.shape_cast %178 : vector<2x1x256xf32> to vector<2x256xf32>
    %180 = vector.shape_cast %177 : vector<2x256xf32> to vector<2x1x256xf32>
    tpu.vector_store %arg13[%c0_171, %c6_172, %c32_173], %180 {strides = array<i32>} : memref<2x10x320xf32, #tpu.memory_space<vmem>>, vector<2x1x256xf32>,
    %c0_174 = arith.constant 0 : index
    %c12_175 = arith.constant 12 : index
    %c0_176 = arith.constant 0 : index
    %181 = vector.load %arg12[%c0_174, %c12_175, %c0_176] : memref<2x18x72xf32, #tpu.memory_space<vmem>>, vector<2x1x72xf32>
    %182 = vector.shape_cast %181 : vector<2x1x72xf32> to vector<2x72xf32>
    %183 = arith.truncf %182 : vector<2x72xf32> to vector<2x72xbf16>
    %c0_177 = arith.constant 0 : index
    %c0_178 = arith.constant 0 : index
    %c0_179 = arith.constant 0 : index
    %184 = vector.load %arg2[%c0_177, %c0_178, %c0_179] : memref<3x72x256xbf16, #tpu.memory_space<vmem>>, vector<1x72x256xbf16>
    %185 = vector.shape_cast %184 : vector<1x72x256xbf16> to vector<72x256xbf16>
    %cst_180 = arith.constant dense<0.000000e+00> : vector<2x256xf32>
    %186 = tpu.matmul %183, %185, %cst_180 {dimension_numbers = #tpu.dot_dimension_numbers<[1], [0], [0], [1], [0, 0, 1, 1], [], []>} : vector<2x72xbf16>, vector<72x256xbf16>, vector<2x256xf32> -> vector<2x256xf32>
    %187 = vector.broadcast %18 : vector<1x256xf32> to vector<2x256xf32>
    %188 = arith.addf %187, %186 : vector<2x256xf32>
    %c0_181 = arith.constant 0 : index
    %c13 = arith.constant 13 : index
    %c0_182 = arith.constant 0 : index
    %189 = vector.load %arg12[%c0_181, %c13, %c0_182] : memref<2x18x72xf32, #tpu.memory_space<vmem>>, vector<2x1x72xf32>
    %190 = vector.shape_cast %189 : vector<2x1x72xf32> to vector<2x72xf32>
    %191 = arith.truncf %190 : vector<2x72xf32> to vector<2x72xbf16>
    %c1_183 = arith.constant 1 : index
    %c0_184 = arith.constant 0 : index
    %c0_185 = arith.constant 0 : index
    %192 = vector.load %arg2[%c1_183, %c0_184, %c0_185] : memref<3x72x256xbf16, #tpu.memory_space<vmem>>, vector<1x72x256xbf16>
    %193 = vector.shape_cast %192 : vector<1x72x256xbf16> to vector<72x256xbf16>
    %cst_186 = arith.constant dense<0.000000e+00> : vector<2x256xf32>
    %194 = tpu.matmul %191, %193, %cst_186 {dimension_numbers = #tpu.dot_dimension_numbers<[1], [0], [0], [1], [0, 0, 1, 1], [], []>} : vector<2x72xbf16>, vector<72x256xbf16>, vector<2x256xf32> -> vector<2x256xf32>
    %195 = arith.addf %188, %194 : vector<2x256xf32>
    %c0_187 = arith.constant 0 : index
    %c14 = arith.constant 14 : index
    %c0_188 = arith.constant 0 : index
    %196 = vector.load %arg12[%c0_187, %c14, %c0_188] : memref<2x18x72xf32, #tpu.memory_space<vmem>>, vector<2x1x72xf32>
    %197 = vector.shape_cast %196 : vector<2x1x72xf32> to vector<2x72xf32>
    %198 = arith.truncf %197 : vector<2x72xf32> to vector<2x72xbf16>
    %c2_189 = arith.constant 2 : index
    %c0_190 = arith.constant 0 : index
    %c0_191 = arith.constant 0 : index
    %199 = vector.load %arg2[%c2_189, %c0_190, %c0_191] : memref<3x72x256xbf16, #tpu.memory_space<vmem>>, vector<1x72x256xbf16>
    %200 = vector.shape_cast %199 : vector<1x72x256xbf16> to vector<72x256xbf16>
    %cst_192 = arith.constant dense<0.000000e+00> : vector<2x256xf32>
    %201 = tpu.matmul %198, %200, %cst_192 {dimension_numbers = #tpu.dot_dimension_numbers<[1], [0], [0], [1], [0, 0, 1, 1], [], []>} : vector<2x72xbf16>, vector<72x256xbf16>, vector<2x256xf32> -> vector<2x256xf32>
    %202 = arith.addf %195, %201 : vector<2x256xf32>
    %cst_193 = arith.constant 0.000000e+00 : f32
    %203 = vector.broadcast %cst_193 : f32 to vector<2x256xf32>
    %204 = arith.maximumf %202, %203 : vector<2x256xf32>
    %c0_194 = arith.constant 0 : index
    %c7_195 = arith.constant 7 : index
    %c32_196 = arith.constant 32 : index
    %205 = vector.load %arg13[%c0_194, %c7_195, %c32_196] : memref<2x10x320xf32, #tpu.memory_space<vmem>>, vector<2x1x256xf32>
    %206 = vector.shape_cast %205 : vector<2x1x256xf32> to vector<2x256xf32>
    %207 = vector.shape_cast %204 : vector<2x256xf32> to vector<2x1x256xf32>
    tpu.vector_store %arg13[%c0_194, %c7_195, %c32_196], %207 {strides = array<i32>} : memref<2x10x320xf32, #tpu.memory_space<vmem>>, vector<2x1x256xf32>,
    %c0_197 = arith.constant 0 : index
    %c14_198 = arith.constant 14 : index
    %c0_199 = arith.constant 0 : index
    %208 = vector.load %arg12[%c0_197, %c14_198, %c0_199] : memref<2x18x72xf32, #tpu.memory_space<vmem>>, vector<2x1x72xf32>
    %209 = vector.shape_cast %208 : vector<2x1x72xf32> to vector<2x72xf32>
    %210 = arith.truncf %209 : vector<2x72xf32> to vector<2x72xbf16>
    %c0_200 = arith.constant 0 : index
    %c0_201 = arith.constant 0 : index
    %c0_202 = arith.constant 0 : index
    %211 = vector.load %arg2[%c0_200, %c0_201, %c0_202] : memref<3x72x256xbf16, #tpu.memory_space<vmem>>, vector<1x72x256xbf16>
    %212 = vector.shape_cast %211 : vector<1x72x256xbf16> to vector<72x256xbf16>
    %cst_203 = arith.constant dense<0.000000e+00> : vector<2x256xf32>
    %213 = tpu.matmul %210, %212, %cst_203 {dimension_numbers = #tpu.dot_dimension_numbers<[1], [0], [0], [1], [0, 0, 1, 1], [], []>} : vector<2x72xbf16>, vector<72x256xbf16>, vector<2x256xf32> -> vector<2x256xf32>
    %214 = vector.broadcast %18 : vector<1x256xf32> to vector<2x256xf32>
    %215 = arith.addf %214, %213 : vector<2x256xf32>
    %c0_204 = arith.constant 0 : index
    %c15 = arith.constant 15 : index
    %c0_205 = arith.constant 0 : index
    %216 = vector.load %arg12[%c0_204, %c15, %c0_205] : memref<2x18x72xf32, #tpu.memory_space<vmem>>, vector<2x1x72xf32>
    %217 = vector.shape_cast %216 : vector<2x1x72xf32> to vector<2x72xf32>
    %218 = arith.truncf %217 : vector<2x72xf32> to vector<2x72xbf16>
    %c1_206 = arith.constant 1 : index
    %c0_207 = arith.constant 0 : index
    %c0_208 = arith.constant 0 : index
    %219 = vector.load %arg2[%c1_206, %c0_207, %c0_208] : memref<3x72x256xbf16, #tpu.memory_space<vmem>>, vector<1x72x256xbf16>
    %220 = vector.shape_cast %219 : vector<1x72x256xbf16> to vector<72x256xbf16>
    %cst_209 = arith.constant dense<0.000000e+00> : vector<2x256xf32>
    %221 = tpu.matmul %218, %220, %cst_209 {dimension_numbers = #tpu.dot_dimension_numbers<[1], [0], [0], [1], [0, 0, 1, 1], [], []>} : vector<2x72xbf16>, vector<72x256xbf16>, vector<2x256xf32> -> vector<2x256xf32>
    %222 = arith.addf %215, %221 : vector<2x256xf32>
    %c0_210 = arith.constant 0 : index
    %c16 = arith.constant 16 : index
    %c0_211 = arith.constant 0 : index
    %223 = vector.load %arg12[%c0_210, %c16, %c0_211] : memref<2x18x72xf32, #tpu.memory_space<vmem>>, vector<2x1x72xf32>
    %224 = vector.shape_cast %223 : vector<2x1x72xf32> to vector<2x72xf32>
    %225 = arith.truncf %224 : vector<2x72xf32> to vector<2x72xbf16>
    %c2_212 = arith.constant 2 : index
    %c0_213 = arith.constant 0 : index
    %c0_214 = arith.constant 0 : index
    %226 = vector.load %arg2[%c2_212, %c0_213, %c0_214] : memref<3x72x256xbf16, #tpu.memory_space<vmem>>, vector<1x72x256xbf16>
    %227 = vector.shape_cast %226 : vector<1x72x256xbf16> to vector<72x256xbf16>
    %cst_215 = arith.constant dense<0.000000e+00> : vector<2x256xf32>
    %228 = tpu.matmul %225, %227, %cst_215 {dimension_numbers = #tpu.dot_dimension_numbers<[1], [0], [0], [1], [0, 0, 1, 1], [], []>} : vector<2x72xbf16>, vector<72x256xbf16>, vector<2x256xf32> -> vector<2x256xf32>
    %229 = arith.addf %222, %228 : vector<2x256xf32>
    %cst_216 = arith.constant 0.000000e+00 : f32
    %230 = vector.broadcast %cst_216 : f32 to vector<2x256xf32>
    %231 = arith.maximumf %229, %230 : vector<2x256xf32>
    %c0_217 = arith.constant 0 : index
    %c8_218 = arith.constant 8 : index
    %c32_219 = arith.constant 32 : index
    %232 = vector.load %arg13[%c0_217, %c8_218, %c32_219] : memref<2x10x320xf32, #tpu.memory_space<vmem>>, vector<2x1x256xf32>
    %233 = vector.shape_cast %232 : vector<2x1x256xf32> to vector<2x256xf32>
    %234 = vector.shape_cast %231 : vector<2x256xf32> to vector<2x1x256xf32>
    tpu.vector_store %arg13[%c0_217, %c8_218, %c32_219], %234 {strides = array<i32>} : memref<2x10x320xf32, #tpu.memory_space<vmem>>, vector<2x1x256xf32>,
    %c0_220 = arith.constant 0 : index
    %c0_221 = arith.constant 0 : index
    %235 = vector.load %arg5[%c0_220, %c0_221] : memref<1x128xf32, #tpu.memory_space<vmem>>, vector<1x128xf32>
    %c0_222 = arith.constant 0 : index
    %c0_223 = arith.constant 0 : index
    %c0_224 = arith.constant 0 : index
    %236 = vector.load %arg13[%c0_222, %c0_223, %c0_224] : memref<2x10x320xf32, #tpu.memory_space<vmem>>, vector<2x1x320xf32>
    %237 = vector.shape_cast %236 : vector<2x1x320xf32> to vector<2x320xf32>
    %238 = arith.truncf %237 : vector<2x320xf32> to vector<2x320xbf16>
    %c0_225 = arith.constant 0 : index
    %c0_226 = arith.constant 0 : index
    %c0_227 = arith.constant 0 : index
    %239 = vector.load %arg4[%c0_225, %c0_226, %c0_227] : memref<3x320x128xbf16, #tpu.memory_space<vmem>>, vector<1x320x128xbf16>
    %240 = vector.shape_cast %239 : vector<1x320x128xbf16> to vector<320x128xbf16>
    %cst_228 = arith.constant dense<0.000000e+00> : vector<2x128xf32>
    %241 = tpu.matmul %238, %240, %cst_228 {dimension_numbers = #tpu.dot_dimension_numbers<[1], [0], [0], [1], [0, 0, 1, 1], [], []>} : vector<2x320xbf16>, vector<320x128xbf16>, vector<2x128xf32> -> vector<2x128xf32>
    %242 = vector.broadcast %235 : vector<1x128xf32> to vector<2x128xf32>
    %243 = arith.addf %242, %241 : vector<2x128xf32>
    %c0_229 = arith.constant 0 : index
    %c1_230 = arith.constant 1 : index
    %c0_231 = arith.constant 0 : index
    %244 = vector.load %arg13[%c0_229, %c1_230, %c0_231] : memref<2x10x320xf32, #tpu.memory_space<vmem>>, vector<2x1x320xf32>
    %245 = vector.shape_cast %244 : vector<2x1x320xf32> to vector<2x320xf32>
    %246 = arith.truncf %245 : vector<2x320xf32> to vector<2x320xbf16>
    %c1_232 = arith.constant 1 : index
    %c0_233 = arith.constant 0 : index
    %c0_234 = arith.constant 0 : index
    %247 = vector.load %arg4[%c1_232, %c0_233, %c0_234] : memref<3x320x128xbf16, #tpu.memory_space<vmem>>, vector<1x320x128xbf16>
    %248 = vector.shape_cast %247 : vector<1x320x128xbf16> to vector<320x128xbf16>
    %cst_235 = arith.constant dense<0.000000e+00> : vector<2x128xf32>
    %249 = tpu.matmul %246, %248, %cst_235 {dimension_numbers = #tpu.dot_dimension_numbers<[1], [0], [0], [1], [0, 0, 1, 1], [], []>} : vector<2x320xbf16>, vector<320x128xbf16>, vector<2x128xf32> -> vector<2x128xf32>
    %250 = arith.addf %243, %249 : vector<2x128xf32>
    %c0_236 = arith.constant 0 : index
    %c2_237 = arith.constant 2 : index
    %c0_238 = arith.constant 0 : index
    %251 = vector.load %arg13[%c0_236, %c2_237, %c0_238] : memref<2x10x320xf32, #tpu.memory_space<vmem>>, vector<2x1x320xf32>
    %252 = vector.shape_cast %251 : vector<2x1x320xf32> to vector<2x320xf32>
    %253 = arith.truncf %252 : vector<2x320xf32> to vector<2x320xbf16>
    %c2_239 = arith.constant 2 : index
    %c0_240 = arith.constant 0 : index
    %c0_241 = arith.constant 0 : index
    %254 = vector.load %arg4[%c2_239, %c0_240, %c0_241] : memref<3x320x128xbf16, #tpu.memory_space<vmem>>, vector<1x320x128xbf16>
    %255 = vector.shape_cast %254 : vector<1x320x128xbf16> to vector<320x128xbf16>
    %cst_242 = arith.constant dense<0.000000e+00> : vector<2x128xf32>
    %256 = tpu.matmul %253, %255, %cst_242 {dimension_numbers = #tpu.dot_dimension_numbers<[1], [0], [0], [1], [0, 0, 1, 1], [], []>} : vector<2x320xbf16>, vector<320x128xbf16>, vector<2x128xf32> -> vector<2x128xf32>
    %257 = arith.addf %250, %256 : vector<2x128xf32>
    %cst_243 = arith.constant 0.000000e+00 : f32
    %258 = vector.broadcast %cst_243 : f32 to vector<2x128xf32>
    %259 = arith.maximumf %257, %258 : vector<2x128xf32>
    %c0_244 = arith.constant 0 : index
    %c1_245 = arith.constant 1 : index
    %c32_246 = arith.constant 32 : index
    %260 = vector.load %arg14[%c0_244, %c1_245, %c32_246] : memref<2x6x192xf32, #tpu.memory_space<vmem>>, vector<2x1x128xf32>
    %261 = vector.shape_cast %260 : vector<2x1x128xf32> to vector<2x128xf32>
    %262 = vector.shape_cast %259 : vector<2x128xf32> to vector<2x1x128xf32>
    tpu.vector_store %arg14[%c0_244, %c1_245, %c32_246], %262 {strides = array<i32>} : memref<2x6x192xf32, #tpu.memory_space<vmem>>, vector<2x1x128xf32>,
    %c0_247 = arith.constant 0 : index
    %c2_248 = arith.constant 2 : index
    %c0_249 = arith.constant 0 : index
    %263 = vector.load %arg13[%c0_247, %c2_248, %c0_249] : memref<2x10x320xf32, #tpu.memory_space<vmem>>, vector<2x1x320xf32>
    %264 = vector.shape_cast %263 : vector<2x1x320xf32> to vector<2x320xf32>
    %265 = arith.truncf %264 : vector<2x320xf32> to vector<2x320xbf16>
    %c0_250 = arith.constant 0 : index
    %c0_251 = arith.constant 0 : index
    %c0_252 = arith.constant 0 : index
    %266 = vector.load %arg4[%c0_250, %c0_251, %c0_252] : memref<3x320x128xbf16, #tpu.memory_space<vmem>>, vector<1x320x128xbf16>
    %267 = vector.shape_cast %266 : vector<1x320x128xbf16> to vector<320x128xbf16>
    %cst_253 = arith.constant dense<0.000000e+00> : vector<2x128xf32>
    %268 = tpu.matmul %265, %267, %cst_253 {dimension_numbers = #tpu.dot_dimension_numbers<[1], [0], [0], [1], [0, 0, 1, 1], [], []>} : vector<2x320xbf16>, vector<320x128xbf16>, vector<2x128xf32> -> vector<2x128xf32>
    %269 = vector.broadcast %235 : vector<1x128xf32> to vector<2x128xf32>
    %270 = arith.addf %269, %268 : vector<2x128xf32>
    %c0_254 = arith.constant 0 : index
    %c3_255 = arith.constant 3 : index
    %c0_256 = arith.constant 0 : index
    %271 = vector.load %arg13[%c0_254, %c3_255, %c0_256] : memref<2x10x320xf32, #tpu.memory_space<vmem>>, vector<2x1x320xf32>
    %272 = vector.shape_cast %271 : vector<2x1x320xf32> to vector<2x320xf32>
    %273 = arith.truncf %272 : vector<2x320xf32> to vector<2x320xbf16>
    %c1_257 = arith.constant 1 : index
    %c0_258 = arith.constant 0 : index
    %c0_259 = arith.constant 0 : index
    %274 = vector.load %arg4[%c1_257, %c0_258, %c0_259] : memref<3x320x128xbf16, #tpu.memory_space<vmem>>, vector<1x320x128xbf16>
    %275 = vector.shape_cast %274 : vector<1x320x128xbf16> to vector<320x128xbf16>
    %cst_260 = arith.constant dense<0.000000e+00> : vector<2x128xf32>
    %276 = tpu.matmul %273, %275, %cst_260 {dimension_numbers = #tpu.dot_dimension_numbers<[1], [0], [0], [1], [0, 0, 1, 1], [], []>} : vector<2x320xbf16>, vector<320x128xbf16>, vector<2x128xf32> -> vector<2x128xf32>
    %277 = arith.addf %270, %276 : vector<2x128xf32>
    %c0_261 = arith.constant 0 : index
    %c4_262 = arith.constant 4 : index
    %c0_263 = arith.constant 0 : index
    %278 = vector.load %arg13[%c0_261, %c4_262, %c0_263] : memref<2x10x320xf32, #tpu.memory_space<vmem>>, vector<2x1x320xf32>
    %279 = vector.shape_cast %278 : vector<2x1x320xf32> to vector<2x320xf32>
    %280 = arith.truncf %279 : vector<2x320xf32> to vector<2x320xbf16>
    %c2_264 = arith.constant 2 : index
    %c0_265 = arith.constant 0 : index
    %c0_266 = arith.constant 0 : index
    %281 = vector.load %arg4[%c2_264, %c0_265, %c0_266] : memref<3x320x128xbf16, #tpu.memory_space<vmem>>, vector<1x320x128xbf16>
    %282 = vector.shape_cast %281 : vector<1x320x128xbf16> to vector<320x128xbf16>
    %cst_267 = arith.constant dense<0.000000e+00> : vector<2x128xf32>
    %283 = tpu.matmul %280, %282, %cst_267 {dimension_numbers = #tpu.dot_dimension_numbers<[1], [0], [0], [1], [0, 0, 1, 1], [], []>} : vector<2x320xbf16>, vector<320x128xbf16>, vector<2x128xf32> -> vector<2x128xf32>
    %284 = arith.addf %277, %283 : vector<2x128xf32>
    %cst_268 = arith.constant 0.000000e+00 : f32
    %285 = vector.broadcast %cst_268 : f32 to vector<2x128xf32>
    %286 = arith.maximumf %284, %285 : vector<2x128xf32>
    %c0_269 = arith.constant 0 : index
    %c2_270 = arith.constant 2 : index
    %c32_271 = arith.constant 32 : index
    %287 = vector.load %arg14[%c0_269, %c2_270, %c32_271] : memref<2x6x192xf32, #tpu.memory_space<vmem>>, vector<2x1x128xf32>
    %288 = vector.shape_cast %287 : vector<2x1x128xf32> to vector<2x128xf32>
    %289 = vector.shape_cast %286 : vector<2x128xf32> to vector<2x1x128xf32>
    tpu.vector_store %arg14[%c0_269, %c2_270, %c32_271], %289 {strides = array<i32>} : memref<2x6x192xf32, #tpu.memory_space<vmem>>, vector<2x1x128xf32>,
    %c0_272 = arith.constant 0 : index
    %c4_273 = arith.constant 4 : index
    %c0_274 = arith.constant 0 : index
    %290 = vector.load %arg13[%c0_272, %c4_273, %c0_274] : memref<2x10x320xf32, #tpu.memory_space<vmem>>, vector<2x1x320xf32>
    %291 = vector.shape_cast %290 : vector<2x1x320xf32> to vector<2x320xf32>
    %292 = arith.truncf %291 : vector<2x320xf32> to vector<2x320xbf16>
    %c0_275 = arith.constant 0 : index
    %c0_276 = arith.constant 0 : index
    %c0_277 = arith.constant 0 : index
    %293 = vector.load %arg4[%c0_275, %c0_276, %c0_277] : memref<3x320x128xbf16, #tpu.memory_space<vmem>>, vector<1x320x128xbf16>
    %294 = vector.shape_cast %293 : vector<1x320x128xbf16> to vector<320x128xbf16>
    %cst_278 = arith.constant dense<0.000000e+00> : vector<2x128xf32>
    %295 = tpu.matmul %292, %294, %cst_278 {dimension_numbers = #tpu.dot_dimension_numbers<[1], [0], [0], [1], [0, 0, 1, 1], [], []>} : vector<2x320xbf16>, vector<320x128xbf16>, vector<2x128xf32> -> vector<2x128xf32>
    %296 = vector.broadcast %235 : vector<1x128xf32> to vector<2x128xf32>
    %297 = arith.addf %296, %295 : vector<2x128xf32>
    %c0_279 = arith.constant 0 : index
    %c5_280 = arith.constant 5 : index
    %c0_281 = arith.constant 0 : index
    %298 = vector.load %arg13[%c0_279, %c5_280, %c0_281] : memref<2x10x320xf32, #tpu.memory_space<vmem>>, vector<2x1x320xf32>
    %299 = vector.shape_cast %298 : vector<2x1x320xf32> to vector<2x320xf32>
    %300 = arith.truncf %299 : vector<2x320xf32> to vector<2x320xbf16>
    %c1_282 = arith.constant 1 : index
    %c0_283 = arith.constant 0 : index
    %c0_284 = arith.constant 0 : index
    %301 = vector.load %arg4[%c1_282, %c0_283, %c0_284] : memref<3x320x128xbf16, #tpu.memory_space<vmem>>, vector<1x320x128xbf16>
    %302 = vector.shape_cast %301 : vector<1x320x128xbf16> to vector<320x128xbf16>
    %cst_285 = arith.constant dense<0.000000e+00> : vector<2x128xf32>
    %303 = tpu.matmul %300, %302, %cst_285 {dimension_numbers = #tpu.dot_dimension_numbers<[1], [0], [0], [1], [0, 0, 1, 1], [], []>} : vector<2x320xbf16>, vector<320x128xbf16>, vector<2x128xf32> -> vector<2x128xf32>
    %304 = arith.addf %297, %303 : vector<2x128xf32>
    %c0_286 = arith.constant 0 : index
    %c6_287 = arith.constant 6 : index
    %c0_288 = arith.constant 0 : index
    %305 = vector.load %arg13[%c0_286, %c6_287, %c0_288] : memref<2x10x320xf32, #tpu.memory_space<vmem>>, vector<2x1x320xf32>
    %306 = vector.shape_cast %305 : vector<2x1x320xf32> to vector<2x320xf32>
    %307 = arith.truncf %306 : vector<2x320xf32> to vector<2x320xbf16>
    %c2_289 = arith.constant 2 : index
    %c0_290 = arith.constant 0 : index
    %c0_291 = arith.constant 0 : index
    %308 = vector.load %arg4[%c2_289, %c0_290, %c0_291] : memref<3x320x128xbf16, #tpu.memory_space<vmem>>, vector<1x320x128xbf16>
    %309 = vector.shape_cast %308 : vector<1x320x128xbf16> to vector<320x128xbf16>
    %cst_292 = arith.constant dense<0.000000e+00> : vector<2x128xf32>
    %310 = tpu.matmul %307, %309, %cst_292 {dimension_numbers = #tpu.dot_dimension_numbers<[1], [0], [0], [1], [0, 0, 1, 1], [], []>} : vector<2x320xbf16>, vector<320x128xbf16>, vector<2x128xf32> -> vector<2x128xf32>
    %311 = arith.addf %304, %310 : vector<2x128xf32>
    %cst_293 = arith.constant 0.000000e+00 : f32
    %312 = vector.broadcast %cst_293 : f32 to vector<2x128xf32>
    %313 = arith.maximumf %311, %312 : vector<2x128xf32>
    %c0_294 = arith.constant 0 : index
    %c3_295 = arith.constant 3 : index
    %c32_296 = arith.constant 32 : index
    %314 = vector.load %arg14[%c0_294, %c3_295, %c32_296] : memref<2x6x192xf32, #tpu.memory_space<vmem>>, vector<2x1x128xf32>
    %315 = vector.shape_cast %314 : vector<2x1x128xf32> to vector<2x128xf32>
    %316 = vector.shape_cast %313 : vector<2x128xf32> to vector<2x1x128xf32>
    tpu.vector_store %arg14[%c0_294, %c3_295, %c32_296], %316 {strides = array<i32>} : memref<2x6x192xf32, #tpu.memory_space<vmem>>, vector<2x1x128xf32>,
    %c0_297 = arith.constant 0 : index
    %c6_298 = arith.constant 6 : index
    %c0_299 = arith.constant 0 : index
    %317 = vector.load %arg13[%c0_297, %c6_298, %c0_299] : memref<2x10x320xf32, #tpu.memory_space<vmem>>, vector<2x1x320xf32>
    %318 = vector.shape_cast %317 : vector<2x1x320xf32> to vector<2x320xf32>
    %319 = arith.truncf %318 : vector<2x320xf32> to vector<2x320xbf16>
    %c0_300 = arith.constant 0 : index
    %c0_301 = arith.constant 0 : index
    %c0_302 = arith.constant 0 : index
    %320 = vector.load %arg4[%c0_300, %c0_301, %c0_302] : memref<3x320x128xbf16, #tpu.memory_space<vmem>>, vector<1x320x128xbf16>
    %321 = vector.shape_cast %320 : vector<1x320x128xbf16> to vector<320x128xbf16>
    %cst_303 = arith.constant dense<0.000000e+00> : vector<2x128xf32>
    %322 = tpu.matmul %319, %321, %cst_303 {dimension_numbers = #tpu.dot_dimension_numbers<[1], [0], [0], [1], [0, 0, 1, 1], [], []>} : vector<2x320xbf16>, vector<320x128xbf16>, vector<2x128xf32> -> vector<2x128xf32>
    %323 = vector.broadcast %235 : vector<1x128xf32> to vector<2x128xf32>
    %324 = arith.addf %323, %322 : vector<2x128xf32>
    %c0_304 = arith.constant 0 : index
    %c7_305 = arith.constant 7 : index
    %c0_306 = arith.constant 0 : index
    %325 = vector.load %arg13[%c0_304, %c7_305, %c0_306] : memref<2x10x320xf32, #tpu.memory_space<vmem>>, vector<2x1x320xf32>
    %326 = vector.shape_cast %325 : vector<2x1x320xf32> to vector<2x320xf32>
    %327 = arith.truncf %326 : vector<2x320xf32> to vector<2x320xbf16>
    %c1_307 = arith.constant 1 : index
    %c0_308 = arith.constant 0 : index
    %c0_309 = arith.constant 0 : index
    %328 = vector.load %arg4[%c1_307, %c0_308, %c0_309] : memref<3x320x128xbf16, #tpu.memory_space<vmem>>, vector<1x320x128xbf16>
    %329 = vector.shape_cast %328 : vector<1x320x128xbf16> to vector<320x128xbf16>
    %cst_310 = arith.constant dense<0.000000e+00> : vector<2x128xf32>
    %330 = tpu.matmul %327, %329, %cst_310 {dimension_numbers = #tpu.dot_dimension_numbers<[1], [0], [0], [1], [0, 0, 1, 1], [], []>} : vector<2x320xbf16>, vector<320x128xbf16>, vector<2x128xf32> -> vector<2x128xf32>
    %331 = arith.addf %324, %330 : vector<2x128xf32>
    %c0_311 = arith.constant 0 : index
    %c8_312 = arith.constant 8 : index
    %c0_313 = arith.constant 0 : index
    %332 = vector.load %arg13[%c0_311, %c8_312, %c0_313] : memref<2x10x320xf32, #tpu.memory_space<vmem>>, vector<2x1x320xf32>
    %333 = vector.shape_cast %332 : vector<2x1x320xf32> to vector<2x320xf32>
    %334 = arith.truncf %333 : vector<2x320xf32> to vector<2x320xbf16>
    %c2_314 = arith.constant 2 : index
    %c0_315 = arith.constant 0 : index
    %c0_316 = arith.constant 0 : index
    %335 = vector.load %arg4[%c2_314, %c0_315, %c0_316] : memref<3x320x128xbf16, #tpu.memory_space<vmem>>, vector<1x320x128xbf16>
    %336 = vector.shape_cast %335 : vector<1x320x128xbf16> to vector<320x128xbf16>
    %cst_317 = arith.constant dense<0.000000e+00> : vector<2x128xf32>
    %337 = tpu.matmul %334, %336, %cst_317 {dimension_numbers = #tpu.dot_dimension_numbers<[1], [0], [0], [1], [0, 0, 1, 1], [], []>} : vector<2x320xbf16>, vector<320x128xbf16>, vector<2x128xf32> -> vector<2x128xf32>
    %338 = arith.addf %331, %337 : vector<2x128xf32>
    %cst_318 = arith.constant 0.000000e+00 : f32
    %339 = vector.broadcast %cst_318 : f32 to vector<2x128xf32>
    %340 = arith.maximumf %338, %339 : vector<2x128xf32>
    %c0_319 = arith.constant 0 : index
    %c4_320 = arith.constant 4 : index
    %c32_321 = arith.constant 32 : index
    %341 = vector.load %arg14[%c0_319, %c4_320, %c32_321] : memref<2x6x192xf32, #tpu.memory_space<vmem>>, vector<2x1x128xf32>
    %342 = vector.shape_cast %341 : vector<2x1x128xf32> to vector<2x128xf32>
    %343 = vector.shape_cast %340 : vector<2x128xf32> to vector<2x1x128xf32>
    tpu.vector_store %arg14[%c0_319, %c4_320, %c32_321], %343 {strides = array<i32>} : memref<2x6x192xf32, #tpu.memory_space<vmem>>, vector<2x1x128xf32>,
    %c0_322 = arith.constant 0 : index
    %c0_323 = arith.constant 0 : index
    %344 = vector.load %arg7[%c0_322, %c0_323] : memref<1x64xf32, #tpu.memory_space<vmem>>, vector<1x64xf32>
    %c0_324 = arith.constant 0 : index
    %c0_325 = arith.constant 0 : index
    %c0_326 = arith.constant 0 : index
    %345 = vector.load %arg14[%c0_324, %c0_325, %c0_326] : memref<2x6x192xf32, #tpu.memory_space<vmem>>, vector<2x1x192xf32>
    %346 = vector.shape_cast %345 : vector<2x1x192xf32> to vector<2x192xf32>
    %347 = arith.truncf %346 : vector<2x192xf32> to vector<2x192xbf16>
    %c0_327 = arith.constant 0 : index
    %c0_328 = arith.constant 0 : index
    %c0_329 = arith.constant 0 : index
    %348 = vector.load %arg6[%c0_327, %c0_328, %c0_329] : memref<3x192x64xbf16, #tpu.memory_space<vmem>>, vector<1x192x64xbf16>
    %349 = vector.shape_cast %348 : vector<1x192x64xbf16> to vector<192x64xbf16>
    %cst_330 = arith.constant dense<0.000000e+00> : vector<2x64xf32>
    %350 = tpu.matmul %347, %349, %cst_330 {dimension_numbers = #tpu.dot_dimension_numbers<[1], [0], [0], [1], [0, 0, 1, 1], [], []>} : vector<2x192xbf16>, vector<192x64xbf16>, vector<2x64xf32> -> vector<2x64xf32>
    %351 = vector.broadcast %344 : vector<1x64xf32> to vector<2x64xf32>
    %352 = arith.addf %351, %350 : vector<2x64xf32>
    %c0_331 = arith.constant 0 : index
    %c1_332 = arith.constant 1 : index
    %c0_333 = arith.constant 0 : index
    %353 = vector.load %arg14[%c0_331, %c1_332, %c0_333] : memref<2x6x192xf32, #tpu.memory_space<vmem>>, vector<2x1x192xf32>
    %354 = vector.shape_cast %353 : vector<2x1x192xf32> to vector<2x192xf32>
    %355 = arith.truncf %354 : vector<2x192xf32> to vector<2x192xbf16>
    %c1_334 = arith.constant 1 : index
    %c0_335 = arith.constant 0 : index
    %c0_336 = arith.constant 0 : index
    %356 = vector.load %arg6[%c1_334, %c0_335, %c0_336] : memref<3x192x64xbf16, #tpu.memory_space<vmem>>, vector<1x192x64xbf16>
    %357 = vector.shape_cast %356 : vector<1x192x64xbf16> to vector<192x64xbf16>
    %cst_337 = arith.constant dense<0.000000e+00> : vector<2x64xf32>
    %358 = tpu.matmul %355, %357, %cst_337 {dimension_numbers = #tpu.dot_dimension_numbers<[1], [0], [0], [1], [0, 0, 1, 1], [], []>} : vector<2x192xbf16>, vector<192x64xbf16>, vector<2x64xf32> -> vector<2x64xf32>
    %359 = arith.addf %352, %358 : vector<2x64xf32>
    %c0_338 = arith.constant 0 : index
    %c2_339 = arith.constant 2 : index
    %c0_340 = arith.constant 0 : index
    %360 = vector.load %arg14[%c0_338, %c2_339, %c0_340] : memref<2x6x192xf32, #tpu.memory_space<vmem>>, vector<2x1x192xf32>
    %361 = vector.shape_cast %360 : vector<2x1x192xf32> to vector<2x192xf32>
    %362 = arith.truncf %361 : vector<2x192xf32> to vector<2x192xbf16>
    %c2_341 = arith.constant 2 : index
    %c0_342 = arith.constant 0 : index
    %c0_343 = arith.constant 0 : index
    %363 = vector.load %arg6[%c2_341, %c0_342, %c0_343] : memref<3x192x64xbf16, #tpu.memory_space<vmem>>, vector<1x192x64xbf16>
    %364 = vector.shape_cast %363 : vector<1x192x64xbf16> to vector<192x64xbf16>
    %cst_344 = arith.constant dense<0.000000e+00> : vector<2x64xf32>
    %365 = tpu.matmul %362, %364, %cst_344 {dimension_numbers = #tpu.dot_dimension_numbers<[1], [0], [0], [1], [0, 0, 1, 1], [], []>} : vector<2x192xbf16>, vector<192x64xbf16>, vector<2x64xf32> -> vector<2x64xf32>
    %366 = arith.addf %359, %365 : vector<2x64xf32>
    %cst_345 = arith.constant 0.000000e+00 : f32
    %367 = vector.broadcast %cst_345 : f32 to vector<2x64xf32>
    %368 = arith.maximumf %366, %367 : vector<2x64xf32>
    %c0_346 = arith.constant 0 : index
    %c0_347 = arith.constant 0 : index
    %369 = vector.load %arg15[%c0_346, %c0_347] : memref<2x128xf32, #tpu.memory_space<vmem>>, vector<2x64xf32>
    tpu.vector_store %arg15[%c0_346, %c0_347], %368 {strides = array<i32>} : memref<2x128xf32, #tpu.memory_space<vmem>>, vector<2x64xf32>,
    %c0_348 = arith.constant 0 : index
    %c2_349 = arith.constant 2 : index
    %c0_350 = arith.constant 0 : index
    %370 = vector.load %arg14[%c0_348, %c2_349, %c0_350] : memref<2x6x192xf32, #tpu.memory_space<vmem>>, vector<2x1x192xf32>
    %371 = vector.shape_cast %370 : vector<2x1x192xf32> to vector<2x192xf32>
    %372 = arith.truncf %371 : vector<2x192xf32> to vector<2x192xbf16>
    %c0_351 = arith.constant 0 : index
    %c0_352 = arith.constant 0 : index
    %c0_353 = arith.constant 0 : index
    %373 = vector.load %arg6[%c0_351, %c0_352, %c0_353] : memref<3x192x64xbf16, #tpu.memory_space<vmem>>, vector<1x192x64xbf16>
    %374 = vector.shape_cast %373 : vector<1x192x64xbf16> to vector<192x64xbf16>
    %cst_354 = arith.constant dense<0.000000e+00> : vector<2x64xf32>
    %375 = tpu.matmul %372, %374, %cst_354 {dimension_numbers = #tpu.dot_dimension_numbers<[1], [0], [0], [1], [0, 0, 1, 1], [], []>} : vector<2x192xbf16>, vector<192x64xbf16>, vector<2x64xf32> -> vector<2x64xf32>
    %376 = vector.broadcast %344 : vector<1x64xf32> to vector<2x64xf32>
    %377 = arith.addf %376, %375 : vector<2x64xf32>
    %c0_355 = arith.constant 0 : index
    %c3_356 = arith.constant 3 : index
    %c0_357 = arith.constant 0 : index
    %378 = vector.load %arg14[%c0_355, %c3_356, %c0_357] : memref<2x6x192xf32, #tpu.memory_space<vmem>>, vector<2x1x192xf32>
    %379 = vector.shape_cast %378 : vector<2x1x192xf32> to vector<2x192xf32>
    %380 = arith.truncf %379 : vector<2x192xf32> to vector<2x192xbf16>
    %c1_358 = arith.constant 1 : index
    %c0_359 = arith.constant 0 : index
    %c0_360 = arith.constant 0 : index
    %381 = vector.load %arg6[%c1_358, %c0_359, %c0_360] : memref<3x192x64xbf16, #tpu.memory_space<vmem>>, vector<1x192x64xbf16>
    %382 = vector.shape_cast %381 : vector<1x192x64xbf16> to vector<192x64xbf16>
    %cst_361 = arith.constant dense<0.000000e+00> : vector<2x64xf32>
    %383 = tpu.matmul %380, %382, %cst_361 {dimension_numbers = #tpu.dot_dimension_numbers<[1], [0], [0], [1], [0, 0, 1, 1], [], []>} : vector<2x192xbf16>, vector<192x64xbf16>, vector<2x64xf32> -> vector<2x64xf32>
    %384 = arith.addf %377, %383 : vector<2x64xf32>
    %c0_362 = arith.constant 0 : index
    %c4_363 = arith.constant 4 : index
    %c0_364 = arith.constant 0 : index
    %385 = vector.load %arg14[%c0_362, %c4_363, %c0_364] : memref<2x6x192xf32, #tpu.memory_space<vmem>>, vector<2x1x192xf32>
    %386 = vector.shape_cast %385 : vector<2x1x192xf32> to vector<2x192xf32>
    %387 = arith.truncf %386 : vector<2x192xf32> to vector<2x192xbf16>
    %c2_365 = arith.constant 2 : index
    %c0_366 = arith.constant 0 : index
    %c0_367 = arith.constant 0 : index
    %388 = vector.load %arg6[%c2_365, %c0_366, %c0_367] : memref<3x192x64xbf16, #tpu.memory_space<vmem>>, vector<1x192x64xbf16>
    %389 = vector.shape_cast %388 : vector<1x192x64xbf16> to vector<192x64xbf16>
    %cst_368 = arith.constant dense<0.000000e+00> : vector<2x64xf32>
    %390 = tpu.matmul %387, %389, %cst_368 {dimension_numbers = #tpu.dot_dimension_numbers<[1], [0], [0], [1], [0, 0, 1, 1], [], []>} : vector<2x192xbf16>, vector<192x64xbf16>, vector<2x64xf32> -> vector<2x64xf32>
    %391 = arith.addf %384, %390 : vector<2x64xf32>
    %cst_369 = arith.constant 0.000000e+00 : f32
    %392 = vector.broadcast %cst_369 : f32 to vector<2x64xf32>
    %393 = arith.maximumf %391, %392 : vector<2x64xf32>
    %c0_370 = arith.constant 0 : index
    %c64 = arith.constant 64 : index
    %394 = vector.load %arg15[%c0_370, %c64] : memref<2x128xf32, #tpu.memory_space<vmem>>, vector<2x64xf32>
    tpu.vector_store %arg15[%c0_370, %c64], %393 {strides = array<i32>} : memref<2x128xf32, #tpu.memory_space<vmem>>, vector<2x64xf32>,
    %c0_371 = arith.constant 0 : index
    %c0_372 = arith.constant 0 : index
    %395 = vector.load %arg15[%c0_371, %c0_372] : memref<2x128xf32, #tpu.memory_space<vmem>>, vector<2x128xf32>
    %c0_373 = arith.constant 0 : index
    %c0_374 = arith.constant 0 : index
    %396 = vector.load %arg8[%c0_373, %c0_374] : memref<128x16xf32, #tpu.memory_space<vmem>>, vector<128x16xf32>
    %cst_375 = arith.constant dense<0.000000e+00> : vector<2x16xf32>
    %397 = tpu.matmul %395, %396, %cst_375 {dimension_numbers = #tpu.dot_dimension_numbers<[1], [0], [0], [1], [0, 0, 1, 1], [], []>} : vector<2x128xf32>, vector<128x16xf32>, vector<2x16xf32> -> vector<2x16xf32>
    %c0_376 = arith.constant 0 : index
    %c0_377 = arith.constant 0 : index
    %398 = vector.load %arg9[%c0_376, %c0_377] : memref<1x16xf32, #tpu.memory_space<vmem>>, vector<1x16xf32>
    %399 = vector.broadcast %398 : vector<1x16xf32> to vector<2x16xf32>
    %400 = arith.addf %397, %399 : vector<2x16xf32>
    %401 = vector.extract_strided_slice %400 {offsets = [0, 0], sizes = [2, 8], strides = [1, 1]} : vector<2x16xf32> to vector<2x8xf32>
    %402 = vector.extract_strided_slice %400 {offsets = [0, 8], sizes = [2, 8], strides = [1, 1]} : vector<2x16xf32> to vector<2x8xf32>
    %cst_378 = arith.constant 0.000000e+00 : f32
    %403 = vector.broadcast %cst_378 : f32 to vector<2x8xf32>
    %404 = arith.maximumf %402, %403 : vector<2x8xf32>
    %405 = math.absf %402 : vector<2x8xf32>
    %cst_379 = arith.constant 0.000000e+00 : f32
    %406 = vector.broadcast %cst_379 : f32 to vector<2x8xf32>
    %407 = arith.subf %406, %405 : vector<2x8xf32>
    %408 = math.exp %407 : vector<2x8xf32>
    %cst_380 = arith.constant 1.000000e+00 : f32
    %409 = vector.broadcast %cst_380 : f32 to vector<2x8xf32>
    %410 = arith.addf %409, %408 : vector<2x8xf32>
    %411 = math.log %410 : vector<2x8xf32>
    %412 = arith.addf %404, %411 : vector<2x8xf32>
    %c0_381 = arith.constant 0 : index
    %c0_382 = arith.constant 0 : index
    %413 = vector.load %arg10[%c0_381, %c0_382] : memref<2x8xf32, #tpu.memory_space<vmem>>, vector<2x8xf32>
    tpu.vector_store %arg10[%c0_381, %c0_382], %401 {strides = array<i32>} : memref<2x8xf32, #tpu.memory_space<vmem>>, vector<2x8xf32>,
    %c0_383 = arith.constant 0 : index
    %c0_384 = arith.constant 0 : index
    %414 = vector.load %arg11[%c0_383, %c0_384] : memref<2x8xf32, #tpu.memory_space<vmem>>, vector<2x8xf32>
    tpu.vector_store %arg11[%c0_383, %c0_384], %412 {strides = array<i32>} : memref<2x8xf32, #tpu.memory_space<vmem>>, vector<2x8xf32>,
    return
  }
  func.func @transform_0(%arg0: i32) -> (i32, i32, i32, i32) {
    %c0_i32 = arith.constant 0 : i32
    %c0_i32_0 = arith.constant 0 : i32
    %c0_i32_1 = arith.constant 0 : i32
    %c0_i32_2 = arith.constant 0 : i32
    return %arg0, %c0_i32, %c0_i32_0, %c0_i32_1 : i32, i32, i32, i32
  }
  func.func @transform_1(%arg0: i32) -> (i32, i32, i32) {
    %c0_i32 = arith.constant 0 : i32
    %c0_i32_0 = arith.constant 0 : i32
    %c0_i32_1 = arith.constant 0 : i32
    %c0_i32_2 = arith.constant 0 : i32
    return %c0_i32, %c0_i32_0, %c0_i32_1 : i32, i32, i32
  }
  func.func @transform_2(%arg0: i32) -> (i32, i32) {
    %c0_i32 = arith.constant 0 : i32
    %c0_i32_0 = arith.constant 0 : i32
    %c0_i32_1 = arith.constant 0 : i32
    return %c0_i32, %c0_i32_0 : i32, i32
  }
  func.func @transform_3(%arg0: i32) -> (i32, i32, i32) {
    %c0_i32 = arith.constant 0 : i32
    %c0_i32_0 = arith.constant 0 : i32
    %c0_i32_1 = arith.constant 0 : i32
    %c0_i32_2 = arith.constant 0 : i32
    return %c0_i32, %c0_i32_0, %c0_i32_1 : i32, i32, i32
  }
  func.func @transform_4(%arg0: i32) -> (i32, i32) {
    %c0_i32 = arith.constant 0 : i32
    %c0_i32_0 = arith.constant 0 : i32
    %c0_i32_1 = arith.constant 0 : i32
    return %c0_i32, %c0_i32_0 : i32, i32
  }
  func.func @transform_5(%arg0: i32) -> (i32, i32, i32) {
    %c0_i32 = arith.constant 0 : i32
    %c0_i32_0 = arith.constant 0 : i32
    %c0_i32_1 = arith.constant 0 : i32
    %c0_i32_2 = arith.constant 0 : i32
    return %c0_i32, %c0_i32_0, %c0_i32_1 : i32, i32, i32
  }
  func.func @transform_6(%arg0: i32) -> (i32, i32) {
    %c0_i32 = arith.constant 0 : i32
    %c0_i32_0 = arith.constant 0 : i32
    %c0_i32_1 = arith.constant 0 : i32
    return %c0_i32, %c0_i32_0 : i32, i32
  }
  func.func @transform_7(%arg0: i32) -> (i32, i32) {
    %c0_i32 = arith.constant 0 : i32
    %c0_i32_0 = arith.constant 0 : i32
    %c0_i32_1 = arith.constant 0 : i32
    return %c0_i32, %c0_i32_0 : i32, i32
  }
  func.func @transform_8(%arg0: i32) -> (i32, i32) {
    %c0_i32 = arith.constant 0 : i32
    %c0_i32_0 = arith.constant 0 : i32
    %c0_i32_1 = arith.constant 0 : i32
    return %c0_i32, %c0_i32_0 : i32, i32
  }
  func.func @transform_9(%arg0: i32) -> (i32, i32) {
    %c0_i32 = arith.constant 0 : i32
    %c0_i32_0 = arith.constant 0 : i32
    return %arg0, %c0_i32 : i32, i32
  }
  func.func @transform_10(%arg0: i32) -> (i32, i32) {
    %c0_i32 = arith.constant 0 : i32
    %c0_i32_0 = arith.constant 0 : i32
    return %arg0, %c0_i32 : i32, i32
  }
}

</mosaic_0001>

<bundles_post_ra>
// kernel: encoder_forward.1
= control target key start
LH: loop header
LB: loop body
LE: loop exit
PB: predicated region body
PF: predicated region fallthrough
CT: control target
= control target key end

     0   :  { %16 = vsyncpa [#allocation7], 0  ;;  %s12985_s0 = inlined_call_operand.vmem [shape: f32[2,4,16,16], index: 0, kind: input, shape index: {}]   ;;  %s12986_s1 = inlined_call_operand.hbm [shape: bf16[3,72,256], index: 1, kind: input, shape index: {}]   ;;  %s12987_s2 = inlined_call_operand.vmem [shape: f32[1,256], index: 2, kind: input, shape index: {}]   ;;  %s12988_s3 = inlined_call_operand.vmem [shape: bf16[3,320,128], index: 3, kind: input, shape index: {}]   ;;  %s12989_s4 = inlined_call_operand.vmem [shape: f32[1,128], index: 4, kind: input, shape index: {}]   ;;  %s12990_s5 = inlined_call_operand.vmem [shape: bf16[3,192,64], index: 5, kind: input, shape index: {}]   ;;  %s12991_s6 = inlined_call_operand.vmem [shape: f32[1,64], index: 6, kind: input, shape index: {}]   ;;  %s12992_s7 = inlined_call_operand.vmem [shape: f32[128,16], index: 7, kind: input, shape index: {}]   ;;  %s12993_s8 = inlined_call_operand.vmem [shape: f32[1,16], index: 8, kind: input, shape index: {}]   ;;  %s12994_s9 = inlined_call_operand.hbm [shape: f32[2,8], index: 9, kind: output, shape index: {0}]   ;;  %s12995_s10 = inlined_call_operand.hbm [shape: f32[2,8], index: 10, kind: output, shape index: {1}]  }
   0x1   :  { %17 = vsyncpa [#allocation8], 0 }
   0x2   :  { %18 = vsyncpa [#allocation11], 0  ;;  %s10731_s13 = smov [#allocation6]   ;;  %s10659_s17 = scalar_lea.hbm %s12986_s1, 3456 }
   0x3   :  { %s26_s14 = sshll.u32 %s10731_s13, 4  ;;  %p10660_p0 = scmp.ne.s32.totalorder %s12986_s1, %s10659_s17  ;;  %s27_s14 = int_to_ptr.vmem [resolvable:$true] %s26_s14 }
   0x4   :  { %p10663_p1 = scmp.lt.u32.totalorder %s10659_s17, %s12986_s1 }
   0x6   :  { %p10665_p2 = pnand %p10663_p1, %p10660_p0 }
   0x8   :  { %10668 = shalt.err (!%p10665_p2)
}
   0x9   :  { %s10669_s22 = scalar_lea.vmem %s27_s14, 3456  ;;  %p10674_p4 = scmp.lt.s32.totalorder %s27_s14, %s27_s14 }
   0xa   :  { %p10670_p3 = scmp.ne.s32.totalorder %s27_s14, %s10669_s22  ;;  %p10675_p5 = scmp.lt.s32.totalorder %s10669_s22, %s10669_s22 }
   0xc   :  { %p10676_p6 = por %p10675_p5, %p10674_p4 }
   0xe   :  { %p10677_p7 = pnand %p10676_p6, %p10670_p3 }
  0x10   :  { %10680 = shalt.err (!%p10677_p7)
}
  0x11   :  { %s10732_s23 = smov 128   ;;  %s10733_s24 = smov 8  }
  0x12   :  { %32 = dma.hbm_to_vmem [thread:$0]  %s12986_s1, 3456, %s27_s14, [#allocation7], %s10732_s23, %s10732_s23, %s10733_s24  }
  0x13   :  { %10725 = dma.done.wait [#allocation7], 3456  }
  0x14   :  { %10726 = vsyncadd [#allocation7], 4294963840  ;;  %vm51_vm0 = vcmask 588800   ;;  %v10734_v0 = vmov 0.0   ;;  %v10735_v1 = vmov 0   ;;  %v80_v2 = vld [vmem:[%s12985_s0 + $0x40] sm:$0xff] }
  0x15   :  { %56 = vst.msk [vmem:[#allocation2 + $0x18] sm:$0xff] %vm51_vm0, %v10734_v0  ;;  %57 = vst.msk [vmem:[#allocation2 + $0x20] sm:$0xff] %vm51_vm0, %v10734_v0  ;;  %290 = vmatprep.mubr.bf16.mxu0 %v10735_v1  ;;  %702 = vmatprep.mubr.bf16.mxu1 %v10735_v1  ;;  %v78_v3 = vld [vmem:[%s12985_s0] sm:$0xff]  ;;  %s10736_s30 = smov 1   ;;  %v8484_v4 = vld [vmem:[%s12985_s0 + $0x50] sm:$0xff]  ;;  %s10737_s15 = smov 19  }
  0x16   :  { %52 = vst.msk [vmem:[#allocation2] sm:$0xff] %vm51_vm0, %v10734_v0  ;;  %53 = vst.msk [vmem:[#allocation2 + $0x8] sm:$0xff] %vm51_vm0, %v10734_v0  ;;  %90 = vrot.lane.b32.xlu0 %v80_v2, %s10736_s30  ;;  %86 = vrot.lane.b32.xlu1 %v78_v3, %s10736_s30  ;;  %v8488_v5 = vld [vmem:[%s12985_s0 + $0x60] sm:$0xff]  ;;  %v10240_v7 = vld [vmem:[#allocation6] ss:$8 sps:$4 sm:$0xff]   ;;  %s10738_s16 = smov 37  }
  0x17   :  { %59 = vst [vmem:[#allocation3] sm:$0xff] %v10734_v0  ;;  %60 = vst [vmem:[#allocation3 + $0x8] sm:$0xff] %v10734_v0  ;;  %v10238_v6 = vld [vmem:[#allocation6 + $0x4] ss:$8 sps:$4 sm:$0xff]   ;;  %v10241_v8 = vld [vmem:[#allocation6 + $0x14] ss:$8 sps:$4 sm:$0xff]  }
  0x18   :  { %63 = vst [vmem:[#allocation3 + $0x18] sm:$0x3] %v10734_v0  ;;  %64 = vst [vmem:[#allocation3 + $0x20] sm:$0x3] %v10734_v0  ;;  %v8482_v9 = vld [vmem:[%s12985_s0 + $0x10] sm:$0xff]  ;;  %258 = vmatprep.subr.bf16.mxu0 %v10238_v6  ;;  %670 = vmatprep.subr.bf16.mxu1 %v10238_v6  ;;  %s10739_s21 = smov 55  }
  0x19   :  { %67 = vst [vmem:[#allocation3 + $0x30] sm:$0xff] %v10734_v0  ;;  %68 = vst [vmem:[#allocation3 + $0x38] sm:$0xff] %v10734_v0  ;;  %v8492_v10 = vld [vmem:[%s12985_s0 + $0x70] sm:$0xff]  ;;  %259 = vmatpush1.bf16.msra.mxu0 %v10240_v7  ;;  %v10243_v11 = vld [vmem:[#allocation6 + $0x10] ss:$8 sps:$4 sm:$0xff]   ;;  %671 = vmatpush1.bf16.msra.mxu1 %v10240_v7  ;;  %vm200_vm1 = vcmask 1041409  }
  0x1a   :  { %70 = vst [vmem:[#allocation3 + $0x48] sm:$0x3] %v10734_v0  ;;  %71 = vst [vmem:[#allocation3 + $0x50] sm:$0x3] %v10734_v0  ;;  %116 = vrot.lane.b32.xlu0 %v8484_v4, %s10737_s15  ;;  %142 = vrot.lane.b32.xlu1 %v8488_v5, %s10738_s16  ;;  %v10244_v12 = vld [vmem:[#allocation6 + $0x24] ss:$8 sps:$4 sm:$0xff]  }
  0x1b   :  { %73 = vst [vmem:[#allocation4] sm:$0x3f] %v10734_v0  ;;  %76 = vst [vmem:[#allocation4 + $0x10] sm:$0x3f] %v10734_v0  ;;  %260 = vmatprep.subr.bf16.mxu0 %v10241_v8  ;;  %672 = vmatprep.subr.bf16.mxu1 %v10241_v8  ;;  %v8486_v13 = vld [vmem:[%s12985_s0 + $0x20] sm:$0xff]  ;;  %v8490_v14 = vld [vmem:[%s12985_s0 + $0x30] sm:$0xff] }
  0x1c   :  { %v183_v16 = vld [vmem:[#allocation2 + $0x18] sm:$0x1]  ;;  %v10246_v17 = vld [vmem:[#allocation6 + $0x20] ss:$8 sps:$4 sm:$0xff]   ;;  %v192_v20 = vld [vmem:[#allocation6 + $0x30] sm:$0xff]  ;;  %vm251_vm2 = vcmask 1043456  }
  0x1d   :  { %v182_v15 = vld [vmem:[#allocation2] sm:$0x1]  ;;  %261 = vmatpush1.bf16.msra.mxu0 %v10243_v11  ;;  %v185_v19 = vpack.c.bf16 %v183_v16, %v183_v16  ;;  %673 = vmatpush1.bf16.msra.mxu1 %v10243_v11  ;;  %v193_v21 = vld [vmem:[#allocation6 + $0x38] sm:$0xff]  ;;  %v194_v23 = vld [vmem:[#allocation6 + $0x40] sm:$0xff]  ;;  %vm54_vm3 = vcmask 582656   ;;  %vm98_vm4 = vcmask 138248  }
  0x1e   :  { %112 = vrot.lane.b32.xlu0 %v8482_v9, %s10737_s15  ;;  %168 = vrot.lane.b32.xlu1 %v8492_v10, %s10739_s21  ;;  %v184_v18 = vpack.c.bf16 %v182_v15, %v182_v15  ;;  %v10247_v22 = vld [vmem:[#allocation6 + $0x34] ss:$8 sps:$4 sm:$0xff]   ;;  %v8485_v26 = vld [vmem:[%s12985_s0 + $0x58] sm:$0xff]  ;;  %v10873_v27 = vcombine.low %v192_v20, %v193_v21  ;;  %v10875_v30 = vcombine.high %v194_v23, %v194_v23  ;;  %v10912_v43 = vld [vmem:[#allocation6 + $0x58] ss:$8 sps:$4 sm:$0xff]   ;;  %vm124_vm5 = vcmask 285848  }
  0x1f   :  { %262 = vmatprep.subr.bf16.mxu0 %v10244_v12  ;;  %674 = vmatprep.subr.bf16.mxu1 %v10244_v12  ;;  %v198_v24 = vunpack.c.l.b16 %v185_v19  ;;  %v81_v25 = vld [vmem:[%s12985_s0 + $0x48] sm:$0xff]  ;;  %v8502_v31 = vcombine.low %v194_v23, %v194_v23  ;;  %v10895_v37 = vld [vmem:[#allocation6 + $0x48] ss:$8 sps:$4 sm:$0xff]   ;;  %58 = vst.msk [vmem:[#allocation2 + $0x28] sm:$0x3] %vm54_vm3, %v10734_v0  ;;  %vm150_vm6 = vcmask 433448  }
  0x20   :  { %v197_v28 = vunpack.c.l.b16 %v184_v18  ;;  %v79_v32 = vld [vmem:[%s12985_s0 + $0x8] sm:$0xff]  ;;  %v8483_v38 = vld [vmem:[%s12985_s0 + $0x18] sm:$0xff]  ;;  %55 = vst.msk [vmem:[#allocation2 + $0x10] sm:$0x3] %vm54_vm3, %v10734_v0  ;;  %vm176_vm7 = vcmask 581048   ;;  %vm61_vm8 = vcmask 523264  }
  0x21   :  { %263 = vmatpush1.bf16.msra.mxu0 %v10246_v17  ;;  %v199_v29 = vrot.slane %v198_v24, 7  ;;  %675 = vmatpush1.bf16.msra.mxu1 %v10246_v17  ;;  %v8489_v33 = vld [vmem:[%s12985_s0 + $0x68] sm:$0xff]  ;;  %v10891_v36 = vsel %vm251_vm2, %v8502_v31, 0  ;;  %v8493_v39 = vld [vmem:[%s12985_s0 + $0x78] sm:$0xff]  ;;  %vm10740_vm9 = vmmov 0   ;;  %s10742_s26 = smov 32  }
  0x22   :  { %138 = vrot.lane.b32.xlu0 %v8486_v13, %s10738_s16  ;;  %164 = vrot.lane.b32.xlu1 %v8490_v14, %s10739_s21  ;;  %v10252_v34 = vld [vmem:[#allocation6 + $0x4c] ss:$8 sps:$4 sm:$0xff]   ;;  %v10905_v41 = vld [vmem:[#allocation6 + $0x5c] ss:$8 sps:$4 sm:$0xff]   ;;  %v10925_v48 = vld [vmem:[#allocation6 + $0x68] ss:$8 sps:$4 sm:$0xff]  }
  0x23   :  { %264 = vmatprep.subr.bf16.mxu0 %v10247_v22  ;;  %676 = vmatprep.subr.bf16.mxu1 %v10247_v22  ;;  %v201_v35 = vsel %vm200_vm1, %v199_v29, %v197_v28  ;;  %v8487_v42 = vld [vmem:[%s12985_s0 + $0x28] sm:$0xff]  ;;  %v8491_v44 = vld [vmem:[%s12985_s0 + $0x38] sm:$0xff]  ;;  %vm581_vm12 = vcmask 261120   ;;  %vm65_vm14 = vcmask 517120   ;;  %vm74_vm15 = vcmask 521216   ;;  %s10744_s0 = smov 64  }
  0x24   :  { %v202_v40 = vpack.c.b16 %v201_v35, %v201_v35  ;;  %v325_v45 = vld [vmem:[#allocation6 + $0x88] sm:$0xff]  ;;  %v10929_v49 = vld [vmem:[#allocation6 + $0x7c] ss:$8 sps:$4 sm:$0xff]   ;;  %v10936_v51 = vld [vmem:[#allocation6 + $0x78] ss:$8 sps:$4 sm:$0xff]   ;;  %vm8446_vm3 = vcmask 58368  }
  0x25   :  { %265 = vmatpush1.bf16.msra.mxu0 %v10873_v27  ;;  %677 = vmatpush1.bf16.msra.mxu1 %v10873_v27  ;;  %v10920_v46 = vld [vmem:[#allocation6 + $0x6c] ss:$8 sps:$4 sm:$0xff]   ;;  %v8514_v47 = vcombine.low %v325_v45, %v325_v45  ;;  %v10940_v52 = vcombine.high %v325_v45, %v325_v45  ;;  %v10963_v19 = vld [vmem:[#allocation6 + $0x90] ss:$8 sps:$4 sm:$0xff]  }
  0x26   :  { %92 = vrot.lane.b32.xlu0 %v81_v25, %s10736_s30  ;;  %118 = vrot.lane.b32.xlu1 %v8485_v26, %s10737_s15  ;;  %v10942_v53 = vld [vmem:[#allocation6 + $0x94] ss:$8 sps:$4 sm:$0xff]   ;;  %v10969_v22 = vld [vmem:[#allocation6 + $0xa4] ss:$8 sps:$4 sm:$0xff]   ;;  %v10971_v25 = vld [vmem:[#allocation6 + $0xa0] ss:$8 sps:$4 sm:$0xff]  }
  0x27   :  { %8504 = vmatprep.subr.msk.bf16.mxu0 %vm251_vm2, %v10875_v30  ;;  %8540 = vmatprep.subr.msk.bf16.mxu1 %vm251_vm2, %v10875_v30  ;;  %v10934_v50 = vsel %vm251_vm2, %v8514_v47, 0  ;;  %v10975_v29 = vld [vmem:[#allocation6 + $0xb4] ss:$8 sps:$4 sm:$0xff]  }
  0x29   :  { %267 = vmatpush1.bf16.msra.mxu0 %v10891_v36  ;;  %679 = vmatpush1.bf16.msra.mxu1 %v10891_v36 }
  0x2a   :  { %88 = vrot.lane.b32.xlu0 %v79_v32, %s10736_s30  ;;  %144 = vrot.lane.b32.xlu1 %v8489_v33, %s10738_s16  ;;  %v10983_v33 = vld [vmem:[#allocation6 + $0xb0] ss:$8 sps:$4 sm:$0xff]  }
  0x2b   :  { %387 = vmatprep.subr.bf16.mxu0 %v10252_v34  ;;  %787 = vmatprep.subr.bf16.mxu1 %v10252_v34 }
  0x2c   :  { %8505 = vmatmul.mubr.msk.bf16.vlgmr.msra.gmra.mrb[0].mxu0 %vm51_vm0, %v202_v40  ;;  %v443_v40 = vld [vmem:[#allocation6 + $0xd0] sm:$0xff] }
  0x2d   :  { %388 = vmatpush1.bf16.msra.mxu0 %v10895_v37  ;;  %419 = vmatprep.mubr.bf16.mxu0 %v10735_v1 }
  0x2e   :  { %114 = vrot.lane.b32.xlu0 %v8483_v38, %s10737_s15  ;;  %170 = vrot.lane.b32.xlu1 %v8493_v39, %s10739_s21  ;;  %v10987_v38 = vld [vmem:[#allocation6 + $0xc4] ss:$8 sps:$4 sm:$0xff]  }
  0x2f   :  { %389 = vmatprep.subr.bf16.mxu0 %v10905_v41 }
  0x31   :  { %390 = vmatpush1.bf16.msra.mxu0 %v10912_v43 }
  0x32   :  { %140 = vrot.lane.b32.xlu0 %v8487_v42, %s10738_s16  ;;  %166 = vrot.lane.b32.xlu1 %v8491_v44, %s10739_s21  ;;  %v10995_v44 = vld [vmem:[#allocation6 + $0xc0] ss:$8 sps:$4 sm:$0xff]  }
  0x33   :  { %391 = vmatprep.subr.bf16.mxu0 %v10920_v46 }
  0x35   :  { %392 = vmatpush1.bf16.msra.mxu0 %v10925_v48 }
  0x36   :  { %393 = vmatprep.subr.bf16.mxu0 %v10929_v49 }
  0x39   :  { %394 = vmatpush1.bf16.msra.mxu0 %v10936_v51 }
  0x3a   :  { %8516 = vmatprep.subr.msk.bf16.mxu0 %vm251_vm2, %v10940_v52 }
  0x3d   :  { %396 = vmatpush1.bf16.msra.mxu0 %v10934_v50 }
  0x3e   :  { %505 = vmatprep.subr.bf16.mxu0 %v10942_v53 }
  0x88   :  { %v91_v54 = vpop.permute.xlu0 %90  ;;  %v87_v55 = vpop.permute.xlu1 %86 }
  0x89   :  { %101 = vst.msk [vmem:[#allocation2 + $0x19] sm:$0xff] %vm98_vm4, %v91_v54  ;;  %99 = vst.msk [vmem:[#allocation2 + $0x1] sm:$0xff] %vm98_vm4, %v87_v55  ;;  %v8526_v54 = vcombine.low %v443_v40, %v443_v40 }
  0x8c   :  { %v117_v56 = vpop.permute.xlu0 %116  ;;  %v143_v57 = vpop.permute.xlu1 %142 }
  0x8d   :  { %127 = vst.msk [vmem:[#allocation2 + $0x19] sm:$0xff] %vm124_vm5, %v117_v56 }
  0x8e   :  { %153 = vst.msk [vmem:[#allocation2 + $0x19] sm:$0xff] %vm150_vm6, %v143_v57 }
  0x90   :  { %v113_v58 = vpop.permute.xlu0 %112  ;;  %v169_v59 = vpop.permute.xlu1 %168 }
  0x91   :  { %125 = vst.msk [vmem:[#allocation2 + $0x1] sm:$0xff] %vm124_vm5, %v113_v58 }
  0x92   :  { %179 = vst.msk [vmem:[#allocation2 + $0x19] sm:$0xff] %vm176_vm7, %v169_v59 }
  0x94   :  { %v139_v60 = vpop.permute.xlu0 %138  ;;  %v165_v61 = vpop.permute.xlu1 %164 }
  0x95   :  { %151 = vst.msk [vmem:[#allocation2 + $0x1] sm:$0xff] %vm150_vm6, %v139_v60  ;;  %v11015_v60 = vld [vmem:[#allocation6 + $0x4] ss:$8 sps:$4 sm:$0xff]  }
  0x96   :  { %177 = vst.msk [vmem:[#allocation2 + $0x1] sm:$0xff] %vm176_vm7, %v165_v61  ;;  %v11021_v61 = vld [vmem:[#allocation6] ss:$8 sps:$4 sm:$0xff]  }
  0x98   :  { %v93_v0 = vpop.permute.xlu0 %92  ;;  %v119_v2 = vpop.permute.xlu1 %118 }
  0x99   :  { %v313_v62 = vld [vmem:[#allocation2 + $0x19] sm:$0x1]  ;;  %v597_v63 = vld [vmem:[#allocation2 + $0x1a] sm:$0x1]  ;;  %102 = vst.msk [vmem:[#allocation2 + $0x21] sm:$0xff] %vm98_vm4, %v93_v0 }
  0x9a   :  { %v315_v3 = vpack.c.bf16 %v313_v62, %v313_v62  ;;  %v599_v4 = vpack.c.bf16 %v597_v63, %v597_v63  ;;  %128 = vst.msk [vmem:[#allocation2 + $0x21] sm:$0xff] %vm124_vm5, %v119_v2  ;;  %v431_v31 = vld [vmem:[#allocation2 + $0x1a] sm:$0x1]  ;;  %v714_v32 = vld [vmem:[#allocation2 + $0x1b] sm:$0x1] }
  0x9b   :  { %v716_v39 = vpack.c.bf16 %v714_v32, %v714_v32  ;;  %v11025_v62 = vld [vmem:[#allocation6 + $0x14] ss:$8 sps:$4 sm:$0xff]   ;;  %v991_v63 = vld [vmem:[#allocation2 + $0x1c] sm:$0x1]  ;;  %v1108_v0 = vld [vmem:[#allocation2 + $0x1d] sm:$0x1] }
  0x9c   :  { %v329_v5 = vunpack.c.l.b16 %v315_v3  ;;  %v612_v6 = vunpack.c.l.b16 %v599_v4  ;;  %v89_v7 = vpop.permute.xlu0 %88  ;;  %v145_v8 = vpop.permute.xlu1 %144  ;;  %v1385_v2 = vld [vmem:[#allocation2 + $0x1e] sm:$0x1] }
  0x9d   :  { %v312_v9 = vld [vmem:[#allocation2 + $0x1] sm:$0x1]  ;;  %v596_v10 = vld [vmem:[#allocation2 + $0x2] sm:$0x1]  ;;  %100 = vst.msk [vmem:[#allocation2 + $0x9] sm:$0xff] %vm98_vm4, %v89_v7  ;;  %v729_v47 = vunpack.c.l.b16 %v716_v39 }
  0x9e   :  { %154 = vst.msk [vmem:[#allocation2 + $0x21] sm:$0xff] %vm150_vm6, %v145_v8  ;;  %v314_v11 = vpack.c.bf16 %v312_v9, %v312_v9  ;;  %v598_v12 = vpack.c.bf16 %v596_v10, %v596_v10  ;;  %v330_v14 = vrot.slane %v329_v5, 7  ;;  %v613_v16 = vrot.slane %v612_v6, 7  ;;  %v430_v34 = vld [vmem:[#allocation2 + $0x2] sm:$0x1]  ;;  %v11030_v5 = vld [vmem:[#allocation6 + $0x40] sm:$0xff] }
  0x9f   :  { %v713_v35 = vld [vmem:[#allocation2 + $0x3] sm:$0x1]  ;;  %v730_v57 = vrot.slane %v729_v47, 7  ;;  %v830_v3 = vld [vmem:[#allocation2 + $0x4] sm:$0x1]  ;;  %v993_v8 = vpack.c.bf16 %v991_v63, %v991_v63  ;;  %v1110_v10 = vpack.c.bf16 %v1108_v0, %v1108_v0 }
  0xa0   :  { %v328_v13 = vunpack.c.l.b16 %v314_v11  ;;  %v611_v15 = vunpack.c.l.b16 %v598_v12  ;;  %v115_v17 = vpop.permute.xlu0 %114  ;;  %v171_v18 = vpop.permute.xlu1 %170  ;;  %v715_v42 = vpack.c.bf16 %v713_v35, %v713_v35  ;;  %v990_v4 = vld [vmem:[#allocation2 + $0x4] sm:$0x1]  ;;  %v10639_v9 = vld [vmem:[#allocation6 + $0x24] ss:$8 sps:$4 sm:$0xff]   ;;  %v1387_v11 = vpack.c.bf16 %v1385_v2, %v1385_v2 }
  0xa1   :  { %126 = vst.msk [vmem:[#allocation2 + $0x9] sm:$0xff] %vm124_vm5, %v115_v17  ;;  %v11033_v6 = vld [vmem:[#allocation6 + $0x10] ss:$8 sps:$4 sm:$0xff]   ;;  %v1225_v12 = vld [vmem:[#allocation2 + $0x1e] sm:$0x1] }
  0xa2   :  { %180 = vst.msk [vmem:[#allocation2 + $0x21] sm:$0xff] %vm176_vm7, %v171_v18  ;;  %v331_v20 = vsel %vm200_vm1, %v330_v14, %v328_v13  ;;  %v614_v21 = vsel %vm200_vm1, %v613_v16, %v611_v15  ;;  %v1502_v13 = vld [vmem:[#allocation2 + $0x1f] sm:$0x1]  ;;  %v832_v14 = vpack.c.bf16 %v830_v3, %v830_v3  ;;  %v992_v15 = vpack.c.bf16 %v990_v4, %v990_v4  ;;  %v10640_v17 = vld [vmem:[#allocation6 + $0x20] ss:$8 sps:$4 sm:$0xff]  }
  0xa3   :  { %v332_v23 = vpack.c.b16 %v331_v20, %v331_v20  ;;  %v615_v24 = vpack.c.b16 %v614_v21, %v614_v21  ;;  %v8646_v16 = vcombine.low %v11030_v5, %v11030_v5  ;;  %v1006_v20 = vunpack.c.l.b16 %v993_v8  ;;  %v10646_v63 = vld [vmem:[#allocation6 + $0x6c] ss:$8 sps:$4 sm:$0xff]   ;;  %v10647_v3 = vld [vmem:[#allocation6 + $0x68] ss:$8 sps:$4 sm:$0xff]   ;;  %v11068_v4 = vld [vmem:[#allocation6 + $0x7c] ss:$8 sps:$4 sm:$0xff]  }
  0xa4   :  { %v141_v26 = vpop.permute.xlu0 %140  ;;  %v167_v28 = vpop.permute.xlu1 %166  ;;  %v1227_v21 = vpack.c.bf16 %v1225_v12, %v1225_v12  ;;  %v1005_v32 = vunpack.c.l.b16 %v992_v15  ;;  %v11071_v8 = vld [vmem:[#allocation6 + $0x78] ss:$8 sps:$4 sm:$0xff]   ;;  %v1501_v12 = vld [vmem:[#allocation2 + $0x7] sm:$0x1] }
  0xa5   :  { %8517 = vmatmul.mubr.msk.bf16.vlgmr.msra.gmra.mrb[0].mxu0 %vm51_vm0, %v332_v23  ;;  %8541 = vmatmul.mubr.msk.bf16.vlgmr.msra.gmra.mrb[0].mxu1 %vm51_vm0, %v615_v24  ;;  %152 = vst.msk [vmem:[#allocation2 + $0x9] sm:$0xff] %vm150_vm6, %v141_v26  ;;  %v1504_v23 = vpack.c.bf16 %v1502_v13, %v1502_v13  ;;  %v10641_v24 = vld [vmem:[#allocation6 + $0x34] ss:$8 sps:$4 sm:$0xff]   ;;  %v1123_v26 = vunpack.c.l.b16 %v1110_v10  ;;  %v1503_v13 = vpack.c.bf16 %v1501_v12, %v1501_v12 }
  0xa6   :  { %506 = vmatpush1.bf16.msra.mxu0 %v10963_v19  ;;  %788 = vmatpush1.bf16.msra.mxu1 %v10895_v37  ;;  %178 = vst.msk [vmem:[#allocation2 + $0x9] sm:$0xff] %vm176_vm7, %v167_v28  ;;  %v433_v37 = vpack.c.bf16 %v431_v31, %v431_v31  ;;  %v1400_v28 = vunpack.c.l.b16 %v1387_v11  ;;  %v845_v31 = vunpack.c.l.b16 %v832_v14  ;;  %v11046_v39 = vunpack.c.l.b16 %v1227_v21  ;;  %v11083_v11 = vld [vmem:[#allocation6 + $0x94] ss:$8 sps:$4 sm:$0xff]  }
  0xa7   :  { %507 = vmatprep.subr.bf16.mxu0 %v10969_v22  ;;  %789 = vmatprep.subr.bf16.mxu1 %v10905_v41  ;;  %v432_v41 = vpack.c.bf16 %v430_v34, %v430_v34  ;;  %v11042_v34 = vsel %vm251_vm2, %v8646_v16, 0  ;;  %v1516_v15 = vunpack.c.l.b16 %v1503_v13 }
  0xa8   :  { %537 = vmatprep.mubr.bf16.mxu0 %v10735_v1  ;;  %819 = vmatprep.mubr.bf16.mxu1 %v10735_v1  ;;  %v447_v45 = vunpack.c.l.b16 %v433_v37  ;;  %v1007_v37 = vrot.slane %v1006_v20, 7 }
  0xa9   :  { %v446_v55 = vunpack.c.l.b16 %v432_v41  ;;  %v1124_v41 = vrot.slane %v1123_v26, 7  ;;  %v1779_v26 = vld [vmem:[#allocation2 + $0x20] sm:$0x1] }
  0xaa   :  { %508 = vmatpush1.bf16.msra.mxu0 %v10971_v25  ;;  %790 = vmatpush1.bf16.msra.mxu1 %v10912_v43  ;;  %v10999_v43 = vcombine.high %v443_v40, %v443_v40  ;;  %v448_v56 = vrot.slane %v447_v45, 7  ;;  %v11048_v40 = vunpack.c.l.b16 %v1504_v23  ;;  %v1008_v47 = vsel %vm200_vm1, %v1007_v37, %v1005_v32  ;;  %v11115_v23 = vld [vmem:[#allocation6 + $0x10] ss:$8 sps:$4 sm:$0xff]   ;;  %v11125_v32 = vld [vmem:[#allocation6 + $0x20] ss:$8 sps:$4 sm:$0xff]  }
  0xab   :  { %509 = vmatprep.subr.bf16.mxu0 %v10975_v29  ;;  %791 = vmatprep.subr.bf16.mxu1 %v10920_v46  ;;  %v728_v46 = vunpack.c.l.b16 %v715_v42  ;;  %v1401_v42 = vrot.slane %v1400_v28, 7  ;;  %v11119_v28 = vld [vmem:[#allocation6 + $0x24] ss:$8 sps:$4 sm:$0xff]  }
  0xad   :  { %v731_v58 = vsel %vm200_vm1, %v730_v57, %v728_v46  ;;  %v10642_v57 = vld [vmem:[#allocation6 + $0x4c] ss:$8 sps:$4 sm:$0xff]  }
  0xae   :  { %510 = vmatpush1.bf16.msra.mxu0 %v10983_v33  ;;  %792 = vmatpush1.bf16.msra.mxu1 %v10925_v48  ;;  %v11008_v48 = vsel %vm251_vm2, %v8526_v54, 0  ;;  %v732_v59 = vpack.c.b16 %v731_v58, %v731_v58  ;;  %v1241_v54 = vrot.slane %v11046_v39, 7  ;;  %v10644_v58 = vld [vmem:[#allocation6 + $0x5c] ss:$8 sps:$4 sm:$0xff]   ;;  %v1781_v39 = vpack.c.bf16 %v1779_v26, %v1779_v26 }
  0xaf   :  { %511 = vmatprep.subr.bf16.mxu0 %v10987_v38  ;;  %793 = vmatprep.subr.bf16.mxu1 %v10929_v49  ;;  %v449_v49 = vsel %vm200_vm1, %v448_v56, %v446_v55  ;;  %v1518_v55 = vrot.slane %v11048_v40, 7  ;;  %v1009_v56 = vpack.c.b16 %v1008_v47, %v1008_v47 }
  0xb2   :  { %512 = vmatpush1.bf16.msra.mxu0 %v10995_v44  ;;  %794 = vmatpush1.bf16.msra.mxu1 %v10936_v51  ;;  %v450_v51 = vpack.c.b16 %v449_v49, %v449_v49  ;;  %v10643_v49 = vld [vmem:[#allocation6 + $0x48] ss:$8 sps:$4 sm:$0xff]  }
  0xb3   :  { %8528 = vmatprep.subr.msk.bf16.mxu0 %vm251_vm2, %v10999_v43  ;;  %8552 = vmatprep.subr.msk.bf16.mxu1 %vm251_vm2, %v10940_v52 }
  0xb6   :  { %514 = vmatpush1.bf16.msra.mxu0 %v11008_v48  ;;  %796 = vmatpush1.bf16.msra.mxu1 %v10934_v50 }
  0xb7   :  { %904 = vmatprep.subr.bf16.mxu1 %v10942_v53  ;;  %1064 = vmatprep.subr.bf16.mxu0 %v11015_v60  ;;  %v831_v53 = vld [vmem:[#allocation2 + $0x1c] sm:$0x1] }
  0xb8   :  { %v833_v7 = vpack.c.bf16 %v831_v53, %v831_v53  ;;  %v10645_v53 = vld [vmem:[#allocation6 + $0x58] ss:$8 sps:$4 sm:$0xff]  }
  0xb9   :  { %8529 = vmatmul.mubr.msk.bf16.vlgmr.msra.gmra.mrb[0].mxu0 %vm51_vm0, %v450_v51  ;;  %8553 = vmatmul.mubr.msk.bf16.vlgmr.msra.gmra.mrb[0].mxu1 %vm51_vm0, %v732_v59  ;;  %v1107_v51 = vld [vmem:[#allocation2 + $0x5] sm:$0x1]  ;;  %v1384_v59 = vld [vmem:[#allocation2 + $0x6] sm:$0x1] }
  0xba   :  { %905 = vmatpush1.bf16.msra.mxu1 %v10963_v19  ;;  %1065 = vmatpush1.bf16.msra.mxu0 %v11021_v61  ;;  %v846_v18 = vunpack.c.l.b16 %v833_v7  ;;  %v1109_v0 = vpack.c.bf16 %v1107_v51, %v1107_v51  ;;  %v1386_v2 = vpack.c.bf16 %v1384_v59, %v1384_v59  ;;  %v11167_v51 = vld [vmem:[#allocation6 + $0x58] ss:$8 sps:$4 sm:$0xff]   ;;  %v11171_v59 = vld [vmem:[#allocation6 + $0x6c] ss:$8 sps:$4 sm:$0xff]  }
  0xbb   :  { %906 = vmatprep.subr.bf16.mxu1 %v10969_v22  ;;  %1066 = vmatprep.subr.bf16.mxu0 %v11025_v62 }
  0xbc   :  { %936 = vmatprep.mubr.bf16.mxu1 %v10735_v1  ;;  %1096 = vmatprep.mubr.bf16.mxu0 %v10735_v1  ;;  %v847_v35 = vrot.slane %v846_v18, 7  ;;  %v1399_v7 = vunpack.c.l.b16 %v1386_v2  ;;  %v11109_v18 = vld [vmem:[#allocation6 + $0x14] ss:$8 sps:$4 sm:$0xff]  }
  0xbe   :  { %907 = vmatpush1.bf16.msra.mxu1 %v10971_v25  ;;  %1067 = vmatpush1.bf16.msra.mxu0 %v11033_v6  ;;  %v848_v45 = vsel %vm200_vm1, %v847_v35, %v845_v31  ;;  %v1618_v31 = vld [vmem:[#allocation2 + $0x8] sm:$0x1] }
  0xbf   :  { %908 = vmatprep.subr.bf16.mxu1 %v10975_v29  ;;  %1068 = vmatprep.subr.bf16.mxu0 %v10639_v9  ;;  %v849_v46 = vpack.c.b16 %v848_v45, %v848_v45  ;;  %v11129_v35 = vld [vmem:[#allocation6 + $0x34] ss:$8 sps:$4 sm:$0xff]  }
  0xc2   :  { %909 = vmatpush1.bf16.msra.mxu1 %v10983_v33  ;;  %1069 = vmatpush1.bf16.msra.mxu0 %v10640_v17 }
  0xc3   :  { %910 = vmatprep.subr.bf16.mxu1 %v10987_v38  ;;  %1070 = vmatprep.subr.bf16.mxu0 %v10641_v24 }
  0xc6   :  { %911 = vmatpush1.bf16.msra.mxu1 %v10995_v44  ;;  %1071 = vmatpush1.bf16.msra.mxu0 %v10873_v27 }
  0xc7   :  { %8564 = vmatprep.subr.msk.bf16.mxu1 %vm251_vm2, %v10999_v43  ;;  %8576 = vmatprep.subr.msk.bf16.mxu0 %vm251_vm2, %v10875_v30 }
  0xca   :  { %913 = vmatpush1.bf16.msra.mxu1 %v11008_v48  ;;  %1073 = vmatpush1.bf16.msra.mxu0 %v10891_v36 }
  0xcb   :  { %1181 = vmatprep.subr.bf16.mxu0 %v10642_v57  ;;  %1458 = vmatprep.subr.bf16.mxu1 %v11015_v60 }
  0xcd   :  { %8565 = vmatmul.mubr.msk.bf16.vlgmr.msra.gmra.mrb[0].mxu1 %vm51_vm0, %v849_v46  ;;  %8577 = vmatmul.mubr.msk.bf16.vlgmr.msra.gmra.mrb[4].mxu0 %vm51_vm0, %v1009_v56  ;;  %v11159_v46 = vld [vmem:[#allocation6] ss:$8 sps:$4 sm:$0xff]   ;;  %v11161_v56 = vld [vmem:[#allocation6 + $0x5c] ss:$8 sps:$4 sm:$0xff]  }
  0xce   :  { %1182 = vmatpush1.bf16.msra.mxu0 %v10643_v49  ;;  %1459 = vmatpush1.bf16.msra.mxu1 %v11021_v61 }
  0xcf   :  { %1183 = vmatprep.subr.bf16.mxu0 %v10644_v58  ;;  %1460 = vmatprep.subr.bf16.mxu1 %v11025_v62  ;;  %v1122_v62 = vunpack.c.l.b16 %v1109_v0 }
  0xd0   :  { %1213 = vmatprep.mubr.bf16.mxu0 %v10735_v1  ;;  %1490 = vmatprep.mubr.bf16.mxu1 %v10735_v1 }
  0xd2   :  { %1184 = vmatpush1.bf16.msra.mxu0 %v10645_v53  ;;  %1461 = vmatpush1.bf16.msra.mxu1 %v11033_v6  ;;  %v1125_v6 = vsel %vm200_vm1, %v1124_v41, %v1122_v62  ;;  %v1794_v41 = vunpack.c.l.b16 %v1781_v39  ;;  %v10654_v39 = vld [vmem:[#allocation6 + $0xb4] ss:$8 sps:$4 sm:$0xff]  }
  0xd3   :  { %1185 = vmatprep.subr.bf16.mxu0 %v10646_v63  ;;  %1462 = vmatprep.subr.bf16.mxu1 %v10639_v9  ;;  %v1402_v9 = vsel %vm200_vm1, %v1401_v42, %v1399_v7  ;;  %v1126_v10 = vpack.c.b16 %v1125_v6, %v1125_v6 }
  0xd4   :  { %v1795_v47 = vrot.slane %v1794_v41, 7 }
  0xd6   :  { %1186 = vmatpush1.bf16.msra.mxu0 %v10647_v3  ;;  %1463 = vmatpush1.bf16.msra.mxu1 %v10640_v17  ;;  %v1519_v17 = vsel %vm200_vm1, %v1518_v55, %v1516_v15  ;;  %v11157_v55 = vld [vmem:[#allocation6 + $0x48] ss:$8 sps:$4 sm:$0xff]  }
  0xd7   :  { %1187 = vmatprep.subr.bf16.mxu0 %v11068_v4  ;;  %1464 = vmatprep.subr.bf16.mxu1 %v10641_v24  ;;  %v1520_v21 = vpack.c.b16 %v1519_v17, %v1519_v17  ;;  %v1619_v24 = vld [vmem:[#allocation2 + $0x20] sm:$0x1]  ;;  %v10651_v17 = vld [vmem:[#allocation6 + $0x90] ss:$8 sps:$4 sm:$0xff]  }
  0xd8   :  { %v1621_v37 = vpack.c.bf16 %v1619_v24, %v1619_v24  ;;  %v10652_v24 = vld [vmem:[#allocation6 + $0xa4] ss:$8 sps:$4 sm:$0xff]  }
  0xda   :  { %1188 = vmatpush1.bf16.msra.mxu0 %v11071_v8  ;;  %1465 = vmatpush1.bf16.msra.mxu1 %v10873_v27  ;;  %v1403_v27 = vpack.c.b16 %v1402_v9, %v1402_v9  ;;  %v1634_v40 = vunpack.c.l.b16 %v1621_v37 }
  0xdb   :  { %8588 = vmatprep.subr.msk.bf16.mxu0 %vm251_vm2, %v10940_v52  ;;  %8612 = vmatprep.subr.msk.bf16.mxu1 %vm251_vm2, %v10875_v30  ;;  %v1224_v30 = vld [vmem:[#allocation2 + $0x6] sm:$0x1] }
  0xdc   :  { %v1635_v45 = vrot.slane %v1634_v40, 7  ;;  %v11212_v40 = vld [vmem:[#allocation6 + $0x78] ss:$8 sps:$4 sm:$0xff]  }
  0xde   :  { %1190 = vmatpush1.bf16.msra.mxu0 %v10934_v50  ;;  %1467 = vmatpush1.bf16.msra.mxu1 %v10891_v36  ;;  %v1226_v36 = vpack.c.bf16 %v1224_v30, %v1224_v30 }
  0xdf   :  { %1298 = vmatprep.subr.bf16.mxu0 %v11083_v11  ;;  %1575 = vmatprep.subr.bf16.mxu1 %v10642_v57  ;;  %v2173_v57 = vld [vmem:[#allocation2 + $0x22] sm:$0x1] }
  0xe0   :  { %v1239_v14 = vunpack.c.l.b16 %v1226_v36  ;;  %v2175_v2 = vpack.c.bf16 %v2173_v57, %v2173_v57 }
  0xe1   :  { %8589 = vmatmul.mubr.msk.bf16.vlgmr.msra.gmra.mrb[4].mxu0 %vm51_vm0, %v1126_v10  ;;  %8613 = vmatmul.mubr.msk.bf16.vlgmr.msra.gmra.mrb[4].mxu1 %vm51_vm0, %v1403_v27 }
  0xe2   :  { %1299 = vmatpush1.bf16.msra.mxu0 %v10963_v19  ;;  %1576 = vmatpush1.bf16.msra.mxu1 %v10643_v49  ;;  %v1242_v16 = vsel %vm200_vm1, %v1241_v54, %v1239_v14  ;;  %v11145_v54 = vld [vmem:[#allocation6 + $0x4c] ss:$8 sps:$4 sm:$0xff]   ;;  %v2188_v9 = vunpack.c.l.b16 %v2175_v2  ;;  %v11231_v2 = vld [vmem:[#allocation6 + $0x90] ss:$8 sps:$4 sm:$0xff]  }
  0xe3   :  { %1300 = vmatprep.subr.bf16.mxu0 %v10969_v22  ;;  %1577 = vmatprep.subr.bf16.mxu1 %v10644_v58  ;;  %v1243_v20 = vpack.c.b16 %v1242_v16, %v1242_v16  ;;  %v2013_v16 = vld [vmem:[#allocation2 + $0x22] sm:$0x1] }
  0xe4   :  { %1330 = vmatprep.mubr.bf16.mxu0 %v10735_v1  ;;  %1607 = vmatprep.mubr.bf16.mxu1 %v10735_v1  ;;  %v2189_v12 = vrot.slane %v2188_v9, 7 }
  0xe6   :  { %1301 = vmatpush1.bf16.msra.mxu0 %v10971_v25  ;;  %1578 = vmatpush1.bf16.msra.mxu1 %v10645_v53  ;;  %v1895_v53 = vld [vmem:[#allocation2 + $0x9] sm:$0x1] }
  0xe7   :  { %1302 = vmatprep.subr.bf16.mxu0 %v10975_v29  ;;  %1579 = vmatprep.subr.bf16.mxu1 %v10646_v63  ;;  %v2172_v63 = vld [vmem:[#allocation2 + $0xa] sm:$0x1]  ;;  %v1897_v62 = vpack.c.bf16 %v1895_v53, %v1895_v53  ;;  %v11227_v53 = vld [vmem:[#allocation6 + $0x94] ss:$8 sps:$4 sm:$0xff]  }
  0xe8   :  { %v2174_v6 = vpack.c.bf16 %v2172_v63, %v2172_v63 }
  0xe9   :  { %v1910_v10 = vunpack.c.l.b16 %v1897_v62  ;;  %v2407_v62 = vld [vmem:[#allocation2 + $0x24] sm:$0x1] }
  0xea   :  { %1303 = vmatpush1.bf16.msra.mxu0 %v10983_v33  ;;  %1580 = vmatpush1.bf16.msra.mxu1 %v10647_v3  ;;  %v11177_v3 = vld [vmem:[#allocation6 + $0x68] ss:$8 sps:$4 sm:$0xff]   ;;  %v2187_v30 = vunpack.c.l.b16 %v2174_v6  ;;  %v11245_v6 = vld [vmem:[#allocation6 + $0xb4] ss:$8 sps:$4 sm:$0xff]   ;;  %v2409_v9 = vpack.c.bf16 %v2407_v62, %v2407_v62 }
  0xeb   :  { %1304 = vmatprep.subr.bf16.mxu0 %v10987_v38  ;;  %1581 = vmatprep.subr.bf16.mxu1 %v11068_v4 }
  0xec   :  { %v2190_v13 = vsel %vm200_vm1, %v2189_v12, %v2187_v30  ;;  %v2566_v30 = vld [vmem:[#allocation2 + $0xc] sm:$0x1] }
  0xed   :  { %v2191_v15 = vpack.c.b16 %v2190_v13, %v2190_v13  ;;  %v11251_v12 = vld [vmem:[#allocation6 + $0xb0] ss:$8 sps:$4 sm:$0xff]  }
  0xee   :  { %1305 = vmatpush1.bf16.msra.mxu0 %v10995_v44  ;;  %1582 = vmatpush1.bf16.msra.mxu1 %v11071_v8  ;;  %v2418_v13 = vld [vmem:[#allocation6 + $0xd0] sm:$0xff] }
  0xef   :  { %8600 = vmatprep.subr.msk.bf16.mxu0 %vm251_vm2, %v10999_v43  ;;  %8624 = vmatprep.subr.msk.bf16.mxu1 %vm251_vm2, %v10940_v52 }
  0xf2   :  { %1307 = vmatpush1.bf16.msra.mxu0 %v11008_v48  ;;  %1584 = vmatpush1.bf16.msra.mxu1 %v10934_v50 }
  0xf3   :  { %1692 = vmatprep.subr.bf16.mxu1 %v11083_v11  ;;  %1852 = vmatprep.subr.bf16.mxu0 %v11015_v60  ;;  %v1778_v60 = vld [vmem:[#allocation2 + $0x8] sm:$0x1] }
  0xf5   :  { %8601 = vmatmul.mubr.msk.bf16.vlgmr.msra.gmra.mrb[4].mxu0 %vm51_vm0, %v1243_v20  ;;  %8625 = vmatmul.mubr.msk.bf16.vlgmr.msra.gmra.mrb[4].mxu1 %vm51_vm0, %v1520_v21  ;;  %v2015_v20 = vpack.c.bf16 %v2013_v16, %v2013_v16  ;;  %v2568_v16 = vpack.c.bf16 %v2566_v30, %v2566_v30 }
  0xf6   :  { %1693 = vmatpush1.bf16.msra.mxu1 %v10963_v19  ;;  %1853 = vmatpush1.bf16.msra.mxu0 %v11021_v61  ;;  %v11135_v19 = vld [vmem:[#allocation6 + $0x30] ss:$8 sps:$4 sm:$0xff]   ;;  %v1780_v61 = vpack.c.bf16 %v1778_v60, %v1778_v60 }
  0xf7   :  { %1694 = vmatprep.subr.bf16.mxu1 %v10969_v22  ;;  %1854 = vmatprep.subr.bf16.mxu0 %v11109_v18  ;;  %v1620_v22 = vpack.c.bf16 %v1618_v31, %v1618_v31  ;;  %v2028_v31 = vunpack.c.l.b16 %v2015_v20 }
  0xf8   :  { %1724 = vmatprep.mubr.bf16.mxu1 %v10735_v1  ;;  %1884 = vmatprep.mubr.bf16.mxu0 %v10735_v1  ;;  %v1793_v42 = vunpack.c.l.b16 %v1780_v61  ;;  %v10655_v61 = vld [vmem:[#allocation6 + $0xb0] ss:$8 sps:$4 sm:$0xff]  }
  0xfa   :  { %1695 = vmatpush1.bf16.msra.mxu1 %v10971_v25  ;;  %1855 = vmatpush1.bf16.msra.mxu0 %v11115_v23  ;;  %v11143_v25 = vcombine.high %v11030_v5, %v11030_v5  ;;  %v1796_v5 = vsel %vm200_vm1, %v1795_v47, %v1793_v42  ;;  %v10656_v47 = vld [vmem:[#allocation6 + $0xc4] ss:$8 sps:$4 sm:$0xff]  }
  0xfb   :  { %1696 = vmatprep.subr.bf16.mxu1 %v10975_v29  ;;  %1856 = vmatprep.subr.bf16.mxu0 %v11119_v28  ;;  %v1633_v29 = vunpack.c.l.b16 %v1620_v22  ;;  %v1797_v58 = vpack.c.b16 %v1796_v5, %v1796_v5  ;;  %v2301_v22 = vld [vmem:[#allocation6 + $0x88] sm:$0xff] }
  0xfc   :  { %v8694_v5 = vcombine.low %v2301_v22, %v2301_v22 }
  0xfe   :  { %1697 = vmatpush1.bf16.msra.mxu1 %v10983_v33  ;;  %1857 = vmatpush1.bf16.msra.mxu0 %v11125_v32  ;;  %v11153_v33 = vld [vmem:[#allocation6 + $0x4] ss:$8 sps:$4 sm:$0xff]  }
  0xff   :  { %1698 = vmatprep.subr.bf16.mxu1 %v10987_v38  ;;  %1858 = vmatprep.subr.bf16.mxu0 %v11129_v35  ;;  %v1636_v38 = vsel %vm200_vm1, %v1635_v45, %v1633_v29  ;;  %v2029_v29 = vrot.slane %v2028_v31, 7 }
 0x100   :  { %v1637_v49 = vpack.c.b16 %v1636_v38, %v1636_v38  ;;  %v11215_v38 = vcombine.high %v2301_v22, %v2301_v22  ;;  %v2684_v22 = vld [vmem:[#allocation2 + $0x25] sm:$0x1] }
 0x102   :  { %1699 = vmatpush1.bf16.msra.mxu1 %v10995_v44  ;;  %1859 = vmatpush1.bf16.msra.mxu0 %v11135_v19  ;;  %v1896_v44 = vld [vmem:[#allocation2 + $0x21] sm:$0x1] }
 0x103   :  { %8636 = vmatprep.subr.msk.bf16.mxu1 %vm251_vm2, %v10999_v43  ;;  %8648 = vmatprep.subr.msk.bf16.mxu0 %vm251_vm2, %v11143_v25  ;;  %v1898_v0 = vpack.c.bf16 %v1896_v44, %v1896_v44  ;;  %v10657_v44 = vld [vmem:[#allocation6 + $0xc0] ss:$8 sps:$4 sm:$0xff]  }
 0x105   :  { %v1911_v7 = vunpack.c.l.b16 %v1898_v0 }
 0x106   :  { %1701 = vmatpush1.bf16.msra.mxu1 %v11008_v48  ;;  %1861 = vmatpush1.bf16.msra.mxu0 %v11042_v34 }
 0x107   :  { %1969 = vmatprep.subr.bf16.mxu0 %v11145_v54  ;;  %2246 = vmatprep.subr.bf16.mxu1 %v11153_v33  ;;  %v1912_v27 = vrot.slane %v1911_v7, 7  ;;  %v2567_v7 = vld [vmem:[#allocation2 + $0x24] sm:$0x1] }
 0x109   :  { %8637 = vmatmul.mubr.msk.bf16.vlgmr.msra.gmra.mrb[4].mxu1 %vm51_vm0, %v1637_v49  ;;  %8649 = vmatmul.mubr.msk.bf16.vlgmr.msra.gmra.mrb[8].mxu0 %vm51_vm0, %v1797_v58  ;;  %v1913_v36 = vsel %vm200_vm1, %v1912_v27, %v1910_v10  ;;  %v11225_v58 = vsel %vm251_vm2, %v8694_v5, 0  ;;  %v2569_v10 = vpack.c.bf16 %v2567_v7, %v2567_v7  ;;  %v2406_v27 = vld [vmem:[#allocation2 + $0xc] sm:$0x1] }
 0x10a   :  { %1970 = vmatpush1.bf16.msra.mxu0 %v11157_v55  ;;  %2247 = vmatpush1.bf16.msra.mxu1 %v11159_v46  ;;  %v1914_v14 = vpack.c.b16 %v1913_v36, %v1913_v36  ;;  %v11255_v36 = vld [vmem:[#allocation6 + $0xc4] ss:$8 sps:$4 sm:$0xff]  }
 0x10b   :  { %1971 = vmatprep.subr.bf16.mxu0 %v11161_v56  ;;  %2248 = vmatprep.subr.bf16.mxu1 %v11109_v18 }
 0x10c   :  { %2001 = vmatprep.mubr.bf16.mxu0 %v10735_v1  ;;  %2278 = vmatprep.mubr.bf16.mxu1 %v10735_v1 }
 0x10e   :  { %1972 = vmatpush1.bf16.msra.mxu0 %v11167_v51  ;;  %2249 = vmatpush1.bf16.msra.mxu1 %v11115_v23 }
 0x10f   :  { %1973 = vmatprep.subr.bf16.mxu0 %v11171_v59  ;;  %2250 = vmatprep.subr.bf16.mxu1 %v11119_v28 }
 0x112   :  { %1974 = vmatpush1.bf16.msra.mxu0 %v11177_v3  ;;  %2251 = vmatpush1.bf16.msra.mxu1 %v11125_v32 }
 0x113   :  { %1975 = vmatprep.subr.bf16.mxu0 %v11068_v4  ;;  %2252 = vmatprep.subr.bf16.mxu1 %v11129_v35  ;;  %v2290_v4 = vld [vmem:[#allocation2 + $0x23] sm:$0x1] }
 0x114   :  { %v2292_v21 = vpack.c.bf16 %v2290_v4, %v2290_v4  ;;  %v2582_v4 = vunpack.c.l.b16 %v2569_v10 }
 0x116   :  { %1976 = vmatpush1.bf16.msra.mxu0 %v11071_v8  ;;  %2253 = vmatpush1.bf16.msra.mxu1 %v11135_v19  ;;  %v2289_v8 = vld [vmem:[#allocation2 + $0xb] sm:$0x1]  ;;  %v2305_v37 = vunpack.c.l.b16 %v2292_v21 }
 0x117   :  { %8660 = vmatprep.subr.msk.bf16.mxu0 %vm251_vm2, %v10940_v52  ;;  %8684 = vmatprep.subr.msk.bf16.mxu1 %vm251_vm2, %v11143_v25  ;;  %v2012_v52 = vld [vmem:[#allocation2 + $0xa] sm:$0x1]  ;;  %v2291_v60 = vpack.c.bf16 %v2289_v8, %v2289_v8  ;;  %v11263_v8 = vcombine.high %v2418_v13, %v2418_v13 }
 0x118   :  { %v2014_v26 = vpack.c.bf16 %v2012_v52, %v2012_v52  ;;  %v2306_v45 = vrot.slane %v2305_v37, 7  ;;  %v11259_v52 = vld [vmem:[#allocation6 + $0xc0] ss:$8 sps:$4 sm:$0xff]  }
 0x119   :  { %v2304_v42 = vunpack.c.l.b16 %v2291_v60 }
 0x11a   :  { %1978 = vmatpush1.bf16.msra.mxu0 %v10934_v50  ;;  %2255 = vmatpush1.bf16.msra.mxu1 %v11042_v34  ;;  %v11207_v50 = vld [vmem:[#allocation6 + $0x7c] ss:$8 sps:$4 sm:$0xff]   ;;  %v2027_v41 = vunpack.c.l.b16 %v2014_v26 }
 0x11b   :  { %2086 = vmatprep.subr.bf16.mxu0 %v11083_v11  ;;  %2363 = vmatprep.subr.bf16.mxu1 %v11145_v54  ;;  %v10653_v11 = vld [vmem:[#allocation6 + $0xa0] ss:$8 sps:$4 sm:$0xff]   ;;  %v2307_v49 = vsel %vm200_vm1, %v2306_v45, %v2304_v42  ;;  %v2960_v42 = vld [vmem:[#allocation2 + $0xe] sm:$0x1] }
 0x11c   :  { %v2030_v57 = vsel %vm200_vm1, %v2029_v29, %v2027_v41  ;;  %v2308_v0 = vpack.c.b16 %v2307_v49, %v2307_v49  ;;  %v2686_v41 = vpack.c.bf16 %v2684_v22, %v2684_v22  ;;  %v2683_v29 = vld [vmem:[#allocation2 + $0xd] sm:$0x1]  ;;  %v10741_v22 = vmov 1966171168  }
 0x11d   :  { %8661 = vmatmul.mubr.msk.bf16.vlgmr.msra.gmra.mrb[8].mxu0 %vm51_vm0, %v1914_v14  ;;  %8685 = vmatmul.mubr.msk.bf16.vlgmr.msra.gmra.mrb[8].mxu1 %vm51_vm0, %v2191_v15  ;;  %v2031_v63 = vpack.c.b16 %v2030_v57, %v2030_v57  ;;  %v2408_v14 = vpack.c.bf16 %v2406_v27, %v2406_v27  ;;  %v2422_v15 = vunpack.c.l.b16 %v2409_v9 }
 0x11e   :  { %2087 = vmatpush1.bf16.msra.mxu0 %v10651_v17  ;;  %2364 = vmatpush1.bf16.msra.mxu1 %v11157_v55  ;;  %v8706_v17 = vcombine.low %v2418_v13, %v2418_v13  ;;  %v2699_v45 = vunpack.c.l.b16 %v2686_v41  ;;  %v10323_v13 = vld [vmem:[%s12988_s3 + $0x48] sm:$0xff]  }
 0x11f   :  { %2088 = vmatprep.subr.bf16.mxu0 %v10652_v24  ;;  %2365 = vmatprep.subr.bf16.mxu1 %v11161_v56  ;;  %v2421_v20 = vunpack.c.l.b16 %v2408_v14  ;;  %v2423_v21 = vrot.slane %v2422_v15, 7  ;;  %v2581_v24 = vunpack.c.l.b16 %v2568_v16  ;;  %v10326_v15 = vld [vmem:[%s12988_s3 + $0x50] sm:$0xff]  }
 0x120   :  { %2118 = vmatprep.mubr.bf16.mxu0 %v10735_v1  ;;  %2395 = vmatprep.mubr.bf16.mxu1 %v10735_v1  ;;  %v11272_v26 = vsel %vm251_vm2, %v8706_v17, 0  ;;  %v3194_v16 = vld [vmem:[#allocation2 + $0x10] sm:$0x1]  ;;  %v10329_v17 = vld [vmem:[%s12988_s3 + $0x58] sm:$0xff]  }
 0x121   :  { %v2424_v31 = vsel %vm200_vm1, %v2423_v21, %v2421_v20  ;;  %v300_v21 = vlaneseq }
 0x122   :  { %2089 = vmatpush1.bf16.msra.mxu0 %v10653_v11  ;;  %2366 = vmatpush1.bf16.msra.mxu1 %v11167_v51  ;;  %v2583_v11 = vrot.slane %v2582_v4, 7  ;;  %v2425_v37 = vpack.c.b16 %v2424_v31, %v2424_v31 }
 0x123   :  { %2090 = vmatprep.subr.bf16.mxu0 %v10654_v39  ;;  %2367 = vmatprep.subr.bf16.mxu1 %v11171_v59  ;;  %vm587_vm10 = vcmp.ge.s32.totalorder %v300_v21, 32  ;;  %vm588_vm11 = vcmp.lt.s32.totalorder %v300_v21, 288 }
 0x124   :  { %v2584_v60 = vsel %vm200_vm1, %v2583_v11, %v2581_v24  ;;  %vm11592_vm13 = vmand %vm587_vm10, %vm588_vm11 }
 0x125   :  { %v2585_v39 = vpack.c.b16 %v2584_v60, %v2584_v60  ;;  %v10325_v60 = vld [vmem:[%s12988_s3 + $0x90] sm:$0xff]  }
 0x126   :  { %2091 = vmatpush1.bf16.msra.mxu0 %v10655_v61  ;;  %2368 = vmatpush1.bf16.msra.mxu1 %v11177_v3  ;;  %v2961_v61 = vld [vmem:[#allocation2 + $0x26] sm:$0x1] }
 0x127   :  { %2092 = vmatprep.subr.bf16.mxu0 %v10656_v47  ;;  %2369 = vmatprep.subr.bf16.mxu1 %v11207_v50  ;;  %v2962_v47 = vpack.c.bf16 %v2960_v42, %v2960_v42 }
 0x129   :  { %v2975_v57 = vunpack.c.l.b16 %v2962_v47 }
 0x12a   :  { %2093 = vmatpush1.bf16.msra.mxu0 %v10657_v44  ;;  %2370 = vmatpush1.bf16.msra.mxu1 %v11212_v40  ;;  %v2700_v44 = vrot.slane %v2699_v45, 7 }
 0x12b   :  { %8672 = vmatprep.subr.msk.bf16.mxu0 %vm251_vm2, %v10999_v43  ;;  %8696 = vmatprep.subr.msk.bf16.mxu1 %vm251_vm2, %v11215_v38  ;;  %v11235_v43 = vld [vmem:[#allocation6 + $0xa4] ss:$8 sps:$4 sm:$0xff]  }
 0x12e   :  { %2095 = vmatpush1.bf16.msra.mxu0 %v11008_v48  ;;  %2372 = vmatpush1.bf16.msra.mxu1 %v11225_v58  ;;  %v11241_v48 = vld [vmem:[#allocation6 + $0xa0] ss:$8 sps:$4 sm:$0xff]  }
 0x12f   :  { %2480 = vmatprep.subr.bf16.mxu1 %v11227_v53  ;;  %2640 = vmatprep.subr.bf16.mxu0 %v11153_v33 }
 0x131   :  { %8673 = vmatmul.mubr.msk.bf16.vlgmr.msra.gmra.mrb[8].mxu0 %vm51_vm0, %v2031_v63  ;;  %8697 = vmatmul.mubr.msk.bf16.vlgmr.msra.gmra.mrb[8].mxu1 %vm51_vm0, %v2308_v0  ;;  %v2800_v63 = vld [vmem:[#allocation2 + $0xe] sm:$0x1]  ;;  %v3077_v0 = vld [vmem:[#allocation2 + $0xf] sm:$0x1] }
 0x132   :  { %2481 = vmatpush1.bf16.msra.mxu1 %v11231_v2  ;;  %2641 = vmatpush1.bf16.msra.mxu0 %v11159_v46  ;;  %v3079_v7 = vpack.c.bf16 %v3077_v0, %v3077_v0 }
 0x133   :  { %2482 = vmatprep.subr.bf16.mxu1 %v11235_v43  ;;  %2642 = vmatprep.subr.bf16.mxu0 %v11109_v18 }
 0x134   :  { %2512 = vmatprep.mubr.bf16.mxu1 %v10735_v1  ;;  %2672 = vmatprep.mubr.bf16.mxu0 %v10735_v1  ;;  %v3092_v27 = vunpack.c.l.b16 %v3079_v7 }
 0x136   :  { %2483 = vmatpush1.bf16.msra.mxu1 %v11241_v48  ;;  %2643 = vmatpush1.bf16.msra.mxu0 %v11115_v23 }
 0x137   :  { %2484 = vmatprep.subr.bf16.mxu1 %v11245_v6  ;;  %2644 = vmatprep.subr.bf16.mxu0 %v11119_v28 }
 0x13a   :  { %2485 = vmatpush1.bf16.msra.mxu1 %v11251_v12  ;;  %2645 = vmatpush1.bf16.msra.mxu0 %v11125_v32 }
 0x13b   :  { %2486 = vmatprep.subr.bf16.mxu1 %v11255_v36  ;;  %2646 = vmatprep.subr.bf16.mxu0 %v11129_v35 }
 0x13e   :  { %2487 = vmatpush1.bf16.msra.mxu1 %v11259_v52  ;;  %2647 = vmatpush1.bf16.msra.mxu0 %v11135_v19 }
 0x13f   :  { %8708 = vmatprep.subr.msk.bf16.mxu1 %vm251_vm2, %v11263_v8  ;;  %8720 = vmatprep.subr.msk.bf16.mxu0 %vm251_vm2, %v11143_v25 }
 0x142   :  { %2489 = vmatpush1.bf16.msra.mxu1 %v11272_v26  ;;  %2649 = vmatpush1.bf16.msra.mxu0 %v11042_v34 }
 0x143   :  { %2757 = vmatprep.subr.bf16.mxu0 %v11145_v54  ;;  %3034 = vmatprep.subr.bf16.mxu1 %v11153_v33  ;;  %v2963_v33 = vpack.c.bf16 %v2961_v61, %v2961_v61  ;;  %v554_v61 = vunpack.c.l.s4 %v10741_v22 }
 0x145   :  { %8709 = vmatmul.mubr.msk.bf16.vlgmr.msra.gmra.mrb[8].mxu1 %vm51_vm0, %v2425_v37  ;;  %8721 = vmatmul.mubr.msk.bf16.vlgmr.msra.gmra.mrb[12].mxu0 %vm51_vm0, %v2585_v39  ;;  %v10331_v37 = vld [vmem:[%s12988_s3 + $0x18] sm:$0xff]  }
 0x146   :  { %2758 = vmatpush1.bf16.msra.mxu0 %v11157_v55  ;;  %3035 = vmatpush1.bf16.msra.mxu1 %v11159_v46  ;;  %v2685_v46 = vpack.c.bf16 %v2683_v29, %v2683_v29 }
 0x147   :  { %2759 = vmatprep.subr.bf16.mxu0 %v11161_v56  ;;  %3036 = vmatprep.subr.bf16.mxu1 %v11109_v18  ;;  %v2976_v18 = vunpack.c.l.b16 %v2963_v33 }
 0x148   :  { %2789 = vmatprep.mubr.bf16.mxu0 %v10735_v1  ;;  %3066 = vmatprep.mubr.bf16.mxu1 %v10735_v1  ;;  %v2698_v5 = vunpack.c.l.b16 %v2685_v46  ;;  %v10328_v46 = vld [vmem:[%s12988_s3 + $0x98] sm:$0xff]  }
 0x14a   :  { %2760 = vmatpush1.bf16.msra.mxu0 %v11167_v51  ;;  %3037 = vmatpush1.bf16.msra.mxu1 %v11115_v23  ;;  %v2977_v23 = vrot.slane %v2976_v18, 7  ;;  %v10330_v18 = vld [vmem:[%s12988_s3 + $0xe0] sm:$0xff]  }
 0x14b   :  { %2761 = vmatprep.subr.bf16.mxu0 %v11171_v59  ;;  %3038 = vmatprep.subr.bf16.mxu1 %v11119_v28  ;;  %v2701_v28 = vsel %vm200_vm1, %v2700_v44, %v2698_v5  ;;  %v555_v44 = vunpack.c.0.s8 %v554_v61 }
 0x14e   :  { %2762 = vmatpush1.bf16.msra.mxu0 %v11177_v3  ;;  %3039 = vmatpush1.bf16.msra.mxu1 %v11125_v32  ;;  %v2978_v32 = vsel %vm200_vm1, %v2977_v23, %v2975_v57 }
 0x14f   :  { %2763 = vmatprep.subr.bf16.mxu0 %v11207_v50  ;;  %3040 = vmatprep.subr.bf16.mxu1 %v11129_v35  ;;  %v2702_v35 = vpack.c.b16 %v2701_v28, %v2701_v28  ;;  %v2979_v49 = vpack.c.b16 %v2978_v32, %v2978_v32  ;;  %v10333_v28 = vld [vmem:[%s12988_s3 + $0x60] sm:$0xff]  }
 0x150   :  { %v10335_v32 = vld [vmem:[%s12988_s3 + $0x20] sm:$0xff]  }
 0x152   :  { %2764 = vmatpush1.bf16.msra.mxu0 %v11212_v40  ;;  %3041 = vmatpush1.bf16.msra.mxu1 %v11135_v19  ;;  %v2801_v19 = vld [vmem:[#allocation2 + $0x26] sm:$0x1] }
 0x153   :  { %8732 = vmatprep.subr.msk.bf16.mxu0 %vm251_vm2, %v11215_v38  ;;  %8756 = vmatprep.subr.msk.bf16.mxu1 %vm251_vm2, %v11143_v25  ;;  %v3078_v25 = vld [vmem:[#allocation2 + $0x27] sm:$0x1] }
 0x156   :  { %2766 = vmatpush1.bf16.msra.mxu0 %v11225_v58  ;;  %3043 = vmatpush1.bf16.msra.mxu1 %v11042_v34  ;;  %v2803_v34 = vpack.c.bf16 %v2801_v19, %v2801_v19 }
 0x157   :  { %2874 = vmatprep.subr.bf16.mxu0 %v11227_v53  ;;  %3151 = vmatprep.subr.bf16.mxu1 %v11145_v54  ;;  %v3080_v54 = vpack.c.bf16 %v3078_v25, %v3078_v25 }
 0x158   :  { %v2816_v62 = vunpack.c.l.b16 %v2803_v34 }
 0x159   :  { %8733 = vmatmul.mubr.msk.bf16.vlgmr.msra.gmra.mrb[12].mxu0 %vm51_vm0, %v2702_v35  ;;  %8757 = vmatmul.mubr.msk.bf16.vlgmr.msra.gmra.mrb[12].mxu1 %vm51_vm0, %v2979_v49 }
 0x15a   :  { %2875 = vmatpush1.bf16.msra.mxu0 %v11231_v2  ;;  %3152 = vmatpush1.bf16.msra.mxu1 %v11157_v55  ;;  %v2802_v55 = vpack.c.bf16 %v2800_v63, %v2800_v63  ;;  %v2817_v10 = vrot.slane %v2816_v62, 7  ;;  %v10337_v63 = vld [vmem:[%s12988_s3 + $0x68] sm:$0xff]  }
 0x15b   :  { %2876 = vmatprep.subr.bf16.mxu0 %v11235_v43  ;;  %3153 = vmatprep.subr.bf16.mxu1 %v11161_v56  ;;  %v3093_v56 = vunpack.c.l.b16 %v3080_v54  ;;  %v10339_v62 = vld [vmem:[%s12988_s3 + $0x28] sm:$0xff]  }
 0x15c   :  { %2906 = vmatprep.mubr.bf16.mxu0 %v10735_v1  ;;  %3183 = vmatprep.mubr.bf16.mxu1 %v10735_v1  ;;  %v2815_v9 = vunpack.c.l.b16 %v2802_v55 }
 0x15e   :  { %2877 = vmatpush1.bf16.msra.mxu0 %v11241_v48  ;;  %3154 = vmatpush1.bf16.msra.mxu1 %v11167_v51  ;;  %v3094_v51 = vrot.slane %v3093_v56, 7 }
 0x15f   :  { %2878 = vmatprep.subr.bf16.mxu0 %v11245_v6  ;;  %3155 = vmatprep.subr.bf16.mxu1 %v11171_v59  ;;  %v2818_v59 = vsel %vm200_vm1, %v2817_v10, %v2815_v9  ;;  %v10341_v10 = vld [vmem:[%s12988_s3 + $0x70] sm:$0xff]  }
 0x160   :  { %v2819_v30 = vpack.c.b16 %v2818_v59, %v2818_v59  ;;  %v10332_v59 = vld [vmem:[%s12988_s3 + $0xa0] sm:$0xff]  }
 0x162   :  { %2879 = vmatpush1.bf16.msra.mxu0 %v11251_v12  ;;  %3156 = vmatpush1.bf16.msra.mxu1 %v11177_v3  ;;  %v3095_v3 = vsel %vm200_vm1, %v3094_v51, %v3092_v27 }
 0x163   :  { %2880 = vmatprep.subr.bf16.mxu0 %v11255_v36  ;;  %3157 = vmatprep.subr.bf16.mxu1 %v11207_v50  ;;  %v10320_v50 = vld [vmem:[%s12988_s3 + $0x40] sm:$0xff]  }
 0x166   :  { %2881 = vmatpush1.bf16.msra.mxu0 %v11259_v52  ;;  %3158 = vmatpush1.bf16.msra.mxu1 %v11212_v40  ;;  %v3096_v40 = vpack.c.b16 %v3095_v3, %v3095_v3 }
 0x167   :  { %8744 = vmatprep.subr.msk.bf16.mxu0 %vm251_vm2, %v11263_v8  ;;  %8768 = vmatprep.subr.msk.bf16.mxu1 %vm251_vm2, %v11215_v38  ;;  %v10321_v38 = vld [vmem:[%s12988_s3] sm:$0xff]  }
 0x16a   :  { %2883 = vmatpush1.bf16.msra.mxu0 %v11272_v26  ;;  %3160 = vmatpush1.bf16.msra.mxu1 %v11225_v58  ;;  %v3195_v58 = vld [vmem:[#allocation2 + $0x28] sm:$0x1] }
 0x16b   :  { %3268 = vmatprep.subr.bf16.mxu1 %v11227_v53  ;;  %9531 = vmatprep.subr.bf16.mxu0 %v10320_v50  ;;  %v10324_v53 = vld [vmem:[%s12988_s3 + $0x8] sm:$0xff]   ;;  %v3197_v14 = vpack.c.bf16 %v3195_v58, %v3195_v58  ;;  %v10345_v58 = vld [vmem:[%s12988_s3 + $0x78] sm:$0xff]  }
 0x16d   :  { %8745 = vmatmul.mubr.msk.bf16.vlgmr.msra.gmra.mrb[12].mxu0 %vm51_vm0, %v2819_v30  ;;  %8769 = vmatmul.mubr.msk.bf16.vlgmr.msra.gmra.mrb[12].mxu1 %vm51_vm0, %v3096_v40  ;;  %v3210_v4 = vunpack.c.l.b16 %v3197_v14  ;;  %v10334_v40 = vld [vmem:[%s12988_s3 + $0xe8] sm:$0xff]  }
 0x16e   :  { %3269 = vmatpush1.bf16.msra.mxu1 %v11231_v2  ;;  %3300 = vmatprep.mubr.bf16.mxu1 %v10735_v1  ;;  %v10327_v2 = vld [vmem:[%s12988_s3 + $0x10] sm:$0xff]  }
 0x16f   :  { %3270 = vmatprep.subr.bf16.mxu1 %v11235_v43  ;;  %9532 = vmatpush3.bf16.msra.mxu0 %v10321_v38  ;;  %v3196_v43 = vpack.c.bf16 %v3194_v16, %v3194_v16  ;;  %v3211_v20 = vrot.slane %v3210_v4, 7  ;;  %v10343_v38 = vld [vmem:[%s12988_s3 + $0x30] sm:$0xff]  }
 0x170   :  { %9533 = vmatprep.subr.bf16.mxu0 %v10323_v13 }
 0x172   :  { %3271 = vmatpush1.bf16.msra.mxu1 %v11241_v48  ;;  %v3209_v48 = vunpack.c.l.b16 %v3196_v43 }
 0x173   :  { %3272 = vmatprep.subr.bf16.mxu1 %v11245_v6  ;;  %9534 = vmatpush3.bf16.msra.mxu0 %v10324_v53 }
 0x174   :  { %9535 = vmatprep.subr.bf16.mxu0 %v10326_v15  ;;  %v3212_v6 = vsel %vm200_vm1, %v3211_v20, %v3209_v48  ;;  %v10347_v48 = vld [vmem:[%s12988_s3 + $0x38] sm:$0xff]  }
 0x175   :  { %v3213_v24 = vpack.c.b16 %v3212_v6, %v3212_v6 }
 0x176   :  { %3273 = vmatpush1.bf16.msra.mxu1 %v11251_v12  ;;  %v10319_v12 = vld [vmem:[%s12988_s3 + $0x80] sm:$0xff]  }
 0x177   :  { %3274 = vmatprep.subr.bf16.mxu1 %v11255_v36  ;;  %9536 = vmatpush3.bf16.msra.mxu0 %v10327_v2  ;;  %v11373_v36 = vld [vmem:[#allocation3] sm:$0xff]  ;;  %v10336_v2 = vld [vmem:[%s12988_s3 + $0xa8] sm:$0xff]  }
 0x178   :  { %9537 = vmatprep.subr.bf16.mxu0 %v10329_v17  ;;  %62 = vst.msk [vmem:[#allocation3 + $0x10] sm:$0xff] %vm61_vm8, %v11373_v36  ;;  %69 = vst.msk [vmem:[#allocation3 + $0x40] sm:$0xff] %vm61_vm8, %v11373_v36  ;;  %v10338_v17 = vld [vmem:[%s12988_s3 + $0xf0] sm:$0xff]  }
 0x179   :  { %66 = vst.msk [vmem:[#allocation3 + $0x28] sm:$0x3] %vm65_vm14, %v11373_v36  ;;  %72 = vst.msk [vmem:[#allocation3 + $0x58] sm:$0x3] %vm65_vm14, %v11373_v36 }
 0x17a   :  { %3275 = vmatpush1.bf16.msra.mxu1 %v11259_v52  ;;  %v301_v52 = vshrl.u32 %v300_v21, 7  ;;  %75 = vst.msk [vmem:[#allocation4 + $0x8] sm:$0x3f] %vm74_vm15, %v11373_v36  ;;  %77 = vst.msk [vmem:[#allocation4 + $0x18] sm:$0x3f] %vm74_vm15, %v11373_v36 }
 0x17b   :  { %8780 = vmatprep.subr.msk.bf16.mxu1 %vm251_vm2, %v11263_v8  ;;  %v10322_v8 = vld [vmem:[%s12988_s3 + $0x88] sm:$0xff]   ;;  %9538 = vmatpush3.bf16.msra.mxu0 %v10331_v37  ;;  %vm4325_vm2 = vcmask 253952  }
 0x17c   :  { %v11388_v11 = vsub.s32 0, %v301_v52  ;;  %v11393_v31 = vsub.s32 1, %v301_v52  ;;  %v11402_v39 = vsub.s32 2, %v301_v52  ;;  %9539 = vmatprep.subr.bf16.mxu0 %v10333_v28  ;;  %v11439_v56 = vsub.s32 %v555_v44, %v301_v52  ;;  %v10348_v28 = vld [vmem:[%s12988_s3 + $0xc0] sm:$0xff]  }
 0x17e   :  { %3277 = vmatpush1.bf16.msra.mxu1 %v11272_v26  ;;  %v181_v26 = vld [vmem:[%s12987_s2] sm:$0x3] }
 0x17f   :  { %9872 = vmatprep.subr.bf16.mxu1 %v11373_v36  ;;  %v11405_v41 = vrot.slane %v181_v26, %v11388_v11  ;;  %v11407_v33 = vld [vmem:[#allocation3] ss:$8 sm:$0x7]  ;;  %v11412_v42 = vrot.slane %v181_v26, %v11393_v31  ;;  %9540 = vmatpush3.bf16.msra.mxu0 %v10335_v32 }
 0x180   :  { %v11409_v29 = vld [vmem:[#allocation3 + $0x30] ss:$8 sm:$0x7]  ;;  %v3371_v45 = vrot.slane %v11407_v33, %v11402_v39  ;;  %9541 = vmatprep.subr.bf16.mxu0 %v10337_v63  ;;  %v3367_v3 = vrot.slane %v11407_v33, %v11393_v31 }
 0x181   :  { %8781 = vmatmul.mubr.msk.bf16.vlgmr.msra.gmra.mrb[12].mxu1 %vm51_vm0, %v3213_v24  ;;  %v3383_v47 = vrot.slane %v11409_v29, %v11402_v39  ;;  %v3379_v50 = vrot.slane %v11409_v29, %v11393_v31  ;;  %v10340_v24 = vld [vmem:[%s12988_s3 + $0xb0] sm:$0xff]   ;;  %v3375_v37 = vrot.slane %v11409_v29, %v11388_v11  ;;  %v10354_v63 = vld [vmem:[%s12988_s3 + $0x188] sm:$0xff]   ;;  %vm4323_vm0 = vcmask 1040640  }
 0x182   :  { %9873 = vmatpush3.bf16.msra.mxu1 %v10319_v12  ;;  %9880 = vmatprep.mubr.msk.bf16.mxu1 %vm10740_vm9, %v11373_v36  ;;  %v3392_v57 = vpack.c.bf16 %v3371_v45, %v3371_v45  ;;  %v3391_v53 = vpack.c.bf16 %v3367_v3, %v3367_v3  ;;  %v10350_v12 = vld [vmem:[%s12988_s3 + $0x180] sm:$0xff]   ;;  %v10357_v3 = vld [vmem:[%s12988_s3 + $0x118] sm:$0xff]  }
 0x183   :  { %9874 = vmatprep.subr.bf16.mxu1 %v11373_v36  ;;  %v3395_v23 = vpack.c.bf16 %v3383_v47, %v3383_v47  ;;  %9542 = vmatpush3.bf16.msra.mxu0 %v10339_v62  ;;  %v3394_v14 = vpack.c.bf16 %v3379_v50, %v3379_v50  ;;  %v3393_v61 = vpack.c.bf16 %v3375_v37, %v3375_v37  ;;  %v10346_v45 = vld [vmem:[%s12988_s3 + $0x100] sm:$0xff]   ;;  %v10353_v62 = vld [vmem:[%s12988_s3 + $0x110] sm:$0xff]  }
 0x184   :  { %v3444_v34 = vunpack.c.l.b16 %v3392_v57  ;;  %9543 = vmatprep.subr.bf16.mxu0 %v10341_v10  ;;  %v3443_v43 = vunpack.c.l.b16 %v3391_v53  ;;  %v10358_v10 = vld [vmem:[%s12988_s3 + $0x190] sm:$0xff]   ;;  %v10366_v53 = vld [vmem:[%s12988_s3 + $0x160] sm:$0xff]  }
 0x185   :  { %v3447_v54 = vunpack.c.l.b16 %v3395_v23  ;;  %v3446_v4 = vunpack.c.l.b16 %v3394_v14  ;;  %v10360_v50 = vld [vmem:[%s12988_s3 + $0x150] sm:$0xff]   ;;  %v10367_v14 = vld [vmem:[%s12988_s3 + $0x1a8] sm:$0xff]  }
 0x186   :  { %9875 = vmatpush3.bf16.msra.mxu1 %v10322_v8  ;;  %v10342_v8 = vld [vmem:[%s12988_s3 + $0xf8] sm:$0xff]  }
 0x187   :  { %9876 = vmatprep.subr.bf16.mxu1 %v11373_v36  ;;  %v3452_v9 = vrot.slane %v3447_v54, 7  ;;  %9544 = vmatpush3.bf16.msra.mxu0 %v10343_v38  ;;  %v3450_v6 = vrot.slane %v3446_v4, 7  ;;  %v10359_v38 = vld [vmem:[%s12988_s3 + $0xd8] sm:$0xff]  }
 0x188   :  { %9545 = vmatprep.subr.bf16.mxu0 %v10345_v58  ;;  %v10364_v58 = vld [vmem:[%s12988_s3 + $0x1a0] sm:$0xff]   ;;  %v10374_v4 = vld [vmem:[%s12988_s3 + $0x178] sm:$0xff]  }
 0x189   :  { %v3453_v51 = vsel %vm200_vm1, %v3452_v9, %v3444_v34  ;;  %v3451_v52 = vsel %vm200_vm1, %v3450_v6, %v3443_v43  ;;  %v10373_v43 = vld [vmem:[%s12988_s3 + $0x1b8] sm:$0xff]  }
 0x18a   :  { %9877 = vmatpush3.bf16.msra.mxu1 %v10325_v60  ;;  %v3456_v30 = vpack.c.b16 %v3453_v51, %v3453_v51  ;;  %v3455_v26 = vpack.c.b16 %v3451_v52, %v3451_v52  ;;  %v3363_v60 = vrot.slane %v11407_v33, %v11388_v11 }
 0x18b   :  { %9878 = vmatprep.subr.bf16.mxu1 %v11373_v36  ;;  %9546 = vmatpush3.bf16.msra.mxu0 %v10347_v48 }
 0x18c   :  { %v539_v5 = vpop.f32.mrb[0].mxu0  ;;  %9585 = vmatprep.subr.bf16.mxu0 %v10350_v12  ;;  %3614 = vmatprep.mubr.bf16.mxu0 %v3455_v26  ;;  %v3390_v22 = vpack.c.bf16 %v3363_v60, %v3363_v60 }
 0x18d   :  { %v10075_v35 = vadd.f32 %v539_v5, %v11405_v41  ;;  %v541_v49 = vpop.f32.mrb[1].mxu0 }
 0x18e   :  { %v10076_v19 = vadd.f32 %v541_v49, %v11412_v42  ;;  %v543_v25 = vpop.f32.mrb[2].mxu0  ;;  %9879 = vmatpush3.bf16.msra.mxu1 %v10328_v46  ;;  %v10344_v46 = vld [vmem:[%s12988_s3 + $0xb8] sm:$0xff]   ;;  %v3442_v47 = vunpack.c.l.b16 %v3390_v22  ;;  %v10349_v49 = vld [vmem:[%s12988_s3 + $0x108] sm:$0xff]  }
 0x18f   :  { %v548_v0 = vmax.f32 %v10075_v35, 0.0  ;;  %v544_v55 = vpop.f32.mrb[3].mxu0  ;;  %9558 = vmatprep.subr.bf16.mxu1 %v10330_v18  ;;  %v3445_v18 = vunpack.c.l.b16 %v3393_v61  ;;  %v10352_v25 = vld [vmem:[%s12988_s3 + $0x140] sm:$0xff]  }
 0x190   :  { %v549_v7 = vmax.f32 %v10076_v19, 0.0  ;;  %v10351_v55 = vld [vmem:[%s12988_s3 + $0xc8] sm:$0xff]  }
 0x191   :  { %9881 = vmatmul.mubr.msk.bf16.vlgmr.msra.gmra.mrb[16].mxu1 %vm61_vm8, %v3456_v30  ;;  %v3448_v44 = vrot.slane %v3445_v18, 7 }
 0x192   :  { %v552_v27 = vcombine.low %v548_v0, %v549_v7  ;;  %9559 = vmatpush3.bf16.msra.mxu1 %v10332_v59  ;;  %v10356_v7 = vld [vmem:[%s12988_s3 + $0x148] sm:$0xff]   ;;  %v10355_v59 = vld [vmem:[%s12988_s3 + $0xd0] sm:$0xff]  }
 0x193   :  { %9560 = vmatprep.subr.bf16.mxu1 %v10334_v40  ;;  %v3449_v19 = vsel %vm200_vm1, %v3448_v44, %v3442_v47  ;;  %v10361_v40 = vld [vmem:[%s12988_s3 + $0x198] sm:$0xff]  }
 0x194   :  { %v559_v13 = vrot.slane %v552_v27, %v11439_v56  ;;  %v3454_v54 = vpack.c.b16 %v3449_v19, %v3449_v19 }
 0x196   :  { %v567_v15 = vrot.slane %v559_v13, %v11439_v56  ;;  %v560_v16 = vcombine.high %v559_v13, %v559_v13  ;;  %9561 = vmatpush3.bf16.msra.mxu1 %v10336_v2  ;;  %3615 = vmatmul.mubr.bf16.vlgmr.msra.gmra.mrb[16].mxu0 %v3454_v54  ;;  %v10363_v13 = vld [vmem:[%s12988_s3 + $0x158] sm:$0xff]   ;;  %v10372_v2 = vld [vmem:[%s12988_s3 + $0x170] sm:$0xff]  }
 0x197   :  { %9562 = vmatprep.subr.bf16.mxu1 %v10338_v17  ;;  %9586 = vmatpush3.bf16.msra.mxu0 %v10352_v25  ;;  %v10376_v17 = vld [vmem:[%s12988_s3 + $0x40] sm:$0xff]  }
 0x198   :  { %575 = vrot.lane.b32.xlu1 %v567_v15, %s10742_s26  ;;  %v574_v20 = vrot.slane %v560_v16, %v11439_v56  ;;  %9587 = vmatprep.subr.bf16.mxu0 %v10354_v63  ;;  %v10369_v15 = vld [vmem:[%s12988_s3 + $0x168] sm:$0xff]   ;;  %v10370_v16 = vld [vmem:[%s12988_s3 + $0x1b0] sm:$0xff]  }
 0x19a   :  { %577 = vrot.lane.b32.xlu0 %v574_v20, %s10742_s26  ;;  %9563 = vmatpush3.bf16.msra.mxu1 %v10340_v24 }
 0x19b   :  { %9564 = vmatprep.subr.bf16.mxu1 %v10342_v8  ;;  %9588 = vmatpush3.bf16.msra.mxu0 %v10356_v7 }
 0x19c   :  { %9589 = vmatprep.subr.bf16.mxu0 %v10358_v10  ;;  %v10515_v10 = vld [vmem:[%s12988_s3 + $0x90] sm:$0xff]  }
 0x19e   :  { %9565 = vmatpush3.bf16.msra.mxu1 %v10344_v46 }
 0x19f   :  { %9566 = vmatprep.subr.bf16.mxu1 %v10346_v45  ;;  %9590 = vmatpush3.bf16.msra.mxu0 %v10360_v50 }
 0x1a0   :  { %v938_v33 = vpop.f32.mrb[0].mxu1  ;;  %9591 = vmatprep.subr.bf16.mxu0 %v10361_v40 }
 0x1a1   :  { %v10077_v5 = vadd.f32 %v938_v33, %v11405_v41  ;;  %v940_v29 = vpop.f32.mrb[1].mxu1 }
 0x1a2   :  { %v10078_v57 = vadd.f32 %v940_v29, %v11412_v42  ;;  %v942_v23 = vpop.f32.mrb[2].mxu1  ;;  %9567 = vmatpush3.bf16.msra.mxu1 %v10348_v28 }
 0x1a3   :  { %v947_v32 = vmax.f32 %v10077_v5, 0.0  ;;  %v943_v35 = vpop.f32.mrb[3].mxu1  ;;  %9568 = vmatprep.subr.bf16.mxu1 %v10349_v49  ;;  %9592 = vmatpush3.bf16.msra.mxu0 %v10363_v13 }
 0x1a4   :  { %v948_v34 = vmax.f32 %v10078_v57, 0.0  ;;  %9593 = vmatprep.subr.bf16.mxu0 %v10364_v58 }
 0x1a6   :  { %v951_v0 = vcombine.low %v947_v32, %v948_v34  ;;  %9569 = vmatpush3.bf16.msra.mxu1 %v10351_v55 }
 0x1a7   :  { %9570 = vmatprep.subr.bf16.mxu1 %v10353_v62  ;;  %9594 = vmatpush3.bf16.msra.mxu0 %v10366_v53 }
 0x1a8   :  { %v958_v9 = vrot.slane %v951_v0, %v11439_v56  ;;  %9595 = vmatprep.subr.bf16.mxu0 %v10367_v14 }
 0x1aa   :  { %v966_v27 = vrot.slane %v958_v9, %v11439_v56  ;;  %v959_v51 = vcombine.high %v958_v9, %v958_v9  ;;  %9571 = vmatpush3.bf16.msra.mxu1 %v10355_v59 }
 0x1ab   :  { %9572 = vmatprep.subr.bf16.mxu1 %v10357_v3  ;;  %9596 = vmatpush3.bf16.msra.mxu0 %v10369_v15 }
 0x1ac   :  { %974 = vrot.lane.b32.xlu1 %v966_v27, %s10742_s26  ;;  %v973_v30 = vrot.slane %v959_v51, %v11439_v56  ;;  %9597 = vmatprep.subr.bf16.mxu0 %v10370_v16 }
 0x1ae   :  { %976 = vrot.lane.b32.xlu0 %v973_v30, %s10742_s26  ;;  %9573 = vmatpush3.bf16.msra.mxu1 %v10359_v38 }
 0x1af   :  { %9884 = vmatprep.subr.bf16.mxu1 %v11373_v36  ;;  %9598 = vmatpush3.bf16.msra.mxu0 %v10372_v2 }
 0x1b0   :  { %9599 = vmatprep.subr.bf16.mxu0 %v10373_v43 }
 0x1b3   :  { %9600 = vmatpush3.bf16.msra.mxu0 %v10374_v4 }
 0x1b4   :  { %9612 = vmatprep.subr.bf16.mxu0 %v10376_v17 }
 0x1c8   :  { %v1332_v48 = vpop.f32.mrb[4].mxu0 }
 0x1c9   :  { %v10079_v20 = vadd.f32 %v1332_v48, %v11405_v41  ;;  %v1334_v6 = vpop.f32.mrb[5].mxu0 }
 0x1ca   :  { %v10080_v12 = vadd.f32 %v1334_v6, %v11412_v42  ;;  %v1336_v24 = vpop.f32.mrb[6].mxu0 }
 0x1cb   :  { %v1341_v52 = vmax.f32 %v10079_v20, 0.0  ;;  %v1337_v8 = vpop.f32.mrb[7].mxu0 }
 0x1cc   :  { %v1342_v26 = vmax.f32 %v10080_v12, 0.0 }
 0x1ce   :  { %v1345_v60 = vcombine.low %v1341_v52, %v1342_v26 }
 0x1d0   :  { %v1352_v37 = vrot.slane %v1345_v60, %v11439_v56 }
 0x1d2   :  { %v1360_v22 = vrot.slane %v1352_v37, %v11439_v56  ;;  %v1353_v61 = vcombine.high %v1352_v37, %v1352_v37 }
 0x1d4   :  { %1368 = vrot.lane.b32.xlu1 %v1360_v22, %s10742_s26  ;;  %v1367_v46 = vrot.slane %v1353_v61, %v11439_v56 }
 0x1d6   :  { %1370 = vrot.lane.b32.xlu0 %v1367_v46, %s10742_s26 }
 0x1dc   :  { %v1726_v45 = vpop.f32.mrb[4].mxu1 }
 0x1dd   :  { %v10081_v47 = vadd.f32 %v1726_v45, %v11405_v41  ;;  %v1728_v18 = vpop.f32.mrb[5].mxu1 }
 0x1de   :  { %v10082_v33 = vadd.f32 %v1728_v18, %v11412_v42  ;;  %v1730_v5 = vpop.f32.mrb[6].mxu1 }
 0x1df   :  { %v1735_v29 = vmax.f32 %v10081_v47, 0.0  ;;  %v1731_v44 = vpop.f32.mrb[7].mxu1 }
 0x1e0   :  { %v1736_v57 = vmax.f32 %v10082_v33, 0.0 }
 0x1e2   :  { %v1739_v23 = vcombine.low %v1735_v29, %v1736_v57 }
 0x1e4   :  { %v1746_v28 = vrot.slane %v1739_v23, %v11439_v56 }
 0x1e6   :  { %v1754_v32 = vrot.slane %v1746_v28, %v11439_v56  ;;  %v1747_v35 = vcombine.high %v1746_v28, %v1746_v28 }
 0x1e8   :  { %1762 = vrot.lane.b32.xlu1 %v1754_v32, %s10742_s26  ;;  %v1761_v49 = vrot.slane %v1747_v35, %v11439_v56 }
 0x1ea   :  { %1764 = vrot.lane.b32.xlu0 %v1761_v49, %s10742_s26  ;;  %v10362_v49 = vld [vmem:[%s12988_s3 + $0x120] sm:$0xff]  }
 0x204   :  { %v2120_v19 = vpop.f32.mrb[8].mxu0 }
 0x205   :  { %v10083_v25 = vadd.f32 %v2120_v19, %v11405_v41  ;;  %v2122_v34 = vpop.f32.mrb[9].mxu0 }
 0x206   :  { %v10084_v54 = vadd.f32 %v2122_v34, %v11412_v42  ;;  %v2124_v63 = vpop.f32.mrb[10].mxu0 }
 0x207   :  { %v2129_v0 = vmax.f32 %v10083_v25, 0.0  ;;  %v2125_v55 = vpop.f32.mrb[11].mxu0 }
 0x208   :  { %v2130_v62 = vmax.f32 %v10084_v54, 0.0 }
 0x20a   :  { %v2133_v7 = vcombine.low %v2129_v0, %v2130_v62  ;;  %v576_v9 = vpop.permute.xlu1 %575  ;;  %v10365_v62 = vld [vmem:[%s12988_s3 + $0x128] sm:$0xff]  }
 0x20b   :  { %v579_v27 = vrot.slane %v576_v9, 7 }
 0x20c   :  { %v2140_v51 = vrot.slane %v2133_v7, %v11439_v56  ;;  %v578_v59 = vpop.permute.xlu0 %577 }
 0x20d   :  { %v582_v3 = vsel %vm581_vm12, %v579_v27, %v576_v9  ;;  %v580_v50 = vrot.slane %v578_v59, 7  ;;  %v10368_v9 = vld [vmem:[%s12988_s3 + $0x130] sm:$0xff]  }
 0x20e   :  { %591 = vst.msk [vmem:[#allocation3 + $0x1] ss:$8 sm:$0x7] %vm11592_vm13, %v582_v3  ;;  %v2148_v30 = vrot.slane %v2140_v51, %v11439_v56  ;;  %v2141_v21 = vcombine.high %v2140_v51, %v2140_v51 }
 0x20f   :  { %v583_v40 = vsel %vm581_vm12, %v580_v50, %v578_v59 }
 0x210   :  { %594 = vst.msk [vmem:[#allocation3 + $0x31] ss:$8 sm:$0x7] %vm11592_vm13, %v583_v40  ;;  %2156 = vrot.lane.b32.xlu1 %v2148_v30, %s10742_s26  ;;  %v2155_v38 = vrot.slane %v2141_v21, %v11439_v56 }
 0x212   :  { %2158 = vrot.lane.b32.xlu0 %v2155_v38, %s10742_s26 }
 0x215   :  { %v3669_v13 = vld [vmem:[#allocation3 + $0x1] ss:$8 sm:$0x7] }
 0x216   :  { %v3680_v58 = vrot.slane %v3669_v13, %v11393_v31  ;;  %v3676_v14 = vrot.slane %v3669_v13, %v11388_v11  ;;  %v3684_v55 = vrot.slane %v3669_v13, %v11402_v39 }
 0x217   :  { %v3670_v53 = vld [vmem:[#allocation3 + $0x31] ss:$8 sm:$0x7] }
 0x218   :  { %v2514_v15 = vpop.f32.mrb[8].mxu1  ;;  %v3692_v16 = vrot.slane %v3670_v53, %v11393_v31  ;;  %v3688_v4 = vrot.slane %v3670_v53, %v11388_v11  ;;  %v3704_v20 = vpack.c.bf16 %v3680_v58, %v3680_v58  ;;  %v3703_v52 = vpack.c.bf16 %v3676_v14, %v3676_v14 }
 0x219   :  { %v10085_v2 = vadd.f32 %v2514_v15, %v11405_v41  ;;  %v2516_v43 = vpop.f32.mrb[9].mxu1  ;;  %v3696_v46 = vrot.slane %v3670_v53, %v11402_v39  ;;  %v3705_v27 = vpack.c.bf16 %v3684_v55, %v3684_v55  ;;  %v10371_v53 = vld [vmem:[%s12988_s3 + $0x138] sm:$0xff]  }
 0x21a   :  { %v10086_v17 = vadd.f32 %v2516_v43, %v11412_v42  ;;  %v2518_v48 = vpop.f32.mrb[10].mxu1  ;;  %v3707_v6 = vpack.c.bf16 %v3692_v16, %v3692_v16  ;;  %v3706_v8 = vpack.c.bf16 %v3688_v4, %v3688_v4  ;;  %v3757_v45 = vunpack.c.l.b16 %v3704_v20  ;;  %v10383_v55 = vld [vmem:[%s12988_s3 + $0x1d8] sm:$0xff]  }
 0x21b   :  { %v2523_v12 = vmax.f32 %v10085_v2, 0.0  ;;  %v2519_v24 = vpop.f32.mrb[11].mxu1  ;;  %v3756_v33 = vunpack.c.l.b16 %v3703_v52  ;;  %v3708_v19 = vpack.c.bf16 %v3696_v46, %v3696_v46  ;;  %v3758_v58 = vunpack.c.l.b16 %v3705_v27 }
 0x21c   :  { %v2524_v26 = vmax.f32 %v10086_v17, 0.0  ;;  %v3760_v60 = vunpack.c.l.b16 %v3707_v6  ;;  %v3759_v37 = vunpack.c.l.b16 %v3706_v8  ;;  %v10375_v24 = vld [vmem:[%s12988_s3 + $0x1c0] sm:$0xff]  }
 0x21d   :  { %v3761_v7 = vunpack.c.l.b16 %v3708_v19 }
 0x21e   :  { %v2527_v22 = vcombine.low %v2523_v12, %v2524_v26  ;;  %v975_v61 = vpop.permute.xlu1 %974  ;;  %v3764_v47 = vrot.slane %v3760_v60, 7  ;;  %v3762_v5 = vrot.slane %v3759_v37, 7 }
 0x21f   :  { %v978_v18 = vrot.slane %v975_v61, 7  ;;  %v3766_v3 = vrot.slane %v3761_v7, 7  ;;  %v10385_v7 = vld [vmem:[%s12988_s3 + $0x58] sm:$0xff]  }
 0x220   :  { %v2534_v29 = vrot.slane %v2527_v22, %v11439_v56  ;;  %v977_v44 = vpop.permute.xlu0 %976  ;;  %v3765_v57 = vsel %vm200_vm1, %v3764_v47, %v3757_v45  ;;  %v3763_v35 = vsel %vm200_vm1, %v3762_v5, %v3756_v33 }
 0x221   :  { %v980_v23 = vsel %vm581_vm12, %v978_v18, %v975_v61  ;;  %v979_v28 = vrot.slane %v977_v44, 7  ;;  %v3769_v32 = vpack.c.b16 %v3765_v57, %v3765_v57  ;;  %v3768_v25 = vpack.c.b16 %v3763_v35, %v3763_v35  ;;  %v10378_v57 = vld [vmem:[%s12988_s3] sm:$0xff]   ;;  %v10379_v35 = vld [vmem:[%s12988_s3 + $0x48] sm:$0xff]  }
 0x222   :  { %985 = vst.msk [vmem:[#allocation3 + $0x2] ss:$8 sm:$0x7] %vm11592_vm13, %v980_v23  ;;  %v2542_v34 = vrot.slane %v2534_v29, %v11439_v56  ;;  %v2535_v54 = vcombine.high %v2534_v29, %v2534_v29  ;;  %v3767_v43 = vsel %vm200_vm1, %v3766_v3, %v3758_v58 }
 0x223   :  { %v981_v63 = vsel %vm581_vm12, %v979_v28, %v977_v44  ;;  %3928 = vmatprep.mubr.bf16.mxu1 %v3769_v32  ;;  %v3770_v8 = vpack.c.b16 %v3767_v43, %v3767_v43  ;;  %v10377_v44 = vld [vmem:[%s12988_s3 + $0x1c8] sm:$0xff]  }
 0x224   :  { %988 = vst.msk [vmem:[#allocation3 + $0x32] ss:$8 sm:$0x7] %vm11592_vm13, %v981_v63  ;;  %3929 = vmatmul.mubr.bf16.vlgmr.msra.gmra.mrb[20].mxu1 %v3768_v25  ;;  %2550 = vrot.lane.b32.xlu1 %v2542_v34, %s10742_s26  ;;  %v2549_v0 = vrot.slane %v2535_v54, %v11439_v56  ;;  %v10380_v25 = vld [vmem:[%s12988_s3 + $0x1d0] sm:$0xff]   ;;  %v10381_v34 = vld [vmem:[%s12988_s3 + $0x8] sm:$0xff]  }
 0x225   :  { %9885 = vmatpush3.bf16.msra.mxu1 %v10362_v49  ;;  %9892 = vmatprep.mubr.msk.bf16.mxu1 %vm10740_vm9, %v11373_v36  ;;  %v10382_v54 = vld [vmem:[%s12988_s3 + $0x50] sm:$0xff]  }
 0x226   :  { %2552 = vrot.lane.b32.xlu0 %v2549_v0, %s10742_s26  ;;  %9886 = vmatprep.subr.bf16.mxu1 %v11373_v36 }
 0x229   :  { %9887 = vmatpush3.bf16.msra.mxu1 %v10365_v62  ;;  %v3977_v51 = vld [vmem:[#allocation3 + $0x2] ss:$8 sm:$0x7] }
 0x22a   :  { %v11640_v59 = vld [vmem:[#allocation3 + $0x2] ss:$8 sm:$0x7]  ;;  %9888 = vmatprep.subr.bf16.mxu1 %v11373_v36  ;;  %v3988_v50 = vrot.slane %v3977_v51, %v11393_v31  ;;  %v3984_v21 = vrot.slane %v3977_v51, %v11388_v11  ;;  %v3992_v33 = vrot.slane %v3977_v51, %v11402_v39 }
 0x22b   :  { %v3978_v30 = vld [vmem:[#allocation3 + $0x32] ss:$8 sm:$0x7]  ;;  %v4340_v13 = vrot.slane %v11640_v59, %v11393_v31 }
 0x22c   :  { %v11645_v40 = vld [vmem:[#allocation3 + $0x32] ss:$8 sm:$0x7]  ;;  %v4000_v38 = vrot.slane %v3978_v30, %v11393_v31  ;;  %v3996_v14 = vrot.slane %v3978_v30, %v11388_v11  ;;  %v4012_v16 = vpack.c.bf16 %v3988_v50, %v3988_v50  ;;  %v4004_v4 = vrot.slane %v3978_v30, %v11402_v39  ;;  %v10386_v30 = vld [vmem:[%s12988_s3 + $0x18] sm:$0xff]  }
 0x22d   :  { %9889 = vmatpush3.bf16.msra.mxu1 %v10368_v9  ;;  %v4352_v15 = vrot.slane %v11645_v40, %v11393_v31  ;;  %v4011_v17 = vpack.c.bf16 %v3984_v21, %v3984_v21  ;;  %v4364_v6 = vpack.c.bf16 %v4340_v13, %v4340_v13  ;;  %v4013_v19 = vpack.c.bf16 %v3992_v33, %v3992_v33  ;;  %v10384_v62 = vld [vmem:[%s12988_s3 + $0x10] sm:$0xff]   ;;  %v10387_v21 = vld [vmem:[%s12988_s3 + $0x80] sm:$0xff]  }
 0x22e   :  { %9890 = vmatprep.subr.bf16.mxu1 %v11373_v36  ;;  %v4015_v2 = vpack.c.bf16 %v4000_v38, %v4000_v38  ;;  %v4014_v48 = vpack.c.bf16 %v3996_v14, %v3996_v14  ;;  %v4065_v26 = vunpack.c.l.b16 %v4012_v16  ;;  %v4016_v22 = vpack.c.bf16 %v4004_v4, %v4004_v4  ;;  %v10388_v14 = vld [vmem:[%s12988_s3 + $0x60] sm:$0xff]   ;;  %v10394_v33 = vld [vmem:[%s12988_s3 + $0x70] sm:$0xff]  }
 0x22f   :  { %v4367_v12 = vpack.c.bf16 %v4352_v15, %v4352_v15  ;;  %v4064_v61 = vunpack.c.l.b16 %v4011_v17  ;;  %v4416_v47 = vunpack.c.l.b16 %v4364_v6  ;;  %v4066_v0 = vunpack.c.l.b16 %v4013_v19  ;;  %v10389_v4 = vld [vmem:[%s12988_s3 + $0x20] sm:$0xff]   ;;  %v10390_v17 = vld [vmem:[%s12988_s3 + $0x88] sm:$0xff]  }
 0x230   :  { %v4068_v20 = vunpack.c.l.b16 %v4015_v2  ;;  %v4067_v52 = vunpack.c.l.b16 %v4014_v48  ;;  %v4069_v32 = vunpack.c.l.b16 %v4016_v22  ;;  %v4356_v9 = vrot.slane %v11645_v40, %v11402_v39 }
 0x231   :  { %9891 = vmatpush3.bf16.msra.mxu1 %v10371_v53  ;;  %v4419_v37 = vunpack.c.l.b16 %v4367_v12  ;;  %v4348_v38 = vrot.slane %v11645_v40, %v11388_v11  ;;  %v4344_v40 = vrot.slane %v11640_v59, %v11402_v39  ;;  %v10391_v12 = vld [vmem:[%s12988_s3 + $0x68] sm:$0xff]  }
 0x232   :  { %9896 = vmatprep.subr.bf16.mxu1 %v11373_v36  ;;  %v4072_v60 = vrot.slane %v4068_v20, 7  ;;  %v4070_v46 = vrot.slane %v4067_v52, 7  ;;  %v4074_v63 = vrot.slane %v4069_v32, 7  ;;  %v4368_v15 = vpack.c.bf16 %v4356_v9, %v4356_v9  ;;  %v10396_v32 = vld [vmem:[%s12988_s3 + $0x98] sm:$0xff]  }
 0x233   :  { %v4423_v18 = vrot.slane %v4419_v37, 7  ;;  %v4366_v48 = vpack.c.bf16 %v4348_v38, %v4348_v38  ;;  %v4365_v37 = vpack.c.bf16 %v4344_v40, %v4344_v40  ;;  %v10401_v38 = vld [vmem:[%s12988_s3 + $0xa0] sm:$0xff]  }
 0x234   :  { %9893 = vmatmul.mubr.msk.bf16.vlgmr.msra.gmra.mrb[16].mxu1 %vm61_vm8, %v3770_v8  ;;  %v4073_v45 = vsel %vm200_vm1, %v4072_v60, %v4065_v26  ;;  %v4071_v29 = vsel %vm200_vm1, %v4070_v46, %v4064_v61  ;;  %v4075_v27 = vsel %vm200_vm1, %v4074_v63, %v4066_v0  ;;  %v4336_v8 = vrot.slane %v11640_v59, %v11388_v11  ;;  %v10392_v46 = vld [vmem:[%s12988_s3 + $0x28] sm:$0xff]  }
 0x235   :  { %9897 = vmatpush3.bf16.msra.mxu1 %v10375_v24  ;;  %v4077_v5 = vpack.c.b16 %v4073_v45, %v4073_v45  ;;  %9904 = vmatprep.mubr.msk.bf16.mxu1 %vm10740_vm9, %v11373_v36  ;;  %v4076_v23 = vpack.c.b16 %v4071_v29, %v4071_v29  ;;  %v4424_v28 = vsel %vm200_vm1, %v4423_v18, %v4416_v47  ;;  %v4420_v24 = vunpack.c.l.b16 %v4368_v15  ;;  %v10393_v45 = vld [vmem:[%s12988_s3 + $0x90] sm:$0xff]  }
 0x236   :  { %9898 = vmatprep.subr.bf16.mxu1 %v11373_v36  ;;  %v4428_v49 = vpack.c.b16 %v4424_v28, %v4424_v28  ;;  %v4078_v53 = vpack.c.b16 %v4075_v27, %v4075_v27  ;;  %v4418_v47 = vunpack.c.l.b16 %v4366_v48  ;;  %v10395_v28 = vld [vmem:[%s12988_s3 + $0x30] sm:$0xff]  }
 0x237   :  { %4236 = vmatprep.mubr.bf16.mxu0 %v4077_v5  ;;  %v4425_v5 = vrot.slane %v4420_v24, 7 }
 0x238   :  { %4237 = vmatmul.mubr.bf16.vlgmr.msra.gmra.mrb[20].mxu0 %v4076_v23  ;;  %v4417_v23 = vunpack.c.l.b16 %v4365_v37 }
 0x239   :  { %9899 = vmatpush3.bf16.msra.mxu1 %v10377_v44  ;;  %9613 = vmatpush3.bf16.msra.mxu0 %v10378_v57  ;;  %v4363_v44 = vpack.c.bf16 %v4336_v8, %v4336_v8 }
 0x23a   :  { %4587 = vmatprep.mubr.bf16.mxu0 %v4428_v49  ;;  %9900 = vmatprep.subr.bf16.mxu1 %v11373_v36  ;;  %v10397_v49 = vld [vmem:[%s12988_s3 + $0x78] sm:$0xff]   ;;  %v4426_v19 = vsel %vm200_vm1, %v4425_v5, %v4417_v23 }
 0x23b   :  { %9614 = vmatprep.subr.bf16.mxu0 %v10379_v35  ;;  %v4421_v35 = vrot.slane %v4418_v47, 7  ;;  %v10408_v5 = vld [vmem:[%s12988_s3 + $0x138] sm:$0xff]  }
 0x23d   :  { %9901 = vmatpush3.bf16.msra.mxu1 %v10380_v25  ;;  %9615 = vmatpush3.bf16.msra.mxu0 %v10381_v34  ;;  %v4415_v25 = vunpack.c.l.b16 %v4363_v44  ;;  %v10398_v34 = vld [vmem:[%s12988_s3 + $0x38] sm:$0xff]  }
 0x23e   :  { %9902 = vmatprep.subr.bf16.mxu1 %v11373_v36  ;;  %9616 = vmatprep.subr.bf16.mxu0 %v10382_v54  ;;  %v10399_v54 = vld [vmem:[%s12988_s3 + $0x120] sm:$0xff]  }
 0x23f   :  { %v4422_v63 = vsel %vm200_vm1, %v4421_v35, %v4415_v25 }
 0x240   :  { %v2908_v51 = vpop.f32.mrb[12].mxu0 }
 0x241   :  { %v10087_v3 = vadd.f32 %v2908_v51, %v11405_v41  ;;  %9903 = vmatpush3.bf16.msra.mxu1 %v10383_v55  ;;  %9617 = vmatpush3.bf16.msra.mxu0 %v10384_v62  ;;  %v2910_v50 = vpop.f32.mrb[13].mxu0  ;;  %v4429_v55 = vpack.c.b16 %v4426_v19, %v4426_v19  ;;  %v10400_v62 = vld [vmem:[%s12988_s3 + $0xe0] sm:$0xff]   ;;  %v4427_v51 = vpack.c.b16 %v4422_v63, %v4422_v63 }
 0x242   :  { %v10088_v13 = vadd.f32 %v2910_v50, %v11412_v42  ;;  %v2912_v58 = vpop.f32.mrb[14].mxu0  ;;  %9618 = vmatprep.subr.bf16.mxu0 %v10385_v7  ;;  %9908 = vmatprep.subr.bf16.mxu1 %v11373_v36  ;;  %v10412_v19 = vld [vmem:[%s12988_s3 + $0x140] sm:$0xff]  }
 0x243   :  { %v2917_v16 = vmax.f32 %v10087_v3, 0.0  ;;  %v2913_v2 = vpop.f32.mrb[15].mxu0 }
 0x244   :  { %v2918_v43 = vmax.f32 %v10088_v13, 0.0  ;;  %9905 = vmatmul.mubr.msk.bf16.vlgmr.msra.gmra.mrb[16].mxu1 %vm61_vm8, %v4078_v53  ;;  %v10402_v13 = vld [vmem:[%s12988_s3 + $0x128] sm:$0xff]  }
 0x245   :  { %9619 = vmatpush3.bf16.msra.mxu0 %v10386_v30  ;;  %9909 = vmatpush3.bf16.msra.mxu1 %v10387_v21 }
 0x246   :  { %v2921_v20 = vcombine.low %v2917_v16, %v2918_v43  ;;  %v1369_v6 = vpop.permute.xlu1 %1368  ;;  %9620 = vmatprep.subr.bf16.mxu0 %v10388_v14  ;;  %9910 = vmatprep.subr.bf16.mxu1 %v11373_v36 }
 0x247   :  { %v1372_v52 = vrot.slane %v1369_v6, 7  ;;  %9916 = vmatprep.mubr.msk.bf16.mxu1 %vm10740_vm9, %v11373_v36 }
 0x248   :  { %v2928_v26 = vrot.slane %v2921_v20, %v11439_v56  ;;  %v1371_v60 = vpop.permute.xlu0 %1370  ;;  %v10405_v20 = vld [vmem:[%s12988_s3 + $0x130] sm:$0xff]  }
 0x249   :  { %v1374_v22 = vsel %vm581_vm12, %v1372_v52, %v1369_v6  ;;  %9621 = vmatpush3.bf16.msra.mxu0 %v10389_v4  ;;  %9911 = vmatpush3.bf16.msra.mxu1 %v10390_v17  ;;  %v1373_v61 = vrot.slane %v1371_v60, 7  ;;  %v10406_v52 = vld [vmem:[%s12988_s3 + $0xf0] sm:$0xff]  }
 0x24a   :  { %1379 = vst.msk [vmem:[#allocation3 + $0x3] ss:$8 sm:$0x7] %vm11592_vm13, %v1374_v22  ;;  %9622 = vmatprep.subr.bf16.mxu0 %v10391_v12  ;;  %9912 = vmatprep.subr.bf16.mxu1 %v11373_v36  ;;  %v2936_v59 = vrot.slane %v2928_v26, %v11439_v56  ;;  %v2929_v18 = vcombine.high %v2928_v26, %v2928_v26 }
 0x24b   :  { %v1375_v29 = vsel %vm581_vm12, %v1373_v61, %v1371_v60 }
 0x24c   :  { %1382 = vst.msk [vmem:[#allocation3 + $0x33] ss:$8 sm:$0x7] %vm11592_vm13, %v1375_v29  ;;  %2944 = vrot.lane.b32.xlu1 %v2936_v59, %s10742_s26  ;;  %v2943_v57 = vrot.slane %v2929_v18, %v11439_v56 }
 0x24d   :  { %9623 = vmatpush3.bf16.msra.mxu0 %v10392_v46  ;;  %9913 = vmatpush3.bf16.msra.mxu1 %v10393_v45 }
 0x24e   :  { %2946 = vrot.lane.b32.xlu0 %v2943_v57, %s10742_s26  ;;  %9624 = vmatprep.subr.bf16.mxu0 %v10394_v33  ;;  %v10407_v33 = vld [vmem:[%s12988_s3 + $0xb0] sm:$0xff]   ;;  %v10409_v57 = vld [vmem:[%s12988_s3 + $0xf8] sm:$0xff]  }
 0x24f   :  { %9914 = vmatprep.subr.bf16.mxu1 %v11373_v36 }
 0x251   :  { %9625 = vmatpush3.bf16.msra.mxu0 %v10395_v28  ;;  %9915 = vmatpush3.bf16.msra.mxu1 %v10396_v32  ;;  %v11773_v0 = vld [vmem:[#allocation3 + $0x3] ss:$8 sm:$0x7] }
 0x252   :  { %9626 = vmatprep.subr.bf16.mxu0 %v10397_v49  ;;  %9920 = vmatprep.subr.bf16.mxu1 %v11373_v36  ;;  %v4647_v7 = vrot.slane %v11773_v0, %v11393_v31  ;;  %v4651_v58 = vrot.slane %v11773_v0, %v11402_v39  ;;  %v10410_v32 = vld [vmem:[%s12988_s3 + $0x180] sm:$0xff]   ;;  %v10411_v49 = vld [vmem:[%s12988_s3 + $0xb8] sm:$0xff]  }
 0x253   :  { %v11781_v9 = vld [vmem:[#allocation3 + $0x33] ss:$8 sm:$0x7] }
 0x254   :  { %9917 = vmatmul.mubr.msk.bf16.vlgmr.msra.gmra.mrb[24].mxu1 %vm61_vm8, %v4429_v55  ;;  %v3302_v27 = vpop.f32.mrb[12].mxu1  ;;  %v4659_v3 = vrot.slane %v11781_v9, %v11393_v31  ;;  %v4663_v50 = vrot.slane %v11781_v9, %v11402_v39  ;;  %v4671_v53 = vpack.c.bf16 %v4647_v7, %v4647_v7  ;;  %v4672_v6 = vpack.c.bf16 %v4651_v58, %v4651_v58  ;;  %v10415_v55 = vld [vmem:[%s12988_s3 + $0xc0] sm:$0xff]   ;;  %v10420_v58 = vld [vmem:[%s12988_s3 + $0x150] sm:$0xff]  }
 0x255   :  { %v10089_v30 = vadd.f32 %v3302_v27, %v11405_v41  ;;  %9627 = vmatpush3.bf16.msra.mxu0 %v10398_v34  ;;  %9921 = vmatpush3.bf16.msra.mxu1 %v10399_v54  ;;  %v3304_v21 = vpop.f32.mrb[13].mxu1  ;;  %v10403_v41 = vld [vmem:[%s12988_s3 + $0xe8] sm:$0xff]   ;;  %v10413_v34 = vld [vmem:[%s12988_s3 + $0x100] sm:$0xff]   ;;  %v4655_v63 = vrot.slane %v11781_v9, %v11388_v11  ;;  %v10418_v27 = vld [vmem:[%s12988_s3 + $0x190] sm:$0xff]  }
 0x256   :  { %v10090_v14 = vadd.f32 %v3304_v21, %v11412_v42  ;;  %v3306_v15 = vpop.f32.mrb[14].mxu1  ;;  %9639 = vmatprep.subr.bf16.mxu0 %v10400_v62  ;;  %9922 = vmatprep.subr.bf16.mxu1 %v11373_v36  ;;  %v4674_v16 = vpack.c.bf16 %v4659_v3, %v4659_v3  ;;  %v4675_v2 = vpack.c.bf16 %v4663_v50, %v4663_v50  ;;  %v10404_v42 = vld [vmem:[%s12988_s3 + $0xa8] sm:$0xff]   ;;  %v4723_v8 = vunpack.c.l.b16 %v4671_v53 }
 0x257   :  { %v3311_v43 = vmax.f32 %v10089_v30, 0.0  ;;  %v3307_v40 = vpop.f32.mrb[15].mxu1  ;;  %9928 = vmatprep.mubr.msk.bf16.mxu1 %vm10740_vm9, %v11373_v36  ;;  %v4724_v59 = vunpack.c.l.b16 %v4672_v6  ;;  %v10414_v54 = vld [vmem:[%s12988_s3 + $0x188] sm:$0xff]   ;;  %v4673_v50 = vpack.c.bf16 %v4655_v63, %v4655_v63  ;;  %v4643_v53 = vrot.slane %v11773_v0, %v11388_v11  ;;  %v10421_v15 = vld [vmem:[%s12988_s3 + $0x110] sm:$0xff]   ;;  %v10425_v6 = vld [vmem:[%s12988_s3 + $0x118] sm:$0xff]  }
 0x258   :  { %v3312_v4 = vmax.f32 %v10090_v14, 0.0  ;;  %4588 = vmatmul.mubr.bf16.vlgmr.msra.gmra.mrb[24].mxu0 %v4427_v51  ;;  %v4726_v17 = vunpack.c.l.b16 %v4674_v16  ;;  %v4727_v48 = vunpack.c.l.b16 %v4675_v2  ;;  %v10416_v62 = vld [vmem:[%s12988_s3 + $0x148] sm:$0xff]  }
 0x259   :  { %9640 = vmatpush3.bf16.msra.mxu0 %v10401_v38  ;;  %9923 = vmatpush3.bf16.msra.mxu1 %v10402_v13  ;;  %v10417_v9 = vld [vmem:[%s12988_s3 + $0x108] sm:$0xff]  }
 0x25a   :  { %v3315_v12 = vcombine.low %v3311_v43, %v3312_v4  ;;  %v1763_v24 = vpop.permute.xlu1 %1762  ;;  %9641 = vmatprep.subr.bf16.mxu0 %v10403_v41  ;;  %9924 = vmatprep.subr.bf16.mxu1 %v11373_v36  ;;  %v4730_v26 = vrot.slane %v4726_v17, 7  ;;  %v4732_v37 = vrot.slane %v4727_v48, 7  ;;  %v10419_v13 = vld [vmem:[%s12988_s3 + $0xc8] sm:$0xff]   ;;  %v10422_v41 = vld [vmem:[%s12988_s3 + $0x198] sm:$0xff]   ;;  %v4725_v43 = vunpack.c.l.b16 %v4673_v50  ;;  %v10423_v17 = vld [vmem:[%s12988_s3 + $0xd0] sm:$0xff]  }
 0x25b   :  { %v1766_v60 = vrot.slane %v1763_v24, 7  ;;  %v10424_v48 = vld [vmem:[%s12988_s3 + $0x158] sm:$0xff]  }
 0x25c   :  { %v3322_v22 = vrot.slane %v3315_v12, %v11439_v56  ;;  %v1765_v61 = vpop.permute.xlu0 %1764  ;;  %v4731_v46 = vsel %vm200_vm1, %v4730_v26, %v4723_v8  ;;  %v4733_v28 = vsel %vm200_vm1, %v4732_v37, %v4724_v59  ;;  %v10426_v12 = vld [vmem:[%s12988_s3 + $0x1a0] sm:$0xff]   ;;  %v4728_v8 = vrot.slane %v4725_v43, 7  ;;  %v10429_v59 = vld [vmem:[%s12988_s3 + $0x1a8] sm:$0xff]   ;;  %v10443_v43 = vld [vmem:[%s12988_s3 + $0x18] sm:$0xff]  }
 0x25d   :  { %v1768_v45 = vsel %vm581_vm12, %v1766_v60, %v1763_v24  ;;  %9642 = vmatpush3.bf16.msra.mxu0 %v10404_v42  ;;  %9925 = vmatpush3.bf16.msra.mxu1 %v10405_v20  ;;  %v1767_v47 = vrot.slane %v1765_v61, 7  ;;  %v4735_v18 = vpack.c.b16 %v4731_v46, %v4731_v46  ;;  %v4736_v25 = vpack.c.b16 %v4733_v28, %v4733_v28  ;;  %v10428_v46 = vld [vmem:[%s12988_s3 + $0x160] sm:$0xff]  }
 0x25e   :  { %1773 = vst.msk [vmem:[#allocation3 + $0x4] ss:$8 sm:$0x7] %vm11592_vm13, %v1768_v45  ;;  %9643 = vmatprep.subr.bf16.mxu0 %v10406_v52  ;;  %9926 = vmatprep.subr.bf16.mxu1 %v11373_v36  ;;  %v3330_v29 = vrot.slane %v3322_v22, %v11439_v56  ;;  %v3323_v44 = vcombine.high %v3322_v22, %v3322_v22 }
 0x25f   :  { %v1769_v23 = vsel %vm581_vm12, %v1767_v47, %v1765_v61  ;;  %4894 = vmatprep.mubr.bf16.mxu0 %v4735_v18  ;;  %v4670_v42 = vpack.c.bf16 %v4643_v53, %v4643_v53  ;;  %v10427_v61 = vld [vmem:[%s12988_s3 + $0xd8] sm:$0xff]   ;;  %v10430_v18 = vld [vmem:[%s12988_s3 + $0x40] sm:$0xff]   ;;  %v10440_v53 = vld [vmem:[%s12988_s3 + $0x10] sm:$0xff]  }
 0x260   :  { %1776 = vst.msk [vmem:[#allocation3 + $0x34] ss:$8 sm:$0x7] %vm11592_vm13, %v1769_v23  ;;  %3338 = vrot.lane.b32.xlu1 %v3330_v29, %s10742_s26  ;;  %v3337_v35 = vrot.slane %v3323_v44, %v11439_v56  ;;  %v10431_v44 = vld [vmem:[%s12988_s3 + $0x168] sm:$0xff]  }
 0x261   :  { %9644 = vmatpush3.bf16.msra.mxu0 %v10407_v33  ;;  %9927 = vmatpush3.bf16.msra.mxu1 %v10408_v5  ;;  %v4722_v45 = vunpack.c.l.b16 %v4670_v42 }
 0x262   :  { %3340 = vrot.lane.b32.xlu0 %v3337_v35, %s10742_s26  ;;  %9645 = vmatprep.subr.bf16.mxu0 %v10409_v57  ;;  %v10432_v57 = vld [vmem:[%s12988_s3] sm:$0xff]   ;;  %v10433_v35 = vld [vmem:[%s12988_s3 + $0x1b0] sm:$0xff]  }
 0x263   :  { %9666 = vmatprep.subr.bf16.mxu1 %v10410_v32  ;;  %v4729_v33 = vsel %vm200_vm1, %v4728_v8, %v4722_v45  ;;  %v10450_v45 = vld [vmem:[%s12988_s3 + $0x70] sm:$0xff]  }
 0x264   :  { %9929 = vmatmul.mubr.msk.bf16.vlgmr.msra.gmra.mrb[24].mxu1 %vm61_vm8, %v4736_v25  ;;  %v4734_v32 = vpack.c.b16 %v4729_v33, %v4729_v33  ;;  %v10451_v33 = vld [vmem:[%s12988_s3 + $0x1d8] sm:$0xff]  }
 0x265   :  { %9646 = vmatpush3.bf16.msra.mxu0 %v10411_v49  ;;  %9667 = vmatpush3.bf16.msra.mxu1 %v10412_v19  ;;  %v11865_v7 = vld [vmem:[#allocation3 + $0x4] ss:$8 sm:$0x7]  ;;  %v10434_v49 = vld [vmem:[%s12988_s3 + $0x48] sm:$0xff]  }
 0x266   :  { %9647 = vmatprep.subr.bf16.mxu0 %v10413_v34  ;;  %9668 = vmatprep.subr.bf16.mxu1 %v10414_v54  ;;  %v4954_v51 = vrot.slane %v11865_v7, %v11393_v31  ;;  %v11881_v38 = vld [vmem:[#allocation3 + $0x4] ss:$8 sm:$0x7]  ;;  %v4950_v28 = vrot.slane %v11865_v7, %v11388_v11  ;;  %v10436_v54 = vld [vmem:[%s12988_s3 + $0x8] sm:$0xff]  }
 0x267   :  { %v11875_v3 = vld [vmem:[#allocation3 + $0x34] ss:$8 sm:$0x7]  ;;  %v5303_v40 = vrot.slane %v11881_v38, %v11393_v31 }
 0x268   :  { %v11877_v30 = vld [vmem:[#allocation3 + $0x34] ss:$8 sm:$0x7]  ;;  %v4966_v21 = vrot.slane %v11875_v3, %v11393_v31  ;;  %v4978_v16 = vpack.c.bf16 %v4954_v51, %v4954_v51  ;;  %v4962_v60 = vrot.slane %v11875_v3, %v11388_v11  ;;  %v4977_v63 = vpack.c.bf16 %v4950_v28, %v4950_v28 }
 0x269   :  { %9648 = vmatpush3.bf16.msra.mxu0 %v10415_v55  ;;  %9669 = vmatpush3.bf16.msra.mxu1 %v10416_v62  ;;  %v5315_v14 = vrot.slane %v11877_v30, %v11393_v31  ;;  %v5327_v26 = vpack.c.bf16 %v5303_v40, %v5303_v40  ;;  %v10435_v34 = vld [vmem:[%s12988_s3 + $0x170] sm:$0xff]   ;;  %v9547_v55 = vpop.f32.mrb[16].mxu0  ;;  %v10437_v62 = vld [vmem:[%s12988_s3 + $0x1b8] sm:$0xff]  }
 0x26a   :  { %9649 = vmatprep.subr.bf16.mxu0 %v10417_v9  ;;  %9670 = vmatprep.subr.bf16.mxu1 %v10418_v27  ;;  %v4981_v2 = vpack.c.bf16 %v4966_v21, %v4966_v21  ;;  %v5030_v24 = vunpack.c.l.b16 %v4978_v16  ;;  %v4980_v29 = vpack.c.bf16 %v4962_v60, %v4962_v60  ;;  %v10438_v9 = vld [vmem:[%s12988_s3 + $0x50] sm:$0xff]   ;;  %v9548_v27 = vpop.f32.mrb[17].mxu0 }
 0x26b   :  { %v5330_v0 = vpack.c.bf16 %v5315_v14, %v5315_v14  ;;  %v5379_v5 = vunpack.c.l.b16 %v5327_v26  ;;  %v11956_v50 = vadd.f32 %v9548_v27, %v9547_v55  ;;  %v9550_v21 = vpop.f32.mrb[18].mxu0  ;;  %v5029_v14 = vunpack.c.l.b16 %v4977_v63  ;;  %v10457_v55 = vld [vmem:[%s12988_s3 + $0xe8] sm:$0xff]  }
 0x26c   :  { %v5033_v4 = vunpack.c.l.b16 %v4981_v2  ;;  %v5032_v19 = vunpack.c.l.b16 %v4980_v29  ;;  %v10442_v2 = vld [vmem:[%s12988_s3 + $0x1c0] sm:$0xff]   ;;  %v5319_v27 = vrot.slane %v11877_v30, %v11402_v39 }
 0x26d   :  { %9650 = vmatpush3.bf16.msra.mxu0 %v10419_v13  ;;  %9671 = vmatpush3.bf16.msra.mxu1 %v10420_v58  ;;  %v5382_v20 = vunpack.c.l.b16 %v5330_v0  ;;  %v9551_v13 = vpop.f32.mrb[19].mxu0  ;;  %v10439_v58 = vld [vmem:[%s12988_s3 + $0x178] sm:$0xff]  }
 0x26e   :  { %9651 = vmatprep.subr.bf16.mxu0 %v10421_v15  ;;  %9672 = vmatprep.subr.bf16.mxu1 %v10422_v41  ;;  %v5037_v52 = vrot.slane %v5033_v4, 7  ;;  %v5035_v51 = vrot.slane %v5032_v19, 7  ;;  %v10441_v15 = vld [vmem:[%s12988_s3 + $0x58] sm:$0xff]   ;;  %v4970_v41 = vrot.slane %v11875_v3, %v11402_v39  ;;  %v10444_v3 = vld [vmem:[%s12988_s3 + $0x60] sm:$0xff]  }
 0x26f   :  { %v5386_v47 = vrot.slane %v5382_v20, 7  ;;  %v4958_v20 = vrot.slane %v11865_v7, %v11402_v39  ;;  %v10447_v7 = vld [vmem:[%s12988_s3 + $0x68] sm:$0xff]   ;;  %v10458_v13 = vld [vmem:[%s12988_s3 + $0x80] sm:$0xff]  }
 0x270   :  { %v5038_v37 = vsel %vm200_vm1, %v5037_v52, %v5030_v24  ;;  %v5036_v16 = vsel %vm200_vm1, %v5035_v51, %v5029_v14  ;;  %v4982_v4 = vpack.c.bf16 %v4970_v41, %v4970_v41  ;;  %v10445_v24 = vld [vmem:[%s12988_s3 + $0x1c8] sm:$0xff]   ;;  %v10446_v52 = vld [vmem:[%s12988_s3 + $0x20] sm:$0xff]  }
 0x271   :  { %9652 = vmatpush3.bf16.msra.mxu0 %v10423_v17  ;;  %9673 = vmatpush3.bf16.msra.mxu1 %v10424_v48  ;;  %v5042_v22 = vpack.c.b16 %v5038_v37, %v5038_v37  ;;  %v5387_v23 = vsel %vm200_vm1, %v5386_v47, %v5379_v5  ;;  %v5041_v0 = vpack.c.b16 %v5036_v16, %v5036_v16  ;;  %v10452_v5 = vld [vmem:[%s12988_s3 + $0x30] sm:$0xff]  }
 0x272   :  { %9653 = vmatprep.subr.bf16.mxu0 %v10425_v6  ;;  %9674 = vmatprep.subr.bf16.mxu1 %v10426_v12  ;;  %v5391_v25 = vpack.c.b16 %v5387_v23, %v5387_v23  ;;  %v5311_v48 = vrot.slane %v11877_v30, %v11388_v11  ;;  %v5034_v8 = vunpack.c.l.b16 %v4982_v4  ;;  %v4979_v37 = vpack.c.bf16 %v4958_v20, %v4958_v20  ;;  %v10454_v23 = vld [vmem:[%s12988_s3 + $0xe0] sm:$0xff]   ;;  %v10460_v30 = vld [vmem:[%s12988_s3 + $0xf0] sm:$0xff]  }
 0x273   :  { %5201 = vmatprep.mubr.bf16.mxu1 %v5042_v22  ;;  %v10448_v22 = vld [vmem:[%s12988_s3 + $0x1d0] sm:$0xff]   ;;  %v5331_v16 = vpack.c.bf16 %v5319_v27, %v5319_v27 }
 0x274   :  { %v5329_v60 = vpack.c.bf16 %v5311_v48, %v5311_v48  ;;  %v5039_v47 = vrot.slane %v5034_v8, 7  ;;  %v10461_v48 = vld [vmem:[%s12988_s3 + $0x88] sm:$0xff]  }
 0x275   :  { %9654 = vmatpush3.bf16.msra.mxu0 %v10427_v61  ;;  %9675 = vmatpush3.bf16.msra.mxu1 %v10428_v46  ;;  %v10449_v61 = vld [vmem:[%s12988_s3 + $0x28] sm:$0xff]   ;;  %v5299_v46 = vrot.slane %v11881_v38, %v11388_v11  ;;  %v5383_v20 = vunpack.c.l.b16 %v5331_v16 }
 0x276   :  { %9676 = vmatprep.subr.bf16.mxu1 %v10429_v59  ;;  %9693 = vmatprep.subr.bf16.mxu0 %v10430_v18  ;;  %v5381_v59 = vunpack.c.l.b16 %v5329_v60  ;;  %v5031_v18 = vunpack.c.l.b16 %v4979_v37  ;;  %v10467_v37 = vld [vmem:[%s12988_s3 + $0x98] sm:$0xff]  }
 0x277   :  { %v5326_v29 = vpack.c.bf16 %v5299_v46, %v5299_v46  ;;  %v5388_v8 = vrot.slane %v5383_v20, 7 }
 0x278   :  { %4895 = vmatmul.mubr.bf16.vlgmr.msra.gmra.mrb[28].mxu0 %v4734_v32  ;;  %v5040_v32 = vsel %vm200_vm1, %v5039_v47, %v5031_v18 }
 0x279   :  { %9677 = vmatpush3.bf16.msra.mxu1 %v10431_v44  ;;  %9694 = vmatpush3.bf16.msra.mxu0 %v10432_v57  ;;  %v10453_v57 = vld [vmem:[%s12988_s3 + $0x78] sm:$0xff]   ;;  %v5043_v63 = vpack.c.b16 %v5040_v32, %v5040_v32 }
 0x27a   :  { %5550 = vmatprep.mubr.bf16.mxu0 %v5391_v25  ;;  %9678 = vmatprep.subr.bf16.mxu1 %v10433_v35  ;;  %v5384_v35 = vrot.slane %v5381_v59, 7  ;;  %v10455_v25 = vld [vmem:[%s12988_s3 + $0x38] sm:$0xff]  }
 0x27b   :  { %9695 = vmatprep.subr.bf16.mxu0 %v10434_v49 }
 0x27d   :  { %9679 = vmatpush3.bf16.msra.mxu1 %v10435_v34  ;;  %9696 = vmatpush3.bf16.msra.mxu0 %v10436_v54  ;;  %v10456_v34 = vld [vmem:[%s12988_s3 + $0xa0] sm:$0xff]   ;;  %v5378_v54 = vunpack.c.l.b16 %v5326_v29  ;;  %v10470_v29 = vld [vmem:[%s12988_s3 + $0xc8] sm:$0xff]  }
 0x27e   :  { %9680 = vmatprep.subr.bf16.mxu1 %v10437_v62  ;;  %9697 = vmatprep.subr.bf16.mxu0 %v10438_v9 }
 0x27f   :  { %v5385_v51 = vsel %vm200_vm1, %v5384_v35, %v5378_v54  ;;  %v10472_v35 = vld [vmem:[%s12988_s3 + $0x110] sm:$0xff]  }
 0x280   :  { %v5390_v14 = vpack.c.b16 %v5385_v51, %v5385_v51 }
 0x281   :  { %9681 = vmatpush3.bf16.msra.mxu1 %v10439_v58  ;;  %9698 = vmatpush3.bf16.msra.mxu0 %v10440_v53  ;;  %v10459_v58 = vld [vmem:[%s12988_s3 + $0xa8] sm:$0xff]  }
 0x282   :  { %v2157_v40 = vpop.permute.xlu1 %2156  ;;  %9932 = vmatprep.subr.bf16.mxu1 %v11373_v36  ;;  %9699 = vmatprep.subr.bf16.mxu0 %v10441_v15 }
 0x283   :  { %v2160_v17 = vrot.slane %v2157_v40, 7 }
 0x284   :  { %5202 = vmatmul.mubr.bf16.vlgmr.msra.gmra.mrb[28].mxu1 %v5041_v0  ;;  %v2159_v42 = vpop.permute.xlu0 %2158  ;;  %v5307_v0 = vrot.slane %v11881_v38, %v11402_v39  ;;  %v10463_v38 = vld [vmem:[%s12988_s3 + $0xf8] sm:$0xff]  }
 0x285   :  { %v2162_v6 = vsel %vm581_vm12, %v2160_v17, %v2157_v40  ;;  %9933 = vmatpush3.bf16.msra.mxu1 %v10442_v2  ;;  %9700 = vmatpush3.bf16.msra.mxu0 %v10443_v43  ;;  %v2161_v12 = vrot.slane %v2159_v42, 7 }
 0x286   :  { %2167 = vst.msk [vmem:[#allocation3 + $0x5] ss:$8 sm:$0x7] %vm11592_vm13, %v2162_v6  ;;  %9934 = vmatprep.subr.bf16.mxu1 %v11373_v36  ;;  %9701 = vmatprep.subr.bf16.mxu0 %v10444_v3 }
 0x287   :  { %v2163_v26 = vsel %vm581_vm12, %v2161_v12, %v2159_v42  ;;  %9940 = vmatprep.mubr.msk.bf16.mxu1 %vm10740_vm9, %v11373_v36  ;;  %v10462_v42 = vld [vmem:[%s12988_s3 + $0xb0] sm:$0xff]   ;;  %v5328_v12 = vpack.c.bf16 %v5307_v0, %v5307_v0 }
 0x288   :  { %2170 = vst.msk [vmem:[#allocation3 + $0x35] ss:$8 sm:$0x7] %vm11592_vm13, %v2163_v26 }
 0x289   :  { %9935 = vmatpush3.bf16.msra.mxu1 %v10445_v24  ;;  %9702 = vmatpush3.bf16.msra.mxu0 %v10446_v52  ;;  %v10464_v24 = vld [vmem:[%s12988_s3 + $0x90] sm:$0xff]   ;;  %v10465_v52 = vld [vmem:[%s12988_s3 + $0xb8] sm:$0xff]   ;;  %v5380_v60 = vunpack.c.l.b16 %v5328_v12  ;;  %v10481_v12 = vld [vmem:[%s12988_s3 + $0x180] sm:$0xff]  }
 0x28a   :  { %9936 = vmatprep.subr.bf16.mxu1 %v11373_v36  ;;  %9703 = vmatprep.subr.bf16.mxu0 %v10447_v7  ;;  %v10466_v7 = vld [vmem:[%s12988_s3 + $0x100] sm:$0xff]  }
 0x28d   :  { %9937 = vmatpush3.bf16.msra.mxu1 %v10448_v22  ;;  %9704 = vmatpush3.bf16.msra.mxu0 %v10449_v61  ;;  %v12020_v44 = vld [vmem:[#allocation3 + $0x5] ss:$8 sm:$0x7]  ;;  %v10469_v61 = vld [vmem:[%s12988_s3 + $0x108] sm:$0xff]  }
 0x28e   :  { %9938 = vmatprep.subr.bf16.mxu1 %v11373_v36  ;;  %9705 = vmatprep.subr.bf16.mxu0 %v10450_v45  ;;  %v5610_v28 = vrot.slane %v12020_v44, %v11393_v31  ;;  %v10468_v22 = vld [vmem:[%s12988_s3 + $0xc0] sm:$0xff]   ;;  %v5389_v45 = vsel %vm200_vm1, %v5388_v8, %v5380_v60 }
 0x28f   :  { %v12032_v49 = vld [vmem:[#allocation3 + $0x35] ss:$8 sm:$0x7]  ;;  %v5392_v32 = vpack.c.b16 %v5389_v45, %v5389_v45 }
 0x290   :  { %v5622_v19 = vrot.slane %v12032_v49, %v11393_v31  ;;  %v5634_v62 = vpack.c.bf16 %v5610_v28, %v5610_v28  ;;  %v5618_v26 = vrot.slane %v12032_v49, %v11388_v11  ;;  %v5626_v46 = vrot.slane %v12032_v49, %v11402_v39  ;;  %v10483_v60 = vld [vmem:[%s12988_s3 + $0x140] sm:$0xff]   ;;  %v10486_v45 = vld [vmem:[%s12988_s3 + $0x50] sm:$0xff]  }
 0x291   :  { %9939 = vmatpush3.bf16.msra.mxu1 %v10451_v33  ;;  %9706 = vmatpush3.bf16.msra.mxu0 %v10452_v5 }
 0x292   :  { %9707 = vmatprep.subr.bf16.mxu0 %v10453_v57  ;;  %9720 = vmatprep.subr.bf16.mxu1 %v10454_v23  ;;  %v5637_v9 = vpack.c.bf16 %v5622_v19, %v5622_v19  ;;  %v5686_v15 = vunpack.c.l.b16 %v5634_v62  ;;  %v5636_v47 = vpack.c.bf16 %v5618_v26, %v5618_v26  ;;  %v10471_v57 = vld [vmem:[%s12988_s3 + $0x120] sm:$0xff]   ;;  %v5606_v23 = vrot.slane %v12020_v44, %v11388_v11  ;;  %v10473_v62 = vld [vmem:[%s12988_s3 + $0xd0] sm:$0xff]  }
 0x293   :  { %v5638_v19 = vpack.c.bf16 %v5626_v46, %v5626_v46 }
 0x294   :  { %9941 = vmatmul.mubr.msk.bf16.vlgmr.msra.gmra.mrb[24].mxu1 %vm61_vm8, %v5043_v63  ;;  %v5689_v21 = vunpack.c.l.b16 %v5637_v9  ;;  %v10474_v9 = vld [vmem:[%s12988_s3 + $0x128] sm:$0xff]   ;;  %v5633_v27 = vpack.c.bf16 %v5606_v23, %v5606_v23  ;;  %v10491_v23 = vld [vmem:[%s12988_s3 + $0x150] sm:$0xff]  }
 0x295   :  { %9708 = vmatpush3.bf16.msra.mxu0 %v10455_v25  ;;  %9721 = vmatpush3.bf16.msra.mxu1 %v10456_v34  ;;  %v5688_v25 = vunpack.c.l.b16 %v5636_v47  ;;  %v10487_v47 = vld [vmem:[%s12988_s3 + $0x148] sm:$0xff]  }
 0x296   :  { %v2551_v53 = vpop.permute.xlu1 %2550  ;;  %9944 = vmatprep.subr.bf16.mxu0 %v11373_v36  ;;  %9722 = vmatprep.subr.bf16.mxu1 %v10457_v55  ;;  %v5693_v41 = vrot.slane %v5689_v21, 7  ;;  %v5614_v55 = vrot.slane %v12020_v44, %v11402_v39  ;;  %v10475_v21 = vld [vmem:[%s12988_s3 + $0x118] sm:$0xff]   ;;  %v5685_v16 = vunpack.c.l.b16 %v5633_v27  ;;  %v10497_v27 = vld [vmem:[%s12988_s3 + $0x1a0] sm:$0xff]  }
 0x297   :  { %v2554_v2 = vrot.slane %v2551_v53, 7 }
 0x298   :  { %5551 = vmatmul.mubr.bf16.vlgmr.msra.gmra.mrb[32].mxu0 %v5390_v14  ;;  %v2553_v43 = vpop.permute.xlu0 %2552  ;;  %v5694_v40 = vsel %vm200_vm1, %v5693_v41, %v5686_v15  ;;  %v10476_v15 = vld [vmem:[%s12988_s3 + $0xd8] sm:$0xff]   ;;  %v10477_v41 = vld [vmem:[%s12988_s3 + $0x130] sm:$0xff]  }
 0x299   :  { %v2556_v3 = vsel %vm581_vm12, %v2554_v2, %v2551_v53  ;;  %9945 = vmatpush3.bf16.msra.mxu0 %v10458_v13  ;;  %9723 = vmatpush3.bf16.msra.mxu1 %v10459_v58  ;;  %v2555_v4 = vrot.slane %v2553_v43, 7  ;;  %v5698_v17 = vpack.c.b16 %v5694_v40, %v5694_v40  ;;  %v5690_v13 = vunpack.c.l.b16 %v5638_v19  ;;  %v10494_v19 = vld [vmem:[%s12988_s3 + $0x60] sm:$0xff]  }
 0x29a   :  { %2561 = vst.msk [vmem:[#allocation3 + $0x6] ss:$8 sm:$0x7] %vm11592_vm13, %v2556_v3  ;;  %9946 = vmatprep.subr.bf16.mxu0 %v11373_v36  ;;  %9724 = vmatprep.subr.bf16.mxu1 %v10460_v30  ;;  %v5691_v58 = vrot.slane %v5688_v25, 7  ;;  %v5635_v30 = vpack.c.bf16 %v5614_v55, %v5614_v55 }
 0x29b   :  { %v2557_v6 = vsel %vm581_vm12, %v2555_v4, %v2553_v43  ;;  %5857 = vmatprep.mubr.bf16.mxu1 %v5698_v17  ;;  %9952 = vmatprep.mubr.msk.bf16.mxu0 %vm10740_vm9, %v11373_v36  ;;  %v10478_v43 = vld [vmem:[%s12988_s3 + $0x40] sm:$0xff]   ;;  %v5695_v0 = vrot.slane %v5690_v13, 7 }
 0x29c   :  { %2564 = vst.msk [vmem:[#allocation3 + $0x36] ss:$8 sm:$0x7] %vm11592_vm13, %v2557_v6  ;;  %v5692_v3 = vsel %vm200_vm1, %v5691_v58, %v5685_v16  ;;  %v10499_v58 = vld [vmem:[%s12988_s3 + $0x160] sm:$0xff]  }
 0x29d   :  { %9947 = vmatpush3.bf16.msra.mxu0 %v10461_v48  ;;  %9725 = vmatpush3.bf16.msra.mxu1 %v10462_v42  ;;  %v5687_v48 = vunpack.c.l.b16 %v5635_v30  ;;  %v10479_v42 = vld [vmem:[%s12988_s3 + $0x138] sm:$0xff]   ;;  %v5697_v6 = vpack.c.b16 %v5692_v3, %v5692_v3 }
 0x29e   :  { %9948 = vmatprep.subr.bf16.mxu0 %v11373_v36  ;;  %9726 = vmatprep.subr.bf16.mxu1 %v10463_v38  ;;  %v10480_v38 = vld [vmem:[%s12988_s3] sm:$0xff]  }
 0x2a1   :  { %9949 = vmatpush3.bf16.msra.mxu0 %v10464_v24  ;;  %9727 = vmatpush3.bf16.msra.mxu1 %v10465_v52  ;;  %v12109_v33 = vld [vmem:[#allocation3 + $0x6] ss:$8 sm:$0x7]  ;;  %v5696_v52 = vsel %vm200_vm1, %v5695_v0, %v5687_v48 }
 0x2a2   :  { %9950 = vmatprep.subr.bf16.mxu0 %v11373_v36  ;;  %9728 = vmatprep.subr.bf16.mxu1 %v10466_v7  ;;  %v6266_v34 = vrot.slane %v12109_v33, %v11393_v31  ;;  %v12129_v54 = vld [vmem:[#allocation3 + $0x6] ss:$8 sm:$0x7]  ;;  %v10482_v7 = vld [vmem:[%s12988_s3 + $0x48] sm:$0xff]   ;;  %v6262_v30 = vrot.slane %v12109_v33, %v11388_v11 }
 0x2a3   :  { %v12105_v59 = vld [vmem:[#allocation3 + $0x36] ss:$8 sm:$0x7]  ;;  %v5917_v44 = vrot.slane %v12129_v54, %v11393_v31 }
 0x2a4   :  { %v12107_v18 = vld [vmem:[#allocation3 + $0x36] ss:$8 sm:$0x7]  ;;  %v6278_v5 = vrot.slane %v12105_v59, %v11393_v31  ;;  %v6290_v53 = vpack.c.bf16 %v6266_v34, %v6266_v34  ;;  %v6274_v34 = vrot.slane %v12105_v59, %v11388_v11  ;;  %v6289_v3 = vpack.c.bf16 %v6262_v30, %v6262_v30 }
 0x2a5   :  { %9951 = vmatpush3.bf16.msra.mxu0 %v10467_v37  ;;  %9729 = vmatpush3.bf16.msra.mxu1 %v10468_v22  ;;  %v5929_v28 = vrot.slane %v12107_v18, %v11393_v31  ;;  %v5941_v40 = vpack.c.bf16 %v5917_v44, %v5917_v44  ;;  %v5699_v37 = vpack.c.b16 %v5696_v52, %v5696_v52  ;;  %v10484_v22 = vld [vmem:[%s12988_s3 + $0x8] sm:$0xff]   ;;  %v10505_v0 = vld [vmem:[%s12988_s3 + $0x1b0] sm:$0xff]  }
 0x2a6   :  { %9730 = vmatprep.subr.bf16.mxu1 %v10469_v61  ;;  %9956 = vmatprep.subr.bf16.mxu0 %v11373_v36  ;;  %v6293_v49 = vpack.c.bf16 %v6278_v5, %v6278_v5  ;;  %v6342_v4 = vunpack.c.l.b16 %v6290_v53  ;;  %v10485_v61 = vld [vmem:[%s12988_s3 + $0x188] sm:$0xff]   ;;  %v10488_v5 = vld [vmem:[%s12988_s3 + $0x10] sm:$0xff]   ;;  %v5925_v44 = vrot.slane %v12107_v18, %v11388_v11  ;;  %v6292_v13 = vpack.c.bf16 %v6274_v34, %v6274_v34 }
 0x2a7   :  { %v5944_v63 = vpack.c.bf16 %v5929_v28, %v5929_v28  ;;  %v5993_v24 = vunpack.c.l.b16 %v5941_v40  ;;  %v10500_v53 = vld [vmem:[%s12988_s3 + $0x28] sm:$0xff]   ;;  %v10504_v40 = vld [vmem:[%s12988_s3 + $0x30] sm:$0xff]   ;;  %v6282_v52 = vrot.slane %v12105_v59, %v11402_v39  ;;  %v5933_v59 = vrot.slane %v12107_v18, %v11402_v39  ;;  %v10512_v18 = vld [vmem:[%s12988_s3 + $0x1c0] sm:$0xff]  }
 0x2a8   :  { %9953 = vmatmul.mubr.msk.bf16.vlgmr.msra.gmra.mrb[36].mxu0 %vm61_vm8, %v5392_v32  ;;  %v6345_v51 = vunpack.c.l.b16 %v6293_v49  ;;  %v10492_v32 = vld [vmem:[%s12988_s3 + $0x18] sm:$0xff]   ;;  %v6344_v16 = vunpack.c.l.b16 %v6292_v13 }
 0x2a9   :  { %9731 = vmatpush3.bf16.msra.mxu1 %v10470_v29  ;;  %9957 = vmatpush3.bf16.msra.mxu0 %v10471_v57  ;;  %v5996_v14 = vunpack.c.l.b16 %v5944_v63  ;;  %v10489_v29 = vld [vmem:[%s12988_s3 + $0x190] sm:$0xff]   ;;  %v10490_v57 = vld [vmem:[%s12988_s3 + $0x58] sm:$0xff]  }
 0x2aa   :  { %9732 = vmatprep.subr.bf16.mxu1 %v10472_v35  ;;  %9958 = vmatprep.subr.bf16.mxu0 %v11373_v36  ;;  %v6349_v2 = vrot.slane %v6345_v51, 7  ;;  %v10493_v35 = vld [vmem:[%s12988_s3 + $0x198] sm:$0xff]   ;;  %v6347_v48 = vrot.slane %v6344_v16, 7 }
 0x2ab   :  { %9964 = vmatprep.mubr.msk.bf16.mxu0 %vm10740_vm9, %v11373_v36  ;;  %v6000_v17 = vrot.slane %v5996_v14, 7  ;;  %v10501_v14 = vld [vmem:[%s12988_s3 + $0x1a8] sm:$0xff]  }
 0x2ac   :  { %v6350_v20 = vsel %vm200_vm1, %v6349_v2, %v6342_v4  ;;  %v10503_v2 = vld [vmem:[%s12988_s3 + $0x168] sm:$0xff]   ;;  %v10506_v4 = vld [vmem:[%s12988_s3 + $0x78] sm:$0xff]  }
 0x2ad   :  { %9733 = vmatpush3.bf16.msra.mxu1 %v10473_v62  ;;  %9959 = vmatpush3.bf16.msra.mxu0 %v10474_v9  ;;  %v6354_v8 = vpack.c.b16 %v6350_v20, %v6350_v20  ;;  %v6001_v26 = vsel %vm200_vm1, %v6000_v17, %v5993_v24  ;;  %v10495_v62 = vld [vmem:[%s12988_s3 + $0x158] sm:$0xff]   ;;  %v10496_v9 = vld [vmem:[%s12988_s3 + $0x20] sm:$0xff]  }
 0x2ae   :  { %9734 = vmatprep.subr.bf16.mxu1 %v10475_v21  ;;  %9960 = vmatprep.subr.bf16.mxu0 %v11373_v36  ;;  %v6005_v46 = vpack.c.b16 %v6001_v26, %v6001_v26  ;;  %v10498_v21 = vld [vmem:[%s12988_s3 + $0x68] sm:$0xff]   ;;  %v10508_v20 = vld [vmem:[%s12988_s3 + $0x38] sm:$0xff]  }
 0x2b1   :  { %9735 = vmatpush3.bf16.msra.mxu1 %v10476_v15  ;;  %9961 = vmatpush3.bf16.msra.mxu0 %v10477_v41  ;;  %v10502_v15 = vld [vmem:[%s12988_s3 + $0x70] sm:$0xff]   ;;  %v5943_v41 = vpack.c.bf16 %v5925_v44, %v5925_v44 }
 0x2b2   :  { %9962 = vmatprep.subr.bf16.mxu0 %v11373_v36  ;;  %9774 = vmatprep.subr.bf16.mxu1 %v10478_v43  ;;  %v5913_v43 = vrot.slane %v12129_v54, %v11388_v11  ;;  %v10516_v44 = vld [vmem:[%s12988_s3 + $0x1d0] sm:$0xff]  }
 0x2b3   :  { %v5995_v17 = vunpack.c.l.b16 %v5943_v41 }
 0x2b4   :  { %5858 = vmatmul.mubr.bf16.vlgmr.msra.gmra.mrb[32].mxu1 %v5697_v6  ;;  %v10509_v6 = vld [vmem:[%s12988_s3 + $0x1b8] sm:$0xff]  }
 0x2b5   :  { %9963 = vmatpush3.bf16.msra.mxu0 %v10479_v42  ;;  %9775 = vmatpush3.bf16.msra.mxu1 %v10480_v38  ;;  %v10507_v42 = vld [vmem:[%s12988_s3 + $0x170] sm:$0xff]   ;;  %v5940_v38 = vpack.c.bf16 %v5913_v43, %v5913_v43  ;;  %v5998_v24 = vrot.slane %v5995_v17, 7  ;;  %v10518_v43 = vld [vmem:[%s12988_s3 + $0x1d8] sm:$0xff]  }
 0x2b6   :  { %6513 = vmatprep.mubr.bf16.mxu1 %v6354_v8  ;;  %9747 = vmatprep.subr.bf16.mxu0 %v10481_v12  ;;  %v6341_v12 = vunpack.c.l.b16 %v6289_v3  ;;  %v10510_v8 = vld [vmem:[%s12988_s3 + $0x178] sm:$0xff]   ;;  %v10520_v3 = vld [vmem:[%s12988_s3 + $0xe0] sm:$0xff]  }
 0x2b7   :  { %9776 = vmatprep.subr.bf16.mxu1 %v10482_v7  ;;  %v5992_v26 = vunpack.c.l.b16 %v5940_v38 }
 0x2b8   :  { %9965 = vmatmul.mubr.msk.bf16.vlgmr.msra.gmra.mrb[36].mxu0 %vm61_vm8, %v5699_v37  ;;  %v6348_v7 = vsel %vm200_vm1, %v6347_v48, %v6341_v12 }
 0x2b9   :  { %9748 = vmatpush3.bf16.msra.mxu0 %v10483_v60  ;;  %6164 = vmatprep.mubr.bf16.mxu0 %v6005_v46  ;;  %v6353_v46 = vpack.c.b16 %v6348_v7, %v6348_v7  ;;  %v10522_v7 = vld [vmem:[%s12988_s3 + $0x128] sm:$0xff]  }
 0x2ba   :  { %9777 = vmatpush3.bf16.msra.mxu1 %v10484_v22  ;;  %9749 = vmatprep.subr.bf16.mxu0 %v10485_v61  ;;  %v10511_v22 = vld [vmem:[%s12988_s3 + $0x80] sm:$0xff]  }
 0x2bb   :  { %9778 = vmatprep.subr.bf16.mxu1 %v10486_v45  ;;  %v5999_v45 = vsel %vm200_vm1, %v5998_v24, %v5992_v26 }
 0x2bd   :  { %9750 = vmatpush3.bf16.msra.mxu0 %v10487_v47  ;;  %v6294_v47 = vpack.c.bf16 %v6282_v52, %v6282_v52 }
 0x2be   :  { %9779 = vmatpush3.bf16.msra.mxu1 %v10488_v5  ;;  %v2945_v28 = vpop.permute.xlu1 %2944  ;;  %9751 = vmatprep.subr.bf16.mxu0 %v10489_v29 }
 0x2bf   :  { %v2948_v49 = vrot.slane %v2945_v28, 7  ;;  %9780 = vmatprep.subr.bf16.mxu1 %v10490_v57 }
 0x2c0   :  { %v2947_v25 = vpop.permute.xlu0 %2946 }
 0x2c1   :  { %v2950_v63 = vsel %vm581_vm12, %v2948_v49, %v2945_v28  ;;  %9752 = vmatpush3.bf16.msra.mxu0 %v10491_v23  ;;  %v2949_v55 = vrot.slane %v2947_v25, 7  ;;  %v6270_v28 = vrot.slane %v12109_v33, %v11402_v39  ;;  %v5945_v49 = vpack.c.bf16 %v5933_v59, %v5933_v59  ;;  %v10524_v59 = vld [vmem:[%s12988_s3 + $0xa8] sm:$0xff]  }
 0x2c2   :  { %2955 = vst.msk [vmem:[#allocation3 + $0x7] ss:$8 sm:$0x7] %vm11592_vm13, %v2950_v63  ;;  %9781 = vmatpush3.bf16.msra.mxu1 %v10492_v32  ;;  %9753 = vmatprep.subr.bf16.mxu0 %v10493_v35  ;;  %v6004_v32 = vpack.c.b16 %v5999_v45, %v5999_v45  ;;  %v10513_v35 = vld [vmem:[%s12988_s3 + $0x88] sm:$0xff]   ;;  %v5921_v63 = vrot.slane %v12129_v54, %v11402_v39  ;;  %v10525_v45 = vld [vmem:[%s12988_s3 + $0x130] sm:$0xff]  }
 0x2c3   :  { %v2951_v51 = vsel %vm581_vm12, %v2949_v55, %v2947_v25  ;;  %9782 = vmatprep.subr.bf16.mxu1 %v10494_v19  ;;  %v6346_v25 = vunpack.c.l.b16 %v6294_v47  ;;  %v10514_v55 = vld [vmem:[%s12988_s3 + $0x1c8] sm:$0xff]   ;;  %v5997_v54 = vunpack.c.l.b16 %v5945_v49  ;;  %v10526_v47 = vld [vmem:[%s12988_s3 + $0xf0] sm:$0xff]  }
 0x2c4   :  { %2958 = vst.msk [vmem:[#allocation3 + $0x37] ss:$8 sm:$0x7] %vm11592_vm13, %v2951_v51 }
 0x2c5   :  { %9754 = vmatpush3.bf16.msra.mxu0 %v10495_v62  ;;  %v6291_v62 = vpack.c.bf16 %v6270_v28, %v6270_v28  ;;  %v10528_v28 = vld [vmem:[%s12988_s3 + $0x138] sm:$0xff]  }
 0x2c6   :  { %9783 = vmatpush3.bf16.msra.mxu1 %v10496_v9  ;;  %9755 = vmatprep.subr.bf16.mxu0 %v10497_v27  ;;  %v6351_v27 = vrot.slane %v6346_v25, 7  ;;  %v10531_v25 = vld [vmem:[%s12988_s3 + $0xb8] sm:$0xff]  }
 0x2c7   :  { %9784 = vmatprep.subr.bf16.mxu1 %v10498_v21  ;;  %v5942_v21 = vpack.c.bf16 %v5921_v63, %v5921_v63  ;;  %v6343_v13 = vunpack.c.l.b16 %v6291_v62  ;;  %v10532_v63 = vld [vmem:[%s12988_s3 + $0x140] sm:$0xff]  }
 0x2c8   :  { %v10533_v62 = vld [vmem:[%s12988_s3 + $0x100] sm:$0xff]  }
 0x2c9   :  { %9756 = vmatpush3.bf16.msra.mxu0 %v10499_v58  ;;  %v12304_v33 = vld [vmem:[#allocation3 + $0x7] ss:$8 sm:$0x7] }
 0x2ca   :  { %9785 = vmatpush3.bf16.msra.mxu1 %v10500_v53  ;;  %9757 = vmatprep.subr.bf16.mxu0 %v10501_v14  ;;  %v6573_v9 = vrot.slane %v12304_v33, %v11393_v31  ;;  %v10517_v58 = vld [vmem:[%s12988_s3 + $0x98] sm:$0xff]   ;;  %v6002_v14 = vrot.slane %v5997_v54, 7  ;;  %v6577_v52 = vrot.slane %v12304_v33, %v11402_v39 }
 0x2cb   :  { %9786 = vmatprep.subr.bf16.mxu1 %v10502_v15  ;;  %v12277_v60 = vld [vmem:[#allocation3 + $0x37] ss:$8 sm:$0x7]  ;;  %v6352_v15 = vsel %vm200_vm1, %v6351_v27, %v6343_v13  ;;  %v12412_v27 = vld [vmem:[%s12989_s4] ss:$0 sm:$0xff]  ;;  %s10745_s4 = smov [#allocation9]  }
 0x2cc   :  { %v6585_v29 = vrot.slane %v12277_v60, %v11393_v31  ;;  %v6597_v53 = vpack.c.bf16 %v6573_v9, %v6573_v9  ;;  %v6589_v41 = vrot.slane %v12277_v60, %v11402_v39  ;;  %v6355_v17 = vpack.c.b16 %v6352_v15, %v6352_v15  ;;  %s8459_s15 = sshll.u32 %s10745_s4, 4  ;;  %s8460_s15 = int_to_ptr.vmem [resolvable:$true] %s8459_s15 }
 0x2cd   :  { %9758 = vmatpush3.bf16.msra.mxu0 %v10503_v2  ;;  %v5994_v2 = vunpack.c.l.b16 %v5942_v21  ;;  %v6581_v9 = vrot.slane %v12277_v60, %v11388_v11  ;;  %v10536_v21 = vld [vmem:[%s12988_s3 + $0x148] sm:$0xff]   ;;  %s10681_s2 = scalar_lea.vmem %s8460_s15, 32  ;;  %p10686_p9 = scmp.lt.s32.totalorder %s8460_s15, %s8460_s15 }
 0x2ce   :  { %9787 = vmatpush3.bf16.msra.mxu1 %v10504_v40  ;;  %9759 = vmatprep.subr.bf16.mxu0 %v10505_v0  ;;  %v6600_v34 = vpack.c.bf16 %v6585_v29, %v6585_v29  ;;  %v10519_v0 = vld [vmem:[%s12988_s3 + $0x120] sm:$0xff]   ;;  %v10537_v60 = vld [vmem:[%s12988_s3 + $0x108] sm:$0xff]   ;;  %p10682_p8 = scmp.ne.s32.totalorder %s8460_s15, %s10681_s2  ;;  %p10687_p10 = scmp.lt.s32.totalorder %s10681_s2, %s10681_s2 }
 0x2cf   :  { %9788 = vmatprep.subr.bf16.mxu1 %v10506_v4  ;;  %v6649_v4 = vunpack.c.l.b16 %v6597_v53  ;;  %v6003_v48 = vsel %vm200_vm1, %v6002_v14, %v5994_v2  ;;  %v6599_v53 = vpack.c.bf16 %v6581_v9, %v6581_v9  ;;  %v6569_v2 = vrot.slane %v12304_v33, %v11388_v11  ;;  %v10543_v33 = vld [vmem:[%s12988_s3 + $0xd0] sm:$0xff]  }
 0x2d0   :  { %v6652_v51 = vunpack.c.l.b16 %v6600_v34  ;;  %v6006_v24 = vpack.c.b16 %v6003_v48, %v6003_v48  ;;  %v10544_v48 = vld [vmem:[%s12988_s3 + $0x158] sm:$0xff]   ;;  %p10688_p11 = por %p10687_p10, %p10686_p9 }
 0x2d1   :  { %9760 = vmatpush3.bf16.msra.mxu0 %v10507_v42  ;;  %v6601_v42 = vpack.c.bf16 %v6589_v41, %v6589_v41 }
 0x2d2   :  { %9789 = vmatpush3.bf16.msra.mxu1 %v10508_v20  ;;  %v3339_v37 = vpop.permute.xlu1 %3338  ;;  %9761 = vmatprep.subr.bf16.mxu0 %v10509_v6  ;;  %v6656_v16 = vrot.slane %v6652_v51, 7  ;;  %v10521_v6 = vld [vmem:[%s12988_s3 + $0xa0] sm:$0xff]   ;;  %p10689_p12 = pnand %p10688_p11, %p10682_p8 }
 0x2d3   :  { %v3342_v61 = vrot.slane %v3339_v37, 7  ;;  %9980 = vmatprep.subr.bf16.mxu1 %v11373_v36  ;;  %v10535_v51 = vld [vmem:[%s12988_s3 + $0xc0] sm:$0xff]  }
 0x2d4   :  { %v3341_v5 = vpop.permute.xlu0 %3340  ;;  %v6657_v38 = vsel %vm200_vm1, %v6656_v16, %v6649_v4  ;;  %v10539_v16 = vld [vmem:[%s12988_s3 + $0xc8] sm:$0xff]   ;;  %v6651_v4 = vunpack.c.l.b16 %v6599_v53 }
 0x2d5   :  { %v3344_v57 = vsel %vm581_vm12, %v3342_v61, %v3339_v37  ;;  %6514 = vmatmul.mubr.bf16.vlgmr.msra.gmra.mrb[36].mxu1 %v6353_v46  ;;  %9762 = vmatpush3.bf16.msra.mxu0 %v10510_v8  ;;  %v3343_v23 = vrot.slane %v3341_v5, 7  ;;  %v10523_v8 = vld [vmem:[%s12988_s3 + $0xe8] sm:$0xff]   ;;  %v6661_v26 = vpack.c.b16 %v6657_v38, %v6657_v38  ;;  %v6598_v46 = vpack.c.bf16 %v6577_v52, %v6577_v52  ;;  %v10546_v38 = vld [vmem:[%s12988_s3 + $0x1a0] sm:$0xff]  }
 0x2d6   :  { %3349 = vst.msk [vmem:[#allocation3 + $0x18] ss:$8 sm:$0x7] %vm11592_vm13, %v3344_v57  ;;  %9981 = vmatpush3.bf16.msra.mxu1 %v10511_v22  ;;  %9968 = vmatprep.subr.bf16.mxu0 %v11373_v36  ;;  %v6653_v22 = vunpack.c.l.b16 %v6601_v42  ;;  %v10527_v57 = vld [vmem:[%s12988_s3 + $0xb0] sm:$0xff]   ;;  %v10545_v42 = vld [vmem:[%s12988_s3 + $0x118] sm:$0xff]  }
 0x2d7   :  { %v3345_v19 = vsel %vm581_vm12, %v3343_v23, %v3341_v5  ;;  %9982 = vmatprep.subr.bf16.mxu1 %v11373_v36  ;;  %9988 = vmatprep.mubr.msk.bf16.mxu1 %vm10740_vm9, %v11373_v36 }
 0x2d8   :  { %3352 = vst.msk [vmem:[#allocation3 + $0x48] ss:$8 sm:$0x7] %vm11592_vm13, %v3345_v19  ;;  %6165 = vmatmul.mubr.bf16.vlgmr.msra.gmra.mrb[40].mxu0 %v6004_v32  ;;  %v6658_v29 = vrot.slane %v6653_v22, 7  ;;  %v10529_v32 = vld [vmem:[%s12988_s3 + $0xf8] sm:$0xff]  }
 0x2d9   :  { %9969 = vmatpush3.bf16.msra.mxu0 %v10512_v18  ;;  %9976 = vmatprep.mubr.msk.bf16.mxu0 %vm10740_vm9, %v11373_v36  ;;  %v6650_v18 = vunpack.c.l.b16 %v6598_v46  ;;  %v10551_v46 = vld [vmem:[%s12988_s3 + $0x1b0] sm:$0xff]  }
 0x2da   :  { %9983 = vmatpush3.bf16.msra.mxu1 %v10513_v35  ;;  %9970 = vmatprep.subr.bf16.mxu0 %v11373_v36  ;;  %v10530_v35 = vld [vmem:[%s12988_s3 + $0x180] sm:$0xff]  }
 0x2db   :  { %9984 = vmatprep.subr.bf16.mxu1 %v11373_v36  ;;  %v6659_v19 = vsel %vm200_vm1, %v6658_v29, %v6650_v18 }
 0x2dd   :  { %9971 = vmatpush3.bf16.msra.mxu0 %v10514_v55  ;;  %v12350_v20 = vld [vmem:[#allocation3 + $0x18] ss:$8 sm:$0x7]  ;;  %v6662_v55 = vpack.c.b16 %v6659_v19, %v6659_v19 }
 0x2de   :  { %9985 = vmatpush3.bf16.msra.mxu1 %v10515_v10  ;;  %9972 = vmatprep.subr.bf16.mxu0 %v11373_v36  ;;  %v6880_v37 = vrot.slane %v12350_v20, %v11393_v31  ;;  %v10534_v10 = vld [vmem:[%s12988_s3 + $0x188] sm:$0xff]   ;;  %v6884_v9 = vrot.slane %v12350_v20, %v11402_v39 }
 0x2df   :  { %9986 = vmatprep.subr.bf16.mxu1 %v11373_v36  ;;  %v12330_v30 = vld [vmem:[#allocation3 + $0x48] ss:$8 sm:$0x7] }
 0x2e0   :  { %v6892_v40 = vrot.slane %v12330_v30, %v11393_v31  ;;  %v6904_v5 = vpack.c.bf16 %v6880_v37, %v6880_v37 }
 0x2e1   :  { %9973 = vmatpush3.bf16.msra.mxu0 %v10516_v44  ;;  %v10091_v44 = vadd.f32 %v11956_v50, %v12412_v27 }
 0x2e2   :  { %9987 = vmatpush3.bf16.msra.mxu1 %v10517_v58  ;;  %9974 = vmatprep.subr.bf16.mxu0 %v11373_v36  ;;  %v6907_v12 = vpack.c.bf16 %v6892_v40, %v6892_v40  ;;  %v6956_v49 = vunpack.c.l.b16 %v6904_v5  ;;  %v10538_v58 = vld [vmem:[%s12988_s3 + $0x190] sm:$0xff]  }
 0x2e3   :  { %9992 = vmatprep.subr.bf16.mxu1 %v11373_v36  ;;  %v10541_v40 = vld [vmem:[%s12988_s3 + $0x110] sm:$0xff]  }
 0x2e4   :  { %v6959_v61 = vunpack.c.l.b16 %v6907_v12  ;;  %v6888_v12 = vrot.slane %v12330_v30, %v11388_v11 }
 0x2e5   :  { %9989 = vmatmul.mubr.msk.bf16.vlgmr.msra.gmra.mrb[40].mxu1 %vm61_vm8, %v6355_v17  ;;  %9975 = vmatpush3.bf16.msra.mxu0 %v10518_v43  ;;  %v10540_v43 = vld [vmem:[%s12988_s3 + $0x150] sm:$0xff]   ;;  %v6596_v17 = vpack.c.bf16 %v6569_v2, %v6569_v2 }
 0x2e6   :  { %9993 = vmatpush3.bf16.msra.mxu1 %v10519_v0  ;;  %9801 = vmatprep.subr.bf16.mxu0 %v10520_v3  ;;  %v6963_v23 = vrot.slane %v6959_v61, 7  ;;  %v10542_v3 = vld [vmem:[%s12988_s3 + $0x198] sm:$0xff]   ;;  %v6906_v37 = vpack.c.bf16 %v6888_v12, %v6888_v12  ;;  %v6876_v61 = vrot.slane %v12350_v20, %v11388_v11 }
 0x2e7   :  { %9994 = vmatprep.subr.bf16.mxu1 %v11373_v36  ;;  %10000 = vmatprep.mubr.msk.bf16.mxu1 %vm10740_vm9, %v11373_v36  ;;  %v6648_v52 = vunpack.c.l.b16 %v6596_v17 }
 0x2e8   :  { %9977 = vmatmul.mubr.msk.bf16.vlgmr.msra.gmra.mrb[36].mxu0 %vm61_vm8, %v6006_v24  ;;  %v6964_v34 = vsel %vm200_vm1, %v6963_v23, %v6956_v49  ;;  %v10547_v24 = vld [vmem:[%s12988_s3 + $0xd8] sm:$0xff]   ;;  %v6903_v5 = vpack.c.bf16 %v6876_v61, %v6876_v61  ;;  %v10564_v61 = vld [vmem:[%s12990_s5 + $0x28] sm:$0xff]  }
 0x2e9   :  { %9802 = vmatpush3.bf16.msra.mxu0 %v10521_v6  ;;  %6820 = vmatprep.mubr.bf16.mxu0 %v6661_v26  ;;  %v6968_v54 = vpack.c.b16 %v6964_v34, %v6964_v34  ;;  %v6654_v6 = vrot.slane %v6651_v4, 7  ;;  %v10549_v26 = vld [vmem:[%s12988_s3 + $0x1a8] sm:$0xff]   ;;  %v10554_v49 = vld [vmem:[%s12988_s3 + $0x178] sm:$0xff]   ;;  %v6896_v34 = vrot.slane %v12330_v30, %v11402_v39  ;;  %v10557_v39 = vld [vmem:[%s12988_s3 + $0x1d0] sm:$0xff]  }
 0x2ea   :  { %9995 = vmatpush3.bf16.msra.mxu1 %v10522_v7  ;;  %9803 = vmatprep.subr.bf16.mxu0 %v10523_v8  ;;  %v10548_v7 = vld [vmem:[%s12988_s3 + $0x160] sm:$0xff]   ;;  %v6955_v19 = vunpack.c.l.b16 %v6903_v5  ;;  %v10556_v30 = vld [vmem:[%s12988_s3 + $0x1c8] sm:$0xff]  }
 0x2eb   :  { %9996 = vmatprep.subr.bf16.mxu1 %v11373_v36  ;;  %v6655_v8 = vsel %vm200_vm1, %v6654_v6, %v6648_v52  ;;  %v10561_v6 = vld [vmem:[%s12990_s5 + $0x10] sm:$0xff]  }
 0x2ec   :  { %v6660_v22 = vpack.c.b16 %v6655_v8, %v6655_v8 }
 0x2ed   :  { %9804 = vmatpush3.bf16.msra.mxu0 %v10524_v59  ;;  %v10550_v59 = vld [vmem:[%s12988_s3 + $0x168] sm:$0xff]  }
 0x2ee   :  { %9997 = vmatpush3.bf16.msra.mxu1 %v10525_v45  ;;  %9805 = vmatprep.subr.bf16.mxu0 %v10526_v47  ;;  %v6958_v45 = vunpack.c.l.b16 %v6906_v37  ;;  %v10552_v47 = vld [vmem:[%s12988_s3 + $0x170] sm:$0xff]  }
 0x2ef   :  { %9998 = vmatprep.subr.bf16.mxu1 %v11373_v36 }
 0x2f0   :  { %v6961_v18 = vrot.slane %v6958_v45, 7 }
 0x2f1   :  { %9806 = vmatpush3.bf16.msra.mxu0 %v10527_v57  ;;  %v10553_v57 = vld [vmem:[%s12988_s3 + $0x1b8] sm:$0xff]  }
 0x2f2   :  { %9999 = vmatpush3.bf16.msra.mxu1 %v10528_v28  ;;  %9807 = vmatprep.subr.bf16.mxu0 %v10529_v32 }
 0x2f3   :  { %9828 = vmatprep.subr.bf16.mxu1 %v10530_v35 }
 0x2f5   :  { %10001 = vmatmul.mubr.msk.bf16.vlgmr.msra.gmra.mrb[40].mxu1 %vm61_vm8, %v6662_v55  ;;  %9808 = vmatpush3.bf16.msra.mxu0 %v10531_v25  ;;  %v10555_v55 = vld [vmem:[%s12988_s3 + $0x1c0] sm:$0xff]  }
 0x2f6   :  { %9829 = vmatpush3.bf16.msra.mxu1 %v10532_v63  ;;  %7127 = vmatprep.mubr.bf16.mxu1 %v6968_v54  ;;  %v6962_v63 = vsel %vm200_vm1, %v6961_v18, %v6955_v19  ;;  %v10566_v18 = vld [vmem:[%s12990_s5 + $0x38] sm:$0xff]  }
 0x2f7   :  { %v9574_v13 = vpop.f32.mrb[20].mxu1  ;;  %9809 = vmatprep.subr.bf16.mxu0 %v10533_v62  ;;  %9830 = vmatprep.subr.bf16.mxu1 %v10534_v10  ;;  %v6967_v62 = vpack.c.b16 %v6962_v63, %v6962_v63  ;;  %v6908_v10 = vpack.c.bf16 %v6896_v34, %v6896_v34 }
 0x2f8   :  { %v9575_v14 = vpop.f32.mrb[21].mxu1 }
 0x2f9   :  { %v9576_v15 = vadd.f32 %v9575_v14, %v9574_v13  ;;  %9810 = vmatpush3.bf16.msra.mxu0 %v10535_v51  ;;  %v9577_v41 = vpop.f32.mrb[22].mxu1  ;;  %v6960_v51 = vunpack.c.l.b16 %v6908_v10  ;;  %v6905_v13 = vpack.c.bf16 %v6884_v9, %v6884_v9  ;;  %v10558_v14 = vld [vmem:[%s12988_s3 + $0x1d8] sm:$0xff]   ;;  %v10568_v9 = vld [vmem:[%s12990_s5 + $0x48] sm:$0xff]  }
 0x2fa   :  { %9831 = vmatpush3.bf16.msra.mxu1 %v10536_v21  ;;  %v9578_v50 = vpop.f32.mrb[23].mxu1  ;;  %9811 = vmatprep.subr.bf16.mxu0 %v10537_v60 }
 0x2fb   :  { %v10092_v0 = vadd.f32 %v10091_v44, %v9576_v15  ;;  %9832 = vmatprep.subr.bf16.mxu1 %v10538_v58  ;;  %v6965_v20 = vrot.slane %v6960_v51, 7  ;;  %v6957_v53 = vunpack.c.l.b16 %v6905_v13  ;;  %v10570_v51 = vld [vmem:[%s12990_s5 + $0x58] sm:$0xff]  }
 0x2fd   :  { %9812 = vmatpush3.bf16.msra.mxu0 %v10539_v16  ;;  %v6966_v15 = vsel %vm200_vm1, %v6965_v20, %v6957_v53  ;;  %v10575_v53 = vld [vmem:[%s12990_s5] sm:$0xff]  }
 0x2fe   :  { %9833 = vmatpush3.bf16.msra.mxu1 %v10540_v43  ;;  %9813 = vmatprep.subr.bf16.mxu0 %v10541_v40  ;;  %v6969_v41 = vpack.c.b16 %v6966_v15, %v6966_v15  ;;  %v10577_v15 = vld [vmem:[%s12990_s5 + $0x8] sm:$0xff]  }
 0x2ff   :  { %9834 = vmatprep.subr.bf16.mxu1 %v10542_v3  ;;  %v10560_v3 = vld [vmem:[%s12990_s5 + $0x8] sm:$0xff]  }
 0x301   :  { %9814 = vmatpush3.bf16.msra.mxu0 %v10543_v33 }
 0x302   :  { %9835 = vmatpush3.bf16.msra.mxu1 %v10544_v48  ;;  %9815 = vmatprep.subr.bf16.mxu0 %v10545_v42 }
 0x303   :  { %9836 = vmatprep.subr.bf16.mxu1 %v10546_v38 }
 0x305   :  { %9816 = vmatpush3.bf16.msra.mxu0 %v10547_v24  ;;  %v10562_v24 = vld [vmem:[%s12990_s5 + $0x18] sm:$0xff]  }
 0x306   :  { %9837 = vmatpush3.bf16.msra.mxu1 %v10548_v7  ;;  %7362 = vmatprep.subr.bf16.mxu0 %v10735_v1 }
 0x307   :  { %9838 = vmatprep.subr.bf16.mxu1 %v10549_v26 }
 0x308   :  { %6821 = vmatmul.mubr.bf16.vlgmr.msra.gmra.mrb[44].mxu0 %v6660_v22 }
 0x309   :  { %7363 = vmatpush1.bf16.msra.mxu0 %v10575_v53 }
 0x30a   :  { %9839 = vmatpush3.bf16.msra.mxu1 %v10550_v59  ;;  %v10563_v59 = vld [vmem:[%s12990_s5 + $0x20] sm:$0xff]   ;;  %7364 = vmatprep.subr.bf16.mxu0 %v10735_v1 }
 0x30b   :  { %v9601_v29 = vpop.f32.mrb[20].mxu0  ;;  %9840 = vmatprep.subr.bf16.mxu1 %v10551_v46  ;;  %v10565_v46 = vld [vmem:[%s12990_s5 + $0x30] sm:$0xff]  }
 0x30c   :  { %v9602_v23 = vpop.f32.mrb[21].mxu0 }
 0x30d   :  { %v9603_v28 = vadd.f32 %v9602_v23, %v9601_v29  ;;  %v9604_v32 = vpop.f32.mrb[22].mxu0  ;;  %7365 = vmatpush1.bf16.msra.mxu0 %v10577_v15 }
 0x30e   :  { %9841 = vmatpush3.bf16.msra.mxu1 %v10552_v47  ;;  %v9605_v35 = vpop.f32.mrb[23].mxu0  ;;  %7366 = vmatprep.subr.bf16.mxu0 %v10735_v1 }
 0x30f   :  { %9842 = vmatprep.subr.bf16.mxu1 %v10553_v57  ;;  %v10093_v25 = vadd.f32 %v10092_v0, %v9603_v28  ;;  %v10559_v0 = vld [vmem:[%s12990_s5] sm:$0xff]  }
 0x312   :  { %9843 = vmatpush3.bf16.msra.mxu1 %v10554_v49 }
 0x313   :  { %10004 = vmatprep.subr.bf16.mxu1 %v11373_v36 }
 0x315   :  { %7128 = vmatmul.mubr.bf16.vlgmr.msra.gmra.mrb[44].mxu1 %v6967_v62 }
 0x316   :  { %10005 = vmatpush3.bf16.msra.mxu1 %v10555_v55  ;;  %10012 = vmatprep.mubr.msk.bf16.mxu1 %vm10740_vm9, %v11373_v36 }
 0x317   :  { %v4278_v54 = vpop.f32.mrb[16].mxu1  ;;  %10006 = vmatprep.subr.bf16.mxu1 %v11373_v36 }
 0x318   :  { %v12500_v21 = vadd.f32 %v10093_v25, %v4278_v54  ;;  %v9906_v60 = vpop.f32.mrb[17].mxu1  ;;  %v10567_v25 = vld [vmem:[%s12990_s5 + $0x40] sm:$0xff]   ;;  %v10569_v54 = vld [vmem:[%s12990_s5 + $0x50] sm:$0xff]  }
 0x319   :  { %v4281_v44 = vpop.f32.mrb[18].mxu1 }
 0x31a   :  { %10007 = vmatpush3.bf16.msra.mxu1 %v10556_v30  ;;  %v9907_v58 = vpop.f32.mrb[19].mxu1 }
 0x31b   :  { %10008 = vmatprep.subr.bf16.mxu1 %v11373_v36 }
 0x31e   :  { %10009 = vmatpush3.bf16.msra.mxu1 %v10557_v39 }
 0x31f   :  { %10010 = vmatprep.subr.bf16.mxu1 %v11373_v36 }
 0x322   :  { %10011 = vmatpush3.bf16.msra.mxu1 %v10558_v14 }
 0x323   :  { %7925 = vmatprep.subr.bf16.mxu1 %v10735_v1 }
 0x325   :  { %10013 = vmatmul.mubr.msk.bf16.vlgmr.msra.gmra.mrb[40].mxu1 %vm61_vm8, %v6969_v41  ;;  %v10579_v41 = vld [vmem:[%s12990_s5 + $0x10] sm:$0xff]  }
 0x326   :  { %7926 = vmatpush1.bf16.msra.mxu1 %v10559_v0  ;;  %7367 = vmatpush1.bf16.msra.mxu0 %v10579_v41 }
 0x327   :  { %7927 = vmatprep.subr.bf16.mxu1 %v10735_v1  ;;  %7368 = vmatprep.subr.bf16.mxu0 %v10735_v1 }
 0x32a   :  { %7928 = vmatpush1.bf16.msra.mxu1 %v10560_v3 }
 0x32b   :  { %v9628_v16 = vpop.f32.mrb[24].mxu0  ;;  %7929 = vmatprep.subr.bf16.mxu1 %v10735_v1 }
 0x32c   :  { %v9629_v2 = vpop.f32.mrb[25].mxu0 }
 0x32d   :  { %v9630_v50 = vadd.f32 %v9629_v2, %v9628_v16  ;;  %v9631_v43 = vpop.f32.mrb[26].mxu0 }
 0x32e   :  { %v9632_v40 = vpop.f32.mrb[27].mxu0  ;;  %7930 = vmatpush1.bf16.msra.mxu1 %v10561_v6 }
 0x32f   :  { %v10095_v17 = vadd.f32 %v9630_v50, %v12412_v27  ;;  %7931 = vmatprep.subr.bf16.mxu1 %v10735_v1 }
 0x332   :  { %7932 = vmatpush1.bf16.msra.mxu1 %v10562_v24 }
 0x333   :  { %7933 = vmatprep.subr.bf16.mxu1 %v10735_v1 }
 0x336   :  { %7934 = vmatpush1.bf16.msra.mxu1 %v10563_v59 }
 0x337   :  { %7935 = vmatprep.subr.bf16.mxu1 %v10735_v1 }
 0x33a   :  { %7936 = vmatpush1.bf16.msra.mxu1 %v10564_v61 }
 0x33b   :  { %7937 = vmatprep.subr.bf16.mxu1 %v10735_v1 }
 0x33e   :  { %7938 = vmatpush1.bf16.msra.mxu1 %v10565_v46 }
 0x33f   :  { %7939 = vmatprep.subr.bf16.mxu1 %v10735_v1 }
 0x342   :  { %7940 = vmatpush1.bf16.msra.mxu1 %v10566_v18  ;;  %v7221_v18 = vld [vmem:[#allocation4 + $0x10] ss:$8 sm:$0x3] }
 0x343   :  { %7941 = vmatprep.subr.bf16.mxu1 %v10735_v1 }
 0x346   :  { %7942 = vmatpush1.bf16.msra.mxu1 %v10567_v25 }
 0x347   :  { %7943 = vmatprep.subr.bf16.mxu1 %v10735_v1 }
 0x34a   :  { %7944 = vmatpush1.bf16.msra.mxu1 %v10568_v9 }
 0x34b   :  { %v9655_v4 = vpop.f32.mrb[28].mxu0  ;;  %7945 = vmatprep.subr.bf16.mxu1 %v10735_v1 }
 0x34c   :  { %v9656_v33 = vpop.f32.mrb[29].mxu0 }
 0x34d   :  { %v9657_v48 = vadd.f32 %v9656_v33, %v9655_v4  ;;  %v9658_v42 = vpop.f32.mrb[30].mxu0 }
 0x34e   :  { %v9659_v38 = vpop.f32.mrb[31].mxu0  ;;  %7946 = vmatpush1.bf16.msra.mxu1 %v10569_v54 }
 0x34f   :  { %v10096_v12 = vadd.f32 %v10095_v17, %v9657_v48  ;;  %7947 = vmatprep.subr.bf16.mxu1 %v10735_v1  ;;  %v10581_v38 = vld [vmem:[%s12990_s5 + $0x18] sm:$0xff]  }
 0x350   :  { %7369 = vmatpush1.bf16.msra.mxu0 %v10581_v38 }
 0x351   :  { %7370 = vmatprep.subr.bf16.mxu0 %v10735_v1 }
 0x352   :  { %7948 = vmatpush1.bf16.msra.mxu1 %v10570_v51 }
 0x353   :  { %8110 = vmatprep.subr.bf16.mxu1 %v10735_v1 }
 0x357   :  { %v9682_v52 = vpop.f32.mrb[28].mxu1 }
 0x358   :  { %v9683_v7 = vpop.f32.mrb[29].mxu1 }
 0x359   :  { %v9684_v8 = vadd.f32 %v9683_v7, %v9682_v52  ;;  %v9685_v26 = vpop.f32.mrb[30].mxu1  ;;  %v10583_v52 = vld [vmem:[%s12990_s5 + $0x20] sm:$0xff]  }
 0x35a   :  { %v9686_v37 = vpop.f32.mrb[31].mxu1  ;;  %7371 = vmatpush1.bf16.msra.mxu0 %v10583_v52  ;;  %v10604_v52 = vld [vmem:[%s12990_s5 + $0x80] sm:$0xff]  }
 0x35b   :  { %v10097_v22 = vadd.f32 %v10096_v12, %v9684_v8  ;;  %v10585_v37 = vld [vmem:[%s12990_s5 + $0x28] sm:$0xff]   ;;  %7372 = vmatprep.subr.bf16.mxu0 %v10735_v1 }
 0x35e   :  { %7373 = vmatpush1.bf16.msra.mxu0 %v10585_v37 }
 0x35f   :  { %7374 = vmatprep.subr.bf16.mxu0 %v10735_v1 }
 0x367   :  { %v5243_v45 = vpop.f32.mrb[24].mxu1 }
 0x368   :  { %v10098_v47 = vadd.f32 %v10097_v22, %v5243_v45  ;;  %v9942_v5 = vpop.f32.mrb[25].mxu1  ;;  %v10587_v45 = vld [vmem:[%s12990_s5 + $0x30] sm:$0xff]  }
 0x369   :  { %v5246_v29 = vpop.f32.mrb[26].mxu1  ;;  %7375 = vmatpush1.bf16.msra.mxu0 %v10587_v45  ;;  %v10589_v5 = vld [vmem:[%s12990_s5 + $0x38] sm:$0xff]  }
 0x36a   :  { %v5250_v57 = vmax.f32 %v10098_v47, 0.0  ;;  %v9943_v23 = vpop.f32.mrb[27].mxu1  ;;  %7376 = vmatprep.subr.bf16.mxu0 %v10735_v1  ;;  %v10591_v29 = vld [vmem:[%s12990_s5 + $0x40] sm:$0xff]  }
 0x36b   :  { %v9709_v28 = vpop.f32.mrb[32].mxu0  ;;  %v10592_v23 = vld [vmem:[%s12990_s5 + $0x48] sm:$0xff]  }
 0x36c   :  { %v5258_v32 = vrot.slane %v5250_v57, %v11439_v56  ;;  %v9710_v35 = vpop.f32.mrb[33].mxu0  ;;  %v7219_v57 = vld [vmem:[#allocation4] ss:$8 sm:$0x3] }
 0x36d   :  { %v9711_v49 = vadd.f32 %v9710_v35, %v9709_v28  ;;  %v9712_v19 = vpop.f32.mrb[34].mxu0  ;;  %7377 = vmatpush1.bf16.msra.mxu0 %v10589_v5  ;;  %v7231_v28 = vrot.slane %v7219_v57, %v11393_v31  ;;  %v7239_v35 = vrot.slane %v7221_v18, %v11393_v31 }
 0x36e   :  { %v5259_v34 = vcombine.high %v5258_v32, %v5258_v32  ;;  %v5266_v63 = vrot.slane %v5258_v32, %v11439_v56  ;;  %v9713_v55 = vpop.f32.mrb[35].mxu0  ;;  %7378 = vmatprep.subr.bf16.mxu0 %v10735_v1  ;;  %v7227_v32 = vrot.slane %v7219_v57, %v11388_v11 }
 0x36f   :  { %v10099_v13 = vadd.f32 %v9711_v49, %v12412_v27  ;;  %v7235_v49 = vrot.slane %v7221_v18, %v11388_v11  ;;  %v7245_v19 = vpack.c.bf16 %v7231_v28, %v7231_v28  ;;  %v10593_v55 = vld [vmem:[%s12990_s5 + $0x50] sm:$0xff]   ;;  %v4285_v18 = vmax.f32 %v12500_v21, 0.0 }
 0x370   :  { %v5277_v62 = vrot.slane %v5266_v63, %v11388_v11  ;;  %v5273_v10 = vrot.slane %v5259_v34, %v11439_v56  ;;  %v7244_v25 = vpack.c.bf16 %v7227_v32, %v7227_v32  ;;  %v7247_v34 = vpack.c.bf16 %v7239_v35, %v7239_v35 }
 0x371   :  { %7379 = vmatpush1.bf16.msra.mxu0 %v10591_v29  ;;  %v7246_v63 = vpack.c.bf16 %v7235_v49, %v7235_v49  ;;  %v4293_v21 = vrot.slane %v4285_v18, %v11439_v56 }
 0x372   :  { %5282 = vrot.lane.b32.xlu1 %v5277_v62, %s10742_s26  ;;  %v5281_v30 = vrot.slane %v5273_v10, %v11388_v11  ;;  %7380 = vmatprep.subr.bf16.mxu0 %v10735_v1  ;;  %v7277_v62 = vunpack.c.l.b16 %v7245_v19  ;;  %v7279_v10 = vunpack.c.l.b16 %v7247_v34  ;;  %v7276_v9 = vunpack.c.l.b16 %v7244_v25  ;;  %v10571_v25 = vld [vmem:[%s12990_s5 + $0x60] sm:$0xff]   ;;  %v10608_v34 = vld [vmem:[%s12990_s5 + $0x90] sm:$0xff]  }
 0x374   :  { %5284 = vrot.lane.b32.xlu0 %v5281_v30, %s10742_s26  ;;  %v7278_v30 = vunpack.c.l.b16 %v7246_v63  ;;  %v7282_v54 = vrot.slane %v7279_v10, 7 }
 0x375   :  { %7381 = vmatpush1.bf16.msra.mxu0 %v10592_v23 }
 0x376   :  { %7382 = vmatprep.subr.bf16.mxu0 %v10735_v1  ;;  %v7280_v51 = vrot.slane %v7278_v30, 7  ;;  %v10572_v30 = vld [vmem:[%s12990_s5 + $0x68] sm:$0xff]  }
 0x379   :  { %7383 = vmatpush1.bf16.msra.mxu0 %v10593_v55 }
 0x37a   :  { %7384 = vmatprep.subr.bf16.mxu0 %v10735_v1 }
 0x387   :  { %v9736_v60 = vpop.f32.mrb[32].mxu1 }
 0x388   :  { %v9737_v44 = vpop.f32.mrb[33].mxu1 }
 0x389   :  { %v9738_v58 = vadd.f32 %v9737_v44, %v9736_v60  ;;  %v9739_v39 = vpop.f32.mrb[34].mxu1  ;;  %v10594_v60 = vld [vmem:[%s12990_s5 + $0x58] sm:$0xff]   ;;  %v7283_v44 = vsel %vm200_vm1, %v7282_v54, %v7277_v62 }
 0x38a   :  { %v9740_v20 = vpop.f32.mrb[35].mxu1  ;;  %v7285_v39 = vpack.c.b16 %v7283_v44, %v7283_v44  ;;  %7385 = vmatpush1.bf16.msra.mxu0 %v10594_v60  ;;  %v10610_v54 = vld [vmem:[%s12990_s5 + $0x98] sm:$0xff]   ;;  %v10612_v60 = vld [vmem:[%s12990_s5 + $0xa0] sm:$0xff]   ;;  %v4294_v44 = vcombine.high %v4293_v21, %v4293_v21 }
 0x38b   :  { %v10100_v14 = vadd.f32 %v10099_v13, %v9738_v58  ;;  %v7281_v13 = vsel %vm200_vm1, %v7280_v51, %v7276_v9  ;;  %7554 = vmatprep.subr.bf16.mxu0 %v10735_v1 }
 0x38c   :  { %v7284_v53 = vpack.c.b16 %v7281_v13, %v7281_v13  ;;  %9367 = vmatprep.mubr.msk.bf16.mxu0 %vm61_vm8, %v7285_v39  ;;  %v10573_v39 = vld [vmem:[%s12990_s5 + $0x70] sm:$0xff]  }
 0x38e   :  { %7395 = vmatmul.mubr.bf16.vlgmr.msra.gmra.mrb[48].mxu0 %v7284_v53 }
 0x3a8   :  { %v9790_v16 = vpop.f32.mrb[36].mxu1 }
 0x3a9   :  { %v9791_v2 = vpop.f32.mrb[37].mxu1 }
 0x3aa   :  { %v12584_v50 = vadd.f32 %v9791_v2, %v9790_v16  ;;  %v9793_v43 = vpop.f32.mrb[38].mxu1  ;;  %v10596_v16 = vld [vmem:[%s12990_s5 + $0x60] sm:$0xff]  }
 0x3ab   :  { %v9794_v40 = vpop.f32.mrb[39].mxu1  ;;  %v9763_v0 = vpop.f32.mrb[40].mxu0  ;;  %7555 = vmatpush1.bf16.msra.mxu0 %v10596_v16  ;;  %v4308_v16 = vrot.slane %v4294_v44, %v11439_v56 }
 0x3ac   :  { %v9764_v3 = vpop.f32.mrb[41].mxu0  ;;  %v10598_v40 = vld [vmem:[%s12990_s5 + $0x68] sm:$0xff]   ;;  %7556 = vmatprep.subr.bf16.mxu0 %v10735_v1 }
 0x3ad   :  { %v9765_v4 = vadd.f32 %v9764_v3, %v9763_v0  ;;  %v9766_v33 = vpop.f32.mrb[42].mxu0 }
 0x3ae   :  { %v9767_v17 = vpop.f32.mrb[43].mxu0  ;;  %v10602_v33 = vld [vmem:[%s12990_s5 + $0x78] sm:$0xff]  }
 0x3af   :  { %v10101_v48 = vadd.f32 %v10100_v14, %v9765_v4  ;;  %v10103_v14 = vadd.f32 %v12584_v50, %v12412_v27  ;;  %7557 = vmatpush1.bf16.msra.mxu0 %v10598_v40  ;;  %v10600_v50 = vld [vmem:[%s12990_s5 + $0x70] sm:$0xff]  }
 0x3b0   :  { %7558 = vmatprep.subr.bf16.mxu0 %v10735_v1  ;;  %v10616_v40 = vld [vmem:[%s12990_s5 + $0xb0] sm:$0xff]  }
 0x3b3   :  { %7559 = vmatpush1.bf16.msra.mxu0 %v10600_v50  ;;  %v10618_v50 = vld [vmem:[%s12990_s5 + $0xb8] sm:$0xff]  }
 0x3b4   :  { %7560 = vmatprep.subr.bf16.mxu0 %v10735_v1 }
 0x3b7   :  { %7561 = vmatpush1.bf16.msra.mxu0 %v10602_v33  ;;  %v10584_v33 = vld [vmem:[%s12990_s5 + $0xa0] sm:$0xff]  }
 0x3b8   :  { %7562 = vmatprep.subr.bf16.mxu0 %v10735_v1 }
 0x3bb   :  { %v6206_v42 = vpop.f32.mrb[36].mxu0  ;;  %7563 = vmatpush1.bf16.msra.mxu0 %v10604_v52 }
 0x3bc   :  { %v10102_v6 = vadd.f32 %v10101_v48, %v6206_v42  ;;  %v9978_v12 = vpop.f32.mrb[37].mxu0  ;;  %7564 = vmatprep.subr.bf16.mxu0 %v10735_v1 }
 0x3bd   :  { %v6209_v24 = vpop.f32.mrb[38].mxu0 }
 0x3be   :  { %v6213_v7 = vmax.f32 %v10102_v6, 0.0  ;;  %v9979_v8 = vpop.f32.mrb[39].mxu0 }
 0x3c0   :  { %v6221_v26 = vrot.slane %v6213_v7, %v11439_v56 }
 0x3c2   :  { %v6222_v22 = vcombine.high %v6221_v26, %v6221_v26  ;;  %v6229_v59 = vrot.slane %v6221_v26, %v11439_v56 }
 0x3c4   :  { %v6240_v61 = vrot.slane %v6229_v59, %v11388_v11  ;;  %v6236_v46 = vrot.slane %v6222_v22, %v11439_v56 }
 0x3c6   :  { %6245 = vrot.lane.b32.xlu1 %v6240_v61, %s10742_s26  ;;  %v6244_v47 = vrot.slane %v6236_v46, %v11388_v11  ;;  %v10606_v46 = vld [vmem:[%s12990_s5 + $0x88] sm:$0xff]  }
 0x3c7   :  { %7565 = vmatpush1.bf16.msra.mxu0 %v10606_v46 }
 0x3c8   :  { %6247 = vrot.lane.b32.xlu0 %v6244_v47, %s10742_s26  ;;  %7566 = vmatprep.subr.bf16.mxu0 %v10735_v1 }
 0x3cb   :  { %7567 = vmatpush1.bf16.msra.mxu0 %v10608_v34  ;;  %v10603_v34 = vld [vmem:[%s12990_s5 + $0xe0] sm:$0xff]  }
 0x3cc   :  { %7568 = vmatprep.subr.bf16.mxu0 %v10735_v1 }
 0x3cf   :  { %7569 = vmatpush1.bf16.msra.mxu0 %v10610_v54 }
 0x3d0   :  { %7570 = vmatprep.subr.bf16.mxu0 %v10735_v1 }
 0x3d3   :  { %7571 = vmatpush1.bf16.msra.mxu0 %v10612_v60 }
 0x3d4   :  { %7572 = vmatprep.subr.bf16.mxu0 %v10735_v1 }
 0x3db   :  { %v9817_v58 = vpop.f32.mrb[44].mxu0 }
 0x3dc   :  { %v9818_v20 = vpop.f32.mrb[45].mxu0 }
 0x3dd   :  { %v9819_v15 = vadd.f32 %v9818_v20, %v9817_v58  ;;  %v9820_v41 = vpop.f32.mrb[46].mxu0  ;;  %v4301_v20 = vrot.slane %v4293_v21, %v11439_v56  ;;  %v10611_v21 = vld [vmem:[%s12990_s5 + $0x100] sm:$0xff]  }
 0x3de   :  { %v9821_v2 = vpop.f32.mrb[47].mxu0 }
 0x3df   :  { %v10104_v43 = vadd.f32 %v10103_v14, %v9819_v15  ;;  %v10614_v15 = vld [vmem:[%s12990_s5 + $0xa8] sm:$0xff]   ;;  %v10574_v2 = vld [vmem:[%s12990_s5 + $0x78] sm:$0xff]  }
 0x3e0   :  { %7573 = vmatpush1.bf16.msra.mxu0 %v10614_v15 }
 0x3e1   :  { %7574 = vmatprep.subr.bf16.mxu0 %v10735_v1 }
 0x3e4   :  { %v5283_v27 = vpop.permute.xlu1 %5282  ;;  %7575 = vmatpush1.bf16.msra.mxu0 %v10616_v40 }
 0x3e5   :  { %5288 = vst.msk [vmem:[#allocation4 + $0x2] sm:$0x1] %vm4323_vm0, %v5283_v27  ;;  %7576 = vmatprep.subr.bf16.mxu0 %v10735_v1 }
 0x3e6   :  { %5289 = vst.msk [vmem:[#allocation4 + $0xa] sm:$0x1] %vm4325_vm2, %v5283_v27  ;;  %v5285_v0 = vpop.permute.xlu0 %5284  ;;  %v10576_v27 = vld [vmem:[%s12990_s5 + $0x80] sm:$0xff]  }
 0x3e7   :  { %5290 = vst.msk [vmem:[#allocation4 + $0x12] sm:$0x1] %vm4323_vm0, %v5285_v0 }
 0x3e8   :  { %5291 = vst.msk [vmem:[#allocation4 + $0x1a] sm:$0x1] %vm4325_vm2, %v5285_v0  ;;  %v9844_v3 = vpop.f32.mrb[44].mxu1  ;;  %v10578_v0 = vld [vmem:[%s12990_s5 + $0x88] sm:$0xff]   ;;  %7577 = vmatpush1.bf16.msra.mxu0 %v10618_v50 }
 0x3e9   :  { %v9845_v4 = vpop.f32.mrb[45].mxu1  ;;  %7740 = vmatprep.subr.bf16.mxu0 %v10735_v1 }
 0x3ea   :  { %v9846_v17 = vadd.f32 %v9845_v4, %v9844_v3  ;;  %v9847_v48 = vpop.f32.mrb[46].mxu1  ;;  %v10580_v3 = vld [vmem:[%s12990_s5 + $0x90] sm:$0xff]   ;;  %v10582_v4 = vld [vmem:[%s12990_s5 + $0x98] sm:$0xff]  }
 0x3eb   :  { %v9848_v42 = vpop.f32.mrb[47].mxu1  ;;  %v10588_v48 = vld [vmem:[%s12990_s5 + $0xb0] sm:$0xff]  }
 0x3ec   :  { %v10105_v38 = vadd.f32 %v10104_v43, %v9846_v17  ;;  %v4312_v43 = vrot.slane %v4301_v20, %v11388_v11  ;;  %v10586_v17 = vld [vmem:[%s12990_s5 + $0xa8] sm:$0xff]   ;;  %v10590_v42 = vld [vmem:[%s12990_s5 + $0xb8] sm:$0xff]  }
 0x3ed   :  { %v7783_v6 = vld [vmem:[#allocation4 + $0x2] ss:$8 sm:$0x3] }
 0x3ee   :  { %v7794_v12 = vrot.slane %v7783_v6, %v11393_v31  ;;  %v7790_v24 = vrot.slane %v7783_v6, %v11388_v11 }
 0x3ef   :  { %v7784_v7 = vld [vmem:[#allocation4 + $0x12] ss:$8 sm:$0x3] }
 0x3f0   :  { %v7802_v8 = vrot.slane %v7784_v7, %v11393_v31  ;;  %v7798_v26 = vrot.slane %v7784_v7, %v11388_v11  ;;  %v7808_v37 = vpack.c.bf16 %v7794_v12, %v7794_v12  ;;  %v7807_v59 = vpack.c.bf16 %v7790_v24, %v7790_v24  ;;  %v12821_v60 = vld [vmem:[#allocation4 + $0x12] ss:$8 sm:$0x3] }
 0x3f2   :  { %v7810_v22 = vpack.c.bf16 %v7802_v8, %v7802_v8  ;;  %v7809_v61 = vpack.c.bf16 %v7798_v26, %v7798_v26  ;;  %v7840_v5 = vunpack.c.l.b16 %v7808_v37  ;;  %v7839_v57 = vunpack.c.l.b16 %v7807_v59 }
 0x3f4   :  { %v7842_v45 = vunpack.c.l.b16 %v7810_v22  ;;  %v7841_v47 = vunpack.c.l.b16 %v7809_v61 }
 0x3f6   :  { %v7845_v29 = vrot.slane %v7842_v45, 7  ;;  %v7843_v23 = vrot.slane %v7841_v47, 7 }
 0x3f8   :  { %v7846_v28 = vsel %vm200_vm1, %v7845_v29, %v7840_v5  ;;  %v7844_v32 = vsel %vm200_vm1, %v7843_v23, %v7839_v57  ;;  %v7169_v35 = vpop.f32.mrb[40].mxu1 }
 0x3f9   :  { %v7848_v49 = vpack.c.b16 %v7846_v28, %v7846_v28  ;;  %v7847_v19 = vpack.c.b16 %v7844_v32, %v7844_v32  ;;  %v10106_v63 = vadd.f32 %v10105_v38, %v7169_v35  ;;  %v10014_v55 = vpop.f32.mrb[41].mxu1  ;;  %v10595_v35 = vld [vmem:[%s12990_s5 + $0xc0] sm:$0xff]  }
 0x3fa   :  { %v7172_v62 = vpop.f32.mrb[42].mxu1  ;;  %v10607_v55 = vld [vmem:[%s12990_s5 + $0xf0] sm:$0xff]  }
 0x3fb   :  { %9455 = vmatprep.mubr.msk.bf16.mxu1 %vm61_vm8, %v7848_v49  ;;  %v7176_v10 = vmax.f32 %v10106_v63, 0.0  ;;  %v10015_v9 = vpop.f32.mrb[43].mxu1  ;;  %v10597_v49 = vld [vmem:[%s12990_s5 + $0xc8] sm:$0xff]   ;;  %v10609_v62 = vld [vmem:[%s12990_s5 + $0xf8] sm:$0xff]  }
 0x3fc   :  { %7958 = vmatmul.mubr.bf16.vlgmr.msra.gmra.mrb[48].mxu1 %v7847_v19  ;;  %v10599_v19 = vld [vmem:[%s12990_s5 + $0xd0] sm:$0xff]   ;;  %v10605_v63 = vld [vmem:[%s12990_s5 + $0xe8] sm:$0xff]  }
 0x3fd   :  { %8111 = vmatpush1.bf16.msra.mxu1 %v10571_v25  ;;  %v7184_v51 = vrot.slane %v7176_v10, %v11439_v56  ;;  %v10601_v25 = vld [vmem:[%s12990_s5 + $0xd8] sm:$0xff]   ;;  %v10613_v10 = vld [vmem:[%s12990_s5 + $0x108] sm:$0xff]   ;;  %v10615_v9 = vld [vmem:[%s12990_s5 + $0x110] sm:$0xff]  }
 0x3fe   :  { %8112 = vmatprep.subr.bf16.mxu1 %v10735_v1 }
 0x3ff   :  { %v7185_v13 = vcombine.high %v7184_v51, %v7184_v51  ;;  %v7192_v58 = vrot.slane %v7184_v51, %v11439_v56  ;;  %v10617_v51 = vld [vmem:[%s12990_s5 + $0x118] sm:$0xff]  }
 0x401   :  { %8113 = vmatpush1.bf16.msra.mxu1 %v10572_v30  ;;  %v7203_v53 = vrot.slane %v7192_v58, %v11388_v11  ;;  %v7199_v14 = vrot.slane %v7185_v13, %v11439_v56  ;;  %v4316_v56 = vrot.slane %v4308_v16, %v11388_v11  ;;  %v7616_v58 = vrot.slane %v12821_v60, %v11393_v31 }
 0x402   :  { %8114 = vmatprep.subr.bf16.mxu1 %v10735_v1 }
 0x403   :  { %7208 = vrot.lane.b32.xlu1 %v7203_v53, %s10742_s26  ;;  %v7207_v41 = vrot.slane %v7199_v14, %v11388_v11  ;;  %v7624_v16 = vpack.c.bf16 %v7616_v58, %v7616_v58 }
 0x405   :  { %8115 = vmatpush1.bf16.msra.mxu1 %v10573_v39  ;;  %7210 = vrot.lane.b32.xlu0 %v7207_v41, %s10742_s26  ;;  %v12830_v39 = vld [vmem:[#allocation4 + $0x2] ss:$8 sm:$0x3] }
 0x406   :  { %8116 = vmatprep.subr.bf16.mxu1 %v10735_v1  ;;  %v7608_v41 = vrot.slane %v12830_v39, %v11393_v31 }
 0x407   :  { %4317 = vrot.lane.b32.xlu1 %v4312_v43, %s10742_s26 }
 0x409   :  { %8117 = vmatpush1.bf16.msra.mxu1 %v10574_v2  ;;  %4319 = vrot.lane.b32.xlu0 %v4316_v56, %s10742_s26 }
 0x40a   :  { %8118 = vmatprep.subr.bf16.mxu1 %v10735_v1 }
 0x40d   :  { %8119 = vmatpush1.bf16.msra.mxu1 %v10576_v27 }
 0x40e   :  { %8120 = vmatprep.subr.bf16.mxu1 %v10735_v1 }
 0x411   :  { %8121 = vmatpush1.bf16.msra.mxu1 %v10578_v0 }
 0x412   :  { %8122 = vmatprep.subr.bf16.mxu1 %v10735_v1 }
 0x415   :  { %8123 = vmatpush1.bf16.msra.mxu1 %v10580_v3 }
 0x416   :  { %8124 = vmatprep.subr.bf16.mxu1 %v10735_v1 }
 0x419   :  { %8125 = vmatpush1.bf16.msra.mxu1 %v10582_v4 }
 0x41a   :  { %8126 = vmatprep.subr.bf16.mxu1 %v10735_v1 }
 0x41d   :  { %8127 = vmatpush1.bf16.msra.mxu1 %v10584_v33 }
 0x41e   :  { %8128 = vmatprep.subr.bf16.mxu1 %v10735_v1 }
 0x421   :  { %8129 = vmatpush1.bf16.msra.mxu1 %v10586_v17  ;;  %v7622_v17 = vpack.c.bf16 %v7608_v41, %v7608_v41 }
 0x422   :  { %8130 = vmatprep.subr.bf16.mxu1 %v10735_v1 }
 0x425   :  { %8131 = vmatpush1.bf16.msra.mxu1 %v10588_v48  ;;  %v7657_v48 = vunpack.c.l.b16 %v7624_v16  ;;  %v10630_v16 = vld [vmem:[%s12990_s5 + $0x118] sm:$0xff]  }
 0x426   :  { %8132 = vmatprep.subr.bf16.mxu1 %v10735_v1 }
 0x429   :  { %8133 = vmatpush1.bf16.msra.mxu1 %v10590_v42 }
 0x42a   :  { %8295 = vmatprep.subr.bf16.mxu1 %v10735_v1 }
 0x438   :  { %v6246_v38 = vpop.permute.xlu1 %6245 }
 0x439   :  { %6251 = vst.msk [vmem:[#allocation4 + $0x3] sm:$0x1] %vm4323_vm0, %v6246_v38 }
 0x43a   :  { %6252 = vst.msk [vmem:[#allocation4 + $0xb] sm:$0x1] %vm4325_vm2, %v6246_v38  ;;  %v6248_v6 = vpop.permute.xlu0 %6247 }
 0x43b   :  { %6253 = vst.msk [vmem:[#allocation4 + $0x13] sm:$0x1] %vm4323_vm0, %v6248_v6 }
 0x43c   :  { %6254 = vst.msk [vmem:[#allocation4 + $0x1b] sm:$0x1] %vm4325_vm2, %v6248_v6 }
 0x441   :  { %v7967_v12 = vld [vmem:[#allocation4 + $0x3] ss:$8 sm:$0x3] }
 0x442   :  { %v7979_v24 = vrot.slane %v7967_v12, %v11393_v31  ;;  %v7975_v52 = vrot.slane %v7967_v12, %v11388_v11 }
 0x443   :  { %v7969_v7 = vld [vmem:[#allocation4 + $0x13] ss:$8 sm:$0x3] }
 0x444   :  { %v7987_v8 = vrot.slane %v7969_v7, %v11393_v31  ;;  %v7983_v26 = vrot.slane %v7969_v7, %v11388_v11  ;;  %v7993_v37 = vpack.c.bf16 %v7979_v24, %v7979_v24  ;;  %v7992_v59 = vpack.c.bf16 %v7975_v52, %v7975_v52 }
 0x446   :  { %v7995_v22 = vpack.c.bf16 %v7987_v8, %v7987_v8  ;;  %v7994_v61 = vpack.c.bf16 %v7983_v26, %v7983_v26  ;;  %v8025_v47 = vunpack.c.l.b16 %v7993_v37  ;;  %v8024_v29 = vunpack.c.l.b16 %v7992_v59 }
 0x448   :  { %v8027_v46 = vunpack.c.l.b16 %v7995_v22  ;;  %v8026_v45 = vunpack.c.l.b16 %v7994_v61  ;;  %v7660_v61 = vrot.slane %v7657_v48, 7 }
 0x44a   :  { %v8030_v5 = vrot.slane %v8027_v46, 7  ;;  %v8028_v57 = vrot.slane %v8026_v45, 7 }
 0x44c   :  { %v8031_v23 = vsel %vm200_vm1, %v8030_v5, %v8025_v47  ;;  %v8029_v18 = vsel %vm200_vm1, %v8028_v57, %v8024_v29 }
 0x44d   :  { %v8033_v28 = vpack.c.b16 %v8031_v23, %v8031_v23  ;;  %v8032_v32 = vpack.c.b16 %v8029_v18, %v8029_v18 }
 0x44f   :  { %9492 = vmatprep.mubr.msk.bf16.mxu1 %vm61_vm8, %v8033_v28 }
 0x450   :  { %8143 = vmatmul.mubr.bf16.vlgmr.msra.gmra.mrb[48].mxu1 %v8032_v32 }
 0x451   :  { %8296 = vmatpush1.bf16.msra.mxu1 %v10595_v35 }
 0x452   :  { %8297 = vmatprep.subr.bf16.mxu1 %v10735_v1 }
 0x455   :  { %8298 = vmatpush1.bf16.msra.mxu1 %v10597_v49 }
 0x456   :  { %8299 = vmatprep.subr.bf16.mxu1 %v10735_v1 }
 0x459   :  { %8300 = vmatpush1.bf16.msra.mxu1 %v10599_v19 }
 0x45a   :  { %8301 = vmatprep.subr.bf16.mxu1 %v10735_v1 }
 0x45d   :  { %8302 = vmatpush1.bf16.msra.mxu1 %v10601_v25 }
 0x45e   :  { %8303 = vmatprep.subr.bf16.mxu1 %v10735_v1 }
 0x461   :  { %8304 = vmatpush1.bf16.msra.mxu1 %v10603_v34 }
 0x462   :  { %8305 = vmatprep.subr.bf16.mxu1 %v10735_v1 }
 0x465   :  { %8306 = vmatpush1.bf16.msra.mxu1 %v10605_v63  ;;  %v10619_v63 = vld [vmem:[%s12990_s5 + $0xc0] sm:$0xff]  }
 0x466   :  { %8307 = vmatprep.subr.bf16.mxu1 %v10735_v1 }
 0x469   :  { %8308 = vmatpush1.bf16.msra.mxu1 %v10607_v55 }
 0x46a   :  { %8309 = vmatprep.subr.bf16.mxu1 %v10735_v1 }
 0x46d   :  { %8310 = vmatpush1.bf16.msra.mxu1 %v10609_v62  ;;  %v10620_v62 = vld [vmem:[%s12990_s5 + $0xc8] sm:$0xff]  }
 0x46e   :  { %8311 = vmatprep.subr.bf16.mxu1 %v10735_v1 }
 0x471   :  { %8312 = vmatpush1.bf16.msra.mxu1 %v10611_v21  ;;  %v10621_v21 = vld [vmem:[%s12990_s5 + $0xd0] sm:$0xff]  }
 0x472   :  { %8313 = vmatprep.subr.bf16.mxu1 %v10735_v1 }
 0x475   :  { %8314 = vmatpush1.bf16.msra.mxu1 %v10613_v10  ;;  %v7209_v30 = vpop.permute.xlu1 %7208  ;;  %v10622_v10 = vld [vmem:[%s12990_s5 + $0xd8] sm:$0xff]  }
 0x476   :  { %8315 = vmatprep.subr.bf16.mxu1 %v10735_v1  ;;  %7214 = vst.msk [vmem:[#allocation4 + $0x4] sm:$0x1] %vm4323_vm0, %v7209_v30 }
 0x477   :  { %7215 = vst.msk [vmem:[#allocation4 + $0xc] sm:$0x1] %vm4325_vm2, %v7209_v30  ;;  %v7211_v54 = vpop.permute.xlu0 %7210  ;;  %v10624_v30 = vld [vmem:[%s12990_s5 + $0xe8] sm:$0xff]  }
 0x478   :  { %7216 = vst.msk [vmem:[#allocation4 + $0x14] sm:$0x1] %vm4323_vm0, %v7211_v54 }
 0x479   :  { %7217 = vst.msk [vmem:[#allocation4 + $0x1c] sm:$0x1] %vm4325_vm2, %v7211_v54  ;;  %8316 = vmatpush1.bf16.msra.mxu1 %v10615_v9  ;;  %v4318_v44 = vpop.permute.xlu1 %4317  ;;  %v10623_v9 = vld [vmem:[%s12990_s5 + $0xe0] sm:$0xff]   ;;  %v10625_v54 = vld [vmem:[%s12990_s5 + $0xf0] sm:$0xff]  }
 0x47a   :  { %8317 = vmatprep.subr.bf16.mxu1 %v10735_v1  ;;  %4324 = vst.msk [vmem:[#allocation4 + $0x1] sm:$0x1] %vm4323_vm0, %v4318_v44 }
 0x47b   :  { %4326 = vst.msk [vmem:[#allocation4 + $0x9] sm:$0x1] %vm4325_vm2, %v4318_v44  ;;  %v4320_v13 = vpop.permute.xlu0 %4319  ;;  %v7612_v44 = vrot.slane %v12821_v60, %v11388_v11  ;;  %v10629_v60 = vld [vmem:[%s12990_s5 + $0x110] sm:$0xff]  }
 0x47c   :  { %4327 = vst.msk [vmem:[#allocation4 + $0x11] sm:$0x1] %vm4323_vm0, %v4320_v13 }
 0x47d   :  { %4328 = vst.msk [vmem:[#allocation4 + $0x19] sm:$0x1] %vm4325_vm2, %v4320_v13  ;;  %8318 = vmatpush1.bf16.msra.mxu1 %v10617_v51  ;;  %v10626_v51 = vld [vmem:[%s12990_s5 + $0xf8] sm:$0xff]   ;;  %v10627_v13 = vld [vmem:[%s12990_s5 + $0x100] sm:$0xff]   ;;  %v7623_v58 = vpack.c.bf16 %v7612_v44, %v7612_v44 }
 0x47e   :  { %v8152_v20 = vld [vmem:[#allocation4 + $0x4] ss:$8 sm:$0x3] }
 0x47f   :  { %v8164_v53 = vrot.slane %v8152_v20, %v11393_v31  ;;  %v8160_v14 = vrot.slane %v8152_v20, %v11388_v11  ;;  %v10628_v20 = vld [vmem:[%s12990_s5 + $0x108] sm:$0xff]  }
 0x480   :  { %v8154_v15 = vld [vmem:[#allocation4 + $0x14] ss:$8 sm:$0x3] }
 0x481   :  { %v8172_v2 = vrot.slane %v8154_v15, %v11393_v31  ;;  %v8168_v43 = vrot.slane %v8154_v15, %v11388_v11  ;;  %v8178_v40 = vpack.c.bf16 %v8164_v53, %v8164_v53  ;;  %v8177_v56 = vpack.c.bf16 %v8160_v14, %v8160_v14 }
 0x482   :  { %v7410_v27 = vld [vmem:[#allocation4 + $0x1] ss:$8 sm:$0x3]  ;;  %v7604_v53 = vrot.slane %v12830_v39, %v11388_v11  ;;  %v7656_v14 = vunpack.c.l.b16 %v7623_v58 }
 0x483   :  { %v8180_v50 = vpack.c.bf16 %v8172_v2, %v8172_v2  ;;  %v8179_v0 = vpack.c.bf16 %v8168_v43, %v8168_v43  ;;  %v7422_v4 = vrot.slane %v7410_v27, %v11393_v31  ;;  %v7418_v33 = vrot.slane %v7410_v27, %v11388_v11  ;;  %v8344_v43 = vld [vmem:[%s12992_s7] sm:$0xff] }
 0x484   :  { %v7412_v3 = vld [vmem:[#allocation4 + $0x11] ss:$8 sm:$0x3]  ;;  %v8210_v24 = vunpack.c.l.b16 %v8178_v40  ;;  %v8209_v52 = vunpack.c.l.b16 %v8177_v56  ;;  %v7621_v15 = vpack.c.bf16 %v7604_v53, %v7604_v53  ;;  %v7658_v41 = vrot.slane %v7656_v14, 7 }
 0x485   :  { %v8212_v42 = vunpack.c.l.b16 %v8180_v50  ;;  %v8211_v38 = vunpack.c.l.b16 %v8179_v0  ;;  %v7430_v6 = vrot.slane %v7412_v3, %v11393_v31  ;;  %v7426_v12 = vrot.slane %v7412_v3, %v11388_v11  ;;  %v8345_v40 = vld [vmem:[%s12992_s7 + $0x8] sm:$0xff]  ;;  %v8347_v50 = vld [vmem:[%s12992_s7 + $0x18] sm:$0xff]  ;;  %v8348_v0 = vld [vmem:[%s12992_s7 + $0x20] sm:$0xff] }
 0x486   :  { %v7436_v7 = vpack.c.bf16 %v7422_v4, %v7422_v4  ;;  %v7435_v8 = vpack.c.bf16 %v7418_v33, %v7418_v33  ;;  %v7655_v31 = vunpack.c.l.b16 %v7622_v17  ;;  %v7654_v2 = vunpack.c.l.b16 %v7621_v15  ;;  %v8349_v3 = vld [vmem:[%s12992_s7 + $0x28] sm:$0xff]  ;;  %v8350_v33 = vld [vmem:[%s12992_s7 + $0x30] sm:$0xff]  ;;  %v8351_v17 = vld [vmem:[%s12992_s7 + $0x38] sm:$0xff] }
 0x487   :  { %v8215_v26 = vrot.slane %v8212_v42, 7  ;;  %v8213_v37 = vrot.slane %v8211_v38, 7  ;;  %v7438_v22 = vpack.c.bf16 %v7430_v6, %v7430_v6  ;;  %v7437_v59 = vpack.c.bf16 %v7426_v12, %v7426_v12  ;;  %v8352_v42 = vld [vmem:[%s12992_s7 + $0x40] sm:$0xff]  ;;  %v8353_v38 = vld [vmem:[%s12992_s7 + $0x48] sm:$0xff]  ;;  %v8354_v12 = vld [vmem:[%s12992_s7 + $0x50] sm:$0xff] }
 0x488   :  { %v7469_v23 = vunpack.c.l.b16 %v7436_v7  ;;  %v7468_v28 = vunpack.c.l.b16 %v7435_v8  ;;  %v7661_v19 = vsel %vm200_vm1, %v7660_v61, %v7655_v31  ;;  %v7659_v11 = vsel %vm200_vm1, %v7658_v41, %v7654_v2  ;;  %v8356_v7 = vld [vmem:[%s12992_s7 + $0x60] sm:$0xff]  ;;  %v8357_v8 = vld [vmem:[%s12992_s7 + $0x68] sm:$0xff] }
 0x489   :  { %v8216_v46 = vsel %vm200_vm1, %v8215_v26, %v8210_v24  ;;  %v8214_v45 = vsel %vm200_vm1, %v8213_v37, %v8209_v52  ;;  %v7471_v47 = vunpack.c.l.b16 %v7438_v22  ;;  %v7470_v5 = vunpack.c.l.b16 %v7437_v59  ;;  %v8355_v24 = vld [vmem:[%s12992_s7 + $0x58] sm:$0xff]  ;;  %v8358_v26 = vld [vmem:[%s12992_s7 + $0x70] sm:$0xff]  ;;  %v9368_v61 = vld [vmem:[%s12991_s6] ss:$0 sm:$0xff] }
 0x48a   :  { %v8218_v29 = vpack.c.b16 %v8216_v46, %v8216_v46  ;;  %v8217_v57 = vpack.c.b16 %v8214_v45, %v8214_v45  ;;  %v7663_v55 = vpack.c.b16 %v7661_v19, %v7661_v19  ;;  %v7662_v39 = vpack.c.b16 %v7659_v11, %v7659_v11  ;;  %v8359_v22 = vld [vmem:[%s12992_s7 + $0x78] sm:$0xff] }
 0x48b   :  { %v7474_v18 = vrot.slane %v7471_v47, 7  ;;  %v7472_v32 = vrot.slane %v7470_v5, 7  ;;  %v10743_v56 = vmov 0.0|0.0   ;;  %v10052_v27 = vpack.c.bf16 %v8345_v40, %v8344_v43 }
 0x48c   :  { %9529 = vmatprep.mubr.msk.bf16.mxu1 %vm61_vm8, %v8218_v29  ;;  %v10058_v4 = vpack.c.bf16 %v8349_v3, %v8348_v0  ;;  %v10061_v48 = vpack.c.bf16 %v8351_v17, %v8350_v33  ;;  %v10064_v6 = vpack.c.bf16 %v8353_v38, %v8352_v42  ;;  %v10067_v52 = vpack.c.bf16 %v8355_v24, %v8354_v12 }
 0x48d   :  { %8328 = vmatmul.mubr.bf16.vlgmr.msra.gmra.mrb[48].mxu1 %v8217_v57  ;;  %v7475_v35 = vsel %vm200_vm1, %v7474_v18, %v7469_v23  ;;  %v7473_v49 = vsel %vm200_vm1, %v7472_v32, %v7468_v28  ;;  %v10070_v37 = vpack.c.bf16 %v8357_v8, %v8356_v7  ;;  %v10073_v59 = vpack.c.bf16 %v8359_v22, %v8358_v26 }
 0x48e   :  { %v7477_v25 = vpack.c.b16 %v7475_v35, %v7475_v35  ;;  %v7476_v34 = vpack.c.b16 %v7473_v49, %v7473_v49  ;;  %vm8341_vm1 = vcmask 1041920  }
 0x490   :  { %9405 = vmatprep.mubr.msk.bf16.mxu0 %vm61_vm8, %v7477_v25  ;;  %v9530_v25 = vld [vmem:[%s12993_s8] ss:$0 sm:$0xff] }
 0x491   :  { %7587 = vmatmul.mubr.bf16.vlgmr.msra.gmra.mrb[48].mxu0 %v7476_v34 }
 0x492   :  { %7741 = vmatpush1.bf16.msra.mxu0 %v10619_v63  ;;  %9442 = vmatprep.mubr.msk.bf16.mxu0 %vm61_vm8, %v7663_v55 }
 0x493   :  { %7742 = vmatprep.subr.bf16.mxu0 %v10735_v1 }
 0x496   :  { %7743 = vmatpush1.bf16.msra.mxu0 %v10620_v62 }
 0x497   :  { %7744 = vmatprep.subr.bf16.mxu0 %v10735_v1 }
 0x49a   :  { %7745 = vmatpush1.bf16.msra.mxu0 %v10621_v21 }
 0x49b   :  { %7746 = vmatprep.subr.bf16.mxu0 %v10735_v1 }
 0x49e   :  { %7747 = vmatpush1.bf16.msra.mxu0 %v10622_v10 }
 0x49f   :  { %7748 = vmatprep.subr.bf16.mxu0 %v10735_v1 }
 0x4a2   :  { %7749 = vmatpush1.bf16.msra.mxu0 %v10623_v9 }
 0x4a3   :  { %7750 = vmatprep.subr.bf16.mxu0 %v10735_v1 }
 0x4a6   :  { %7751 = vmatpush1.bf16.msra.mxu0 %v10624_v30 }
 0x4a7   :  { %7752 = vmatprep.subr.bf16.mxu0 %v10735_v1 }
 0x4aa   :  { %7753 = vmatpush1.bf16.msra.mxu0 %v10625_v54 }
 0x4ab   :  { %7754 = vmatprep.subr.bf16.mxu0 %v10735_v1 }
 0x4ae   :  { %7755 = vmatpush1.bf16.msra.mxu0 %v10626_v51 }
 0x4af   :  { %7756 = vmatprep.subr.bf16.mxu0 %v10735_v1 }
 0x4b2   :  { %7757 = vmatpush1.bf16.msra.mxu0 %v10627_v13 }
 0x4b3   :  { %7758 = vmatprep.subr.bf16.mxu0 %v10735_v1 }
 0x4b6   :  { %7759 = vmatpush1.bf16.msra.mxu0 %v10628_v20 }
 0x4b7   :  { %7760 = vmatprep.subr.bf16.mxu0 %v10735_v1 }
 0x4ba   :  { %7761 = vmatpush1.bf16.msra.mxu0 %v10629_v60 }
 0x4bb   :  { %7762 = vmatprep.subr.bf16.mxu0 %v10735_v1  ;;  %v8346_v1 = vld [vmem:[%s12992_s7 + $0x10] sm:$0xff] }
 0x4be   :  { %7763 = vmatpush1.bf16.msra.mxu0 %v10630_v16 }
 0x4bf   :  { %10051 = vmatprep.subr.bf16.mxu0 %v10743_v56 }
 0x4c1   :  { %7773 = vmatmul.mubr.bf16.vlgmr.msra.gmra.mrb[48].mxu0 %v7662_v39 }
 0x4c2   :  { %10048 = vmatprep.mubr.msk.f32.mxu0 %vm10740_vm9, %v11373_v36  ;;  %10053 = vmatpush3.bf16.msra.mxu0 %v10052_v27  ;;  %v10055_v36 = vpack.c.bf16 %v8347_v50, %v8346_v1 }
 0x4c3   :  { %10054 = vmatprep.subr.bf16.mxu0 %v10743_v56 }
 0x4c6   :  { %10056 = vmatpush3.bf16.msra.mxu0 %v10055_v36 }
 0x4c7   :  { %10057 = vmatprep.subr.bf16.mxu0 %v10743_v56 }
 0x4ca   :  { %10059 = vmatpush3.bf16.msra.mxu0 %v10058_v4 }
 0x4cb   :  { %10060 = vmatprep.subr.bf16.mxu0 %v10743_v56 }
 0x4ce   :  { %10062 = vmatpush3.bf16.msra.mxu0 %v10061_v48 }
 0x4cf   :  { %10063 = vmatprep.subr.bf16.mxu0 %v10743_v56 }
 0x4d2   :  { %10065 = vmatpush3.bf16.msra.mxu0 %v10064_v6 }
 0x4d3   :  { %10066 = vmatprep.subr.bf16.mxu0 %v10743_v56 }
 0x4d6   :  { %10068 = vmatpush3.bf16.msra.mxu0 %v10067_v52 }
 0x4d7   :  { %10069 = vmatprep.subr.bf16.mxu0 %v10743_v56 }
 0x4da   :  { %10071 = vmatpush3.bf16.msra.mxu0 %v10070_v37 }
 0x4db   :  { %10072 = vmatprep.subr.bf16.mxu0 %v10743_v56 }
 0x4de   :  { %10074 = vmatpush3.bf16.msra.mxu0 %v10073_v59 }
 0x560   :  { %v8329_v46 = vpop.f32.mrb[48].mxu1 }
 0x561   :  { %v10108_v45 = vadd.f32 %v9368_v61, %v8329_v46  ;;  %v8331_v47 = vpop.f32.mrb[49].mxu1 }
 0x562   :  { %v8332_v5 = vpop.f32.mrb[50].mxu1 }
 0x563   :  { %v8336_v29 = vmax.f32 %v10108_v45, 0.0  ;;  %v8333_v57 = vpop.f32.mrb[51].mxu1 }
 0x565   :  { %8338 = vrot.lane.b32.xlu0 %v8336_v29, %s10744_s0 }
 0x594   :  { %v7774_v31 = vpop.f32.mrb[48].mxu0 }
 0x595   :  { %v10107_v23 = vadd.f32 %v9368_v61, %v7774_v31  ;;  %v7776_v18 = vpop.f32.mrb[49].mxu0 }
 0x596   :  { %v7777_v28 = vpop.f32.mrb[50].mxu0 }
 0x597   :  { %v7781_v32 = vmax.f32 %v10107_v23, 0.0  ;;  %v7778_v35 = vpop.f32.mrb[51].mxu0 }
 0x599   :  { %7782 = vst.msk [vmem:[#allocation5] sm:$0x3] %vm65_vm14, %v7781_v32 }
 0x5d7   :  { %v8339_v49 = vpop.permute.xlu0 %8338 }
 0x5d8   :  { %8342 = vst.msk [vmem:[#allocation5] sm:$0x3] %vm8341_vm1, %v8339_v49 }
 0x5df   :  { %v8343_v19 = vld [vmem:[#allocation5] sm:$0x3] }
 0x5e0   :  { %10049 = vmatmul.mubr.f32.vlgmr.msra.gmra.mrb[52].mxu0 %v8343_v19 }
 0x6b3   :  { %v8433_v34 = vpop.f32.mrb[52].mxu0 }
 0x6b4   :  { %v8434_v63 = vadd.f32 %v9530_v25, %v8433_v34  ;;  %v10050_v55 = vpop.f32.mrb[53].mxu0 }
 0x6b6   :  { %v8438_v62 = vand.u32 2147483647, %v8434_v63  ;;  %8447 = vst.msk [vmem:[#allocation9] sm:$0x3] %vm8446_vm3, %v8434_v63 }
 0x6b8   :  { %v8439_v21 = vsub.f32 0.0, %v8438_v62 }
 0x6ba   :  { %v8440_v10 = vmul.f32 1.442695, %v8439_v21 }
 0x6bc   :  { %10631 = vpow2.f32 %v8440_v10 }
 0x6c6   :  { %v10632_v9 = vpop.eup %10631 }
 0x6c7   :  { %v8442_v30 = vadd.f32 1.0, %v10632_v9 }
 0x6c9   :  { %10633 = vlog2.f32 %v8442_v30 }
 0x6ca   :  { %10692 = shalt.err (!%p10689_p12)
}
 0x6cb   :  { %s10693_s21 = scalar_lea.hbm %s12994_s9, 32 }
 0x6cc   :  { %p10694_p13 = scmp.ne.s32.totalorder %s12994_s9, %s10693_s21  ;;  %p10697_p0 = scmp.lt.u32.totalorder %s10693_s21, %s12994_s9 }
 0x6ce   :  { %p10699_p1 = pnand %p10697_p0, %p10694_p13 }
 0x6d0   :  { %10702 = shalt.err (!%p10699_p1)
}
 0x6d1   :  { %8462 = dma.vmem_to_hbm [thread:$0]  %s8460_s15, 32, %s12994_s9, [#allocation8]   ;;  %v8437_v51 = vmax.f32 %v8434_v63, 0.0 }
 0x6d2   :  { %s10746_s29 = smov 120   ;;  %s10747_s11 = smov [#allocation10]  }
 0x6d3   :  { %v10634_v54 = vpop.eup %10633  ;;  %s8469_s12 = sshll.u32 %s10747_s11, 4  ;;  %s8470_s12 = int_to_ptr.vmem [resolvable:$true] %s8469_s12 }
 0x6d4   :  { %v8444_v44 = vmul.f32 0.6931472, %v10634_v54  ;;  %s10703_s13 = scalar_lea.vmem %s8470_s12, 32  ;;  %p10708_p3 = scmp.lt.s32.totalorder %s8470_s12, %s8470_s12 }
 0x6d5   :  { %p10704_p2 = scmp.ne.s32.totalorder %s8470_s12, %s10703_s13  ;;  %p10709_p4 = scmp.lt.s32.totalorder %s10703_s13, %s10703_s13 }
 0x6d6   :  { %v8445_v13 = vadd.f32 %v8444_v44, %v8437_v51 }
 0x6d7   :  { %p10710_p5 = por %p10709_p4, %p10708_p3 }
 0x6d8   :  { %8449 = vrot.lane.b32.xlu1 %v8445_v13, %s10746_s29 }
 0x6d9   :  { %p10711_p6 = pnand %p10710_p5, %p10704_p2 }
 0x74a   :  { %v8450_v58 = vpop.permute.xlu1 %8449 }
 0x74b   :  { %8452 = vst.msk [vmem:[#allocation10] sm:$0x3] %vm8446_vm3, %v8450_v58 }
 0x74c   :  { %10714 = shalt.err (!%p10711_p6)
}
 0x74d   :  { %s10715_s17 = scalar_lea.hbm %s12995_s10, 32 }
 0x74e   :  { %p10716_p7 = scmp.ne.s32.totalorder %s12995_s10, %s10715_s17  ;;  %p10719_p8 = scmp.lt.u32.totalorder %s10715_s17, %s12995_s10 }
 0x750   :  { %p10721_p9 = pnand %p10719_p8, %p10716_p7 }
 0x752   :  { %10724 = shalt.err (!%p10721_p9)
}
 0x753   :  { %8472 = dma.vmem_to_hbm [thread:$0]  %s8470_s12, 32, %s12995_s10, [#allocation11]  }
 0x754   :  { %10727 = dma.done.wait [#allocation8], 32  }
 0x755   :  { %10728 = vsyncadd [#allocation8], 4294967264 }
 0x756   :  { %10729 = dma.done.wait [#allocation11], 32  }
 0x757   :  { %10730 = vsyncadd [#allocation11], 4294967264 }
 0x758   :  { %8479 = vsyncpa [#allocation7], 1 }
 0x759   :  { %8480 = vsyncpa [#allocation8], 1 }
 0x75a   :  { %8481 = vsyncpa [#allocation11], 1 }

</bundles_post_ra>
